<compile_context>
chip_gen: v7x
topology: tpu7x:2x2x1
jax: 0.10.0
libtpu: 0.0.40
codegen_flags: <defaults>
</compile_context>

<pallas_src>
import functools

import jax
import jax.numpy as jnp
from jax import lax
from jax.experimental import pallas as pl
from jax.experimental.pallas import tpu as pltpu

# ---------------- model dimensions (from the module / small test sizes) -----
D = 768                      # hidden size (from nn.Linear(768, ...))
DFF = 1024                   # FFN width of the stand-in encoder/decoder
V = 119547                   # vocab size of the fc head (from nn.Linear)
TV = 4096                    # vocab tile for the fc kernel
VPAD = ((V + TV - 1) // TV) * TV          # 122880, multiple of the tile
NCORE = 2                    # vocab halves -> one per v7x TensorCore
TM_TILE = 256                # token (M) tile cap for the fc kernel
VOCAB_IN = 1000              # input-token vocab for the synthetic embedding
NEG = -1e30
LOGITS_DTYPE = jnp.bfloat16  # bf16 logit store (argmax computed on f32 in-kernel)

assert VPAD % (TV * NCORE) == 0


def _ln(x):
    m = jnp.mean(x, axis=-1, keepdims=True)
    var = jnp.mean(jnp.square(x - m), axis=-1, keepdims=True)
    return (x - m) * lax.rsqrt(var + 1e-5)


# ---------------------------------------------------------------------------
# 1) encoder stand-in: masked self-attention (no projections) + FFN + LN.
#    Whole (small) batch processed in ONE block; bf16 MXU inputs, f32 accum.
#    TODO(synk): real `self.enc` is an external pretrained encoder; this is a
#    deterministic single-layer stand-in with the same interface/shapes.
# ---------------------------------------------------------------------------
def _enc_kernel(mask_ref, x_ref, w1_ref, b1_ref, w2_ref, b2_ref, out_ref):
    x = x_ref[...]                                   # (Ball, S, D) f32
    m = mask_ref[...][:, None, :]                    # (Ball, 1, S) padding mask
    Ball, S, _ = x.shape
    xb = x.astype(jnp.bfloat16)
    scale = 1.0 / jnp.sqrt(jnp.float32(D))

    # scores = x @ x^T per batch element (batched contraction on the MXU)
    s = jnp.einsum('bqd,bkd->bqk', xb, xb,
                   preferred_element_type=jnp.float32) * scale
    s = s + jnp.where(m == 0.0, NEG, 0.0)            # mask padded keys
    a = jax.nn.softmax(s, axis=-1)
    ctx = jnp.einsum('bqk,bkd->bqd', a.astype(jnp.bfloat16), xb,
                     preferred_element_type=jnp.float32)
    x = _ln(x + ctx)

    # FFN: fold batch into rows for better MXU row utilization
    x2 = x.reshape(Ball * S, D)
    h = jnp.maximum(
        jnp.dot(x2.astype(jnp.bfloat16), w1_ref[...],
                preferred_element_type=jnp.float32) + b1_ref[...], 0.0)
    y = x2 + jnp.dot(h.astype(jnp.bfloat16), w2_ref[...],
                     preferred_element_type=jnp.float32) + b2_ref[...]
    out_ref[...] = _ln(y).reshape(Ball, S, D).astype(out_ref.dtype)


def encode(params, tokens, mask):
    Ball, S = tokens.shape
    emb = params["emb"][tokens]                      # glue: embedding lookup
    return pl.pallas_call(
        _enc_kernel,
        out_shape=jax.ShapeDtypeStruct((Ball, S, D), jnp.float32),
        grid_spec=pltpu.PrefetchScalarGridSpec(
            num_scalar_prefetch=0,
            grid=(1,),
            in_specs=[
                pl.BlockSpec((Ball, S), lambda i: (0, 0)),
                pl.BlockSpec((Ball, S, D), lambda i: (0, 0, 0)),
                pl.BlockSpec((D, DFF), lambda i: (0, 0)),
                pl.BlockSpec((1, DFF), lambda i: (0, 0)),
                pl.BlockSpec((DFF, D), lambda i: (0, 0)),
                pl.BlockSpec((1, D), lambda i: (0, 0)),
            ],
            out_specs=pl.BlockSpec((Ball, S, D), lambda i: (0, 0, 0)),
        ),
        compiler_params=pltpu.CompilerParams(
            dimension_semantics=("arbitrary",),
            vmem_limit_bytes=32 * 1024 * 1024),
    )(mask, emb, params["enc_w1"], params["enc_b1"],
      params["enc_w2"], params["enc_b2"])


# ---------------------------------------------------------------------------
# 2) decoder stand-in: causal self-attn + memory cross-attn (key padding mask)
#    + FFN, whole batch fused in one single-block kernel.  q/k/v projections
#    fused into one (D, 3D) bf16 weight.
#    TODO(synk): real `self.dec` is an external nn.TransformerDecoder; this is
#    a deterministic single-head single-layer stand-in (causal tgt mask and
#    the `mask` on memory keys are honored).
# ---------------------------------------------------------------------------
def _dec_kernel(mm_ref, tgt_ref, mem_ref, wqkv_ref, wo_ref,
                w1_ref, b1_ref, w2_ref, b2_ref, out_ref):
    x = tgt_ref[...]                                 # (B, T, D) f32
    mem = mem_ref[...]                               # (B, S, D) f32
    mm = mm_ref[...][:, None, :]                     # (B, 1, S) memory padding mask
    B_, T, _ = x.shape
    S = mem.shape[1]
    scale = 1.0 / jnp.sqrt(jnp.float32(D))
    wqkv = wqkv_ref[...]                             # (D, 3D) bf16
    wo = wo_ref[...]                                 # (D, D) bf16

    # --- causal self-attention (tgt_mask / tgt_is_causal=True) ---
    qkv = jnp.dot(x.reshape(B_ * T, D).astype(jnp.bfloat16), wqkv,
                  preferred_element_type=jnp.float32).reshape(B_, T, 3 * D)
    q, k, v = qkv[..., :D], qkv[..., D:2 * D], qkv[..., 2 * D:]
    s = jnp.einsum('bqd,bkd->bqk', q.astype(jnp.bfloat16),
                   k.astype(jnp.bfloat16),
                   preferred_element_type=jnp.float32) * scale
    row = lax.broadcasted_iota(jnp.int32, (T, T), 0)
    col = lax.broadcasted_iota(jnp.int32, (T, T), 1)
    s = jnp.where(col > row, NEG, s)
    a = jax.nn.softmax(s, axis=-1)
    ctx = jnp.einsum('bqk,bkd->bqd', a.astype(jnp.bfloat16),
                     v.astype(jnp.bfloat16),
                     preferred_element_type=jnp.float32)
    sa = jnp.dot(ctx.reshape(B_ * T, D).astype(jnp.bfloat16), wo,
                 preferred_element_type=jnp.float32).reshape(B_, T, D)
    x = _ln(x + sa)

    # --- cross-attention over encoder memory (`mask` as key padding mask) ---
    q = jnp.dot(x.reshape(B_ * T, D).astype(jnp.bfloat16), wqkv[:, :D],
                preferred_element_type=jnp.float32).reshape(B_, T, D)
    kv = jnp.dot(mem.reshape(B_ * S, D).astype(jnp.bfloat16), wqkv[:, D:],
                 preferred_element_type=jnp.float32).reshape(B_, S, 2 * D)
    k, v = kv[..., :D], kv[..., D:]
    s = jnp.einsum('bqd,bkd->bqk', q.astype(jnp.bfloat16),
                   k.astype(jnp.bfloat16),
                   preferred_element_type=jnp.float32) * scale
    s = s + jnp.where(mm == 0.0, NEG, 0.0)
    a = jax.nn.softmax(s, axis=-1)
    ctx = jnp.einsum('bqk,bkd->bqd', a.astype(jnp.bfloat16),
                     v.astype(jnp.bfloat16),
                     preferred_element_type=jnp.float32)
    ca = jnp.dot(ctx.reshape(B_ * T, D).astype(jnp.bfloat16), wo,
                 preferred_element_type=jnp.float32).reshape(B_, T, D)
    x = _ln(x + ca)

    # --- feed-forward (batch folded into rows) ---
    x2 = x.reshape(B_ * T, D)
    h = jnp.maximum(
        jnp.dot(x2.astype(jnp.bfloat16), w1_ref[...],
                preferred_element_type=jnp.float32) + b1_ref[...], 0.0)
    y = x2 + jnp.dot(h.astype(jnp.bfloat16), w2_ref[...],
                     preferred_element_type=jnp.float32) + b2_ref[...]
    out_ref[...] = _ln(y).reshape(B_, T, D).astype(out_ref.dtype)


def decode(params, tgt_h, memory, mem_mask):
    B, T, _ = tgt_h.shape
    S = memory.shape[1]
    return pl.pallas_call(
        _dec_kernel,
        out_shape=jax.ShapeDtypeStruct((B, T, D), jnp.float32),
        grid_spec=pltpu.PrefetchScalarGridSpec(
            num_scalar_prefetch=0,
            grid=(1,),
            in_specs=[
                pl.BlockSpec((B, S), lambda i: (0, 0)),
                pl.BlockSpec((B, T, D), lambda i: (0, 0, 0)),
                pl.BlockSpec((B, S, D), lambda i: (0, 0, 0)),
                pl.BlockSpec((D, 3 * D), lambda i: (0, 0)),
                pl.BlockSpec((D, D), lambda i: (0, 0)),
                pl.BlockSpec((D, DFF), lambda i: (0, 0)),
                pl.BlockSpec((1, DFF), lambda i: (0, 0)),
                pl.BlockSpec((DFF, D), lambda i: (0, 0)),
                pl.BlockSpec((1, D), lambda i: (0, 0)),
            ],
            out_specs=pl.BlockSpec((B, T, D), lambda i: (0, 0, 0)),
        ),
        compiler_params=pltpu.CompilerParams(
            dimension_semantics=("arbitrary",),
            vmem_limit_bytes=32 * 1024 * 1024),
    )(mem_mask, tgt_h, memory,
      params["dec_wqkv"], params["dec_wo"],
      params["dec_w1"], params["dec_b1"], params["dec_w2"], params["dec_b2"])


# ---------------------------------------------------------------------------
# 3) fc head + argmax:  out_fin = Linear(768, 119547)(out);  trg_new = argmax.
#    Grid = (core, vocab, tokens) with tokens INNERMOST so every bf16 weight
#    tile is DMA'd from HBM exactly once (single-pass weight stream).  The
#    leading size-2 "parallel" axis splits the vocab tiles across the two v7x
#    TensorCores; each core keeps its own running max/argmax in full-size VMEM
#    scratch and emits a per-core candidate, combined in the wrapper.
# ---------------------------------------------------------------------------
def _fc_argmax_kernel(x_ref, w_ref, b_ref, logits_ref, pmax_ref, pidx_ref,
                      mmax, midx, *, n_vh, tv):
    c = pl.program_id(0)
    v = pl.program_id(1)
    m = pl.program_id(2)
    n_m = pl.num_programs(2)
    slot = c * n_m + m                               # per (core, m-tile) scratch slab

    @pl.when(v == 0)
    def _():
        mmax[slot] = jnp.full((mmax.shape[1], mmax.shape[2]), -jnp.inf, jnp.float32)
        midx[slot] = jnp.zeros((midx.shape[1], midx.shape[2]), jnp.int32)

    logits = jnp.dot(x_ref[...], w_ref[...],
                     preferred_element_type=jnp.float32) + b_ref[...]
    logits_ref[...] = logits.astype(logits_ref.dtype)

    # within-tile argmax on base columns (v-invariant iota); scalar vocab
    # offset added only to the (tile_m, 1) winner.
    base_col = lax.broadcasted_iota(jnp.int32, logits.shape, 1)
    tmax = jnp.max(logits, axis=1, keepdims=True)
    local = jnp.min(jnp.where(logits == tmax, base_col, jnp.int32(2**31 - 1)),
                    axis=1, keepdims=True)
    cand = local + (c * n_vh + v) * tv

    prev_max = mmax[slot]
    prev_idx = midx[slot]
    better = tmax > prev_max                         # strict > => first occurrence
    new_idx = jnp.where(better, cand, prev_idx)
    new_max = jnp.where(better, tmax, prev_max)
    midx[slot] = new_idx
    mmax[slot] = new_max

    # publish running candidate; the final (v == last) visit commits the answer
    pmax_ref[0] = new_max
    pidx_ref[0] = new_idx


def fc_argmax(params, h):
    B, T, _ = h.shape
    TM = B * T
    x = h.reshape(TM, D).astype(jnp.bfloat16)        # bf16 activations for the MXU

    # Token tiling (multiple of 16 for bf16 sublane packing; padded rows sliced off)
    tile_m = min(TM_TILE, ((TM + 15) // 16) * 16)
    tm_pad = ((TM + tile_m - 1) // tile_m) * tile_m
    if tm_pad != TM:
        x = jnp.pad(x, ((0, tm_pad - TM), (0, 0)))
    n_m = tm_pad // tile_m
    n_v = VPAD // TV
    n_vh = n_v // NCORE

    logits, pmax, pidx = pl.pallas_call(
        functools.partial(_fc_argmax_kernel, n_vh=n_vh, tv=TV),
        out_shape=(jax.ShapeDtypeStruct((tm_pad, VPAD), LOGITS_DTYPE),
                   jax.ShapeDtypeStruct((NCORE, tm_pad, 1), jnp.float32),
                   jax.ShapeDtypeStruct((NCORE, tm_pad, 1), jnp.int32)),
        grid_spec=pltpu.PrefetchScalarGridSpec(
            num_scalar_prefetch=0,
            grid=(NCORE, n_vh, n_m),                 # tokens innermost -> weights 1-pass
            in_specs=[
                pl.BlockSpec((tile_m, D), lambda c, v, m: (m, 0)),
                pl.BlockSpec((D, TV), lambda c, v, m: (0, c * n_vh + v)),
                pl.BlockSpec((1, TV), lambda c, v, m: (0, c * n_vh + v)),
            ],
            out_specs=[
                pl.BlockSpec((tile_m, TV), lambda c, v, m: (m, c * n_vh + v)),
                pl.BlockSpec((1, tile_m, 1), lambda c, v, m: (c, m, 0)),
                pl.BlockSpec((1, tile_m, 1), lambda c, v, m: (c, m, 0)),
            ],
            scratch_shapes=[pltpu.VMEM((NCORE * n_m, tile_m, 1), jnp.float32),
                            pltpu.VMEM((NCORE * n_m, tile_m, 1), jnp.int32)],
        ),
        compiler_params=pltpu.CompilerParams(
            dimension_semantics=("parallel", "arbitrary", "arbitrary"),
            vmem_limit_bytes=40 * 1024 * 1024),
    )(x, params["fc_w"], params["fc_b"])

    # Padded vocab columns carry a -1e30 bias so they can never win the argmax;
    # padded rows / columns are sliced away here.
    out_fin = logits[:TM, :V].reshape(B, T, V)

    # combine the NCORE per-core candidates; strict > keeps first-occurrence
    # semantics (core 0 owns the lower vocab indices).
    best_max = pmax[0]
    best_idx = pidx[0]
    for cc in range(1, NCORE):
        better = pmax[cc] > best_max
        best_idx = jnp.where(better, pidx[cc], best_idx)
        best_max = jnp.where(better, pmax[cc], best_max)
    trg_new = best_idx[:TM, 0].reshape(B, T)
    return out_fin, trg_new


# ---------------------------------------------------------------------------
# Full forward, mirroring Model.forward
# ---------------------------------------------------------------------------
def model_forward(params, src, tgt, pad_idx=0):
    if src.ndim > 2:
        src = jnp.squeeze(src, -1)
    # padding masks: trivial elementwise compare — no kernel launch needed
    mask = (src != pad_idx).astype(jnp.float32)
    mask2 = (tgt != pad_idx).astype(jnp.float32)

    if src.shape[1] == tgt.shape[1]:
        # merged encode: one pallas_call / one encoder weight stream for src+tgt
        toks = jnp.concatenate([src, tgt], axis=0)
        msks = jnp.concatenate([mask, mask2], axis=0)
        h = encode(params, toks, msks)
        B = src.shape[0]
        enc_output, tgt_h = h[:B], h[B:]
    else:
        enc_output = encode(params, src, mask)       # ['last_hidden_state']
        tgt_h = encode(params, tgt, mask2)           # ['last_hidden_state']

    dec_out = decode(params, tgt_h, enc_output, mask)   # causal tgt mask inside
    out_fin, trg_new = fc_argmax(params, dec_out)
    return trg_new, out_fin


# ---------------------------------------------------------------------------
# Deterministic parameter init
# ---------------------------------------------------------------------------
def init_params(key):
    ks = jax.random.split(key, 12)
    p = {}
    p["emb"] = jax.random.normal(ks[0], (VOCAB_IN, D), jnp.float32) * 0.02
    # encoder / decoder stand-in weights stored in bf16 (MXU-native, half DMA)
    p["enc_w1"] = jax.random.normal(ks[1], (D, DFF), jnp.bfloat16) * 0.02
    p["enc_b1"] = jnp.zeros((1, DFF), jnp.float32)
    p["enc_w2"] = jax.random.normal(ks[2], (DFF, D), jnp.bfloat16) * 0.02
    p["enc_b2"] = jnp.zeros((1, D), jnp.float32)
    p["dec_wqkv"] = jax.random.normal(ks[3], (D, 3 * D), jnp.bfloat16) * 0.02
    p["dec_wo"] = jax.random.normal(ks[4], (D, D), jnp.bfloat16) * 0.02
    p["dec_w1"] = jax.random.normal(ks[5], (D, DFF), jnp.bfloat16) * 0.02
    p["dec_b1"] = jnp.zeros((1, DFF), jnp.float32)
    p["dec_w2"] = jax.random.normal(ks[6], (DFF, D), jnp.bfloat16) * 0.02
    p["dec_b2"] = jnp.zeros((1, D), jnp.float32)
    # fc: Linear(768, 119547).  Weights stored in bf16 (halves the dominant
    # HBM weight stream); vocab axis padded to VPAD with zero weights and a
    # -1e30 bias so padded columns can never win the argmax.
    fc_w = jax.random.normal(ks[7], (D, V), jnp.bfloat16) * 0.02
    fc_w = jnp.pad(fc_w, ((0, 0), (0, VPAD - V)))
    fc_b_real = jax.random.normal(ks[8], (1, V), jnp.float32) * 0.02
    fc_b = jnp.concatenate(
        [fc_b_real, jnp.full((1, VPAD - V), NEG, jnp.float32)], axis=1)
    p["fc_w"] = fc_w
    p["fc_b"] = fc_b
    return p


if __name__ == "__main__":
    key = jax.random.PRNGKey(0)
    k_p, k_src, k_tgt = jax.random.split(key, 3)
    params = init_params(k_p)

    B, S, T = 2, 8, 8
    src = jax.random.randint(k_src, (B, S), 1, VOCAB_IN, dtype=jnp.int32)
    src = src.at[:, -2:].set(0)          # some padding tokens
    tgt = jax.random.randint(k_tgt, (B, T), 1, VOCAB_IN, dtype=jnp.int32)
    tgt = tgt.at[:, -1].set(0)

    trg_new, out_fin = model_forward(params, src, tgt, pad_idx=0)
    jax.block_until_ready((trg_new, out_fin))

    # sanity checks
    assert trg_new.shape == (B, T)
    assert out_fin.shape == (B, T, V)
    assert bool(jnp.all(jnp.isfinite(out_fin.astype(jnp.float32))))
    assert bool(jnp.all((trg_new >= 0) & (trg_new < V)))
    # The kernel's argmax (computed on f32 logits) must attain the row maximum
    # of the returned (bf16) logits — rounding is monotone, so this is exact.
    sel = jnp.take_along_axis(out_fin, trg_new[..., None].astype(jnp.int32),
                              axis=-1)[..., 0]
    row_max = jnp.max(out_fin, axis=-1)
    assert bool(jnp.all(sel == row_max)), "kernel argmax mismatch"

    print("KERNEL_OK")
</pallas_src>

<mosaic_0001>
module attributes {stable_mosaic.version = 11 : i64} {
  func.func @_enc_kernel(%arg0: i32, %arg1: memref<4x8xf32, #tpu.memory_space<vmem>>, %arg2: memref<4x8x768xf32, #tpu.memory_space<vmem>>, %arg3: memref<768x1024xbf16, #tpu.memory_space<vmem>>, %arg4: memref<1x1024xf32, #tpu.memory_space<vmem>>, %arg5: memref<1024x768xbf16, #tpu.memory_space<vmem>>, %arg6: memref<1x768xf32, #tpu.memory_space<vmem>>, %arg7: memref<4x8x768xf32, #tpu.memory_space<vmem>>) attributes {dimension_semantics = [#tpu.dimension_semantics<arbitrary>], iteration_bounds = array<i64: 1>, scalar_prefetch = 0 : i64, scratch_operands = 0 : i64, tpu.core_type = #tpu.core_type<tc>, window_params = [{pipeline_mode = #tpu.pipeline_mode<synchronous>, transform_indices = @transform_0, window_bounds = array<i64: 4, 8>}, {pipeline_mode = #tpu.pipeline_mode<synchronous>, transform_indices = @transform_1, window_bounds = array<i64: 4, 8, 768>}, {pipeline_mode = #tpu.pipeline_mode<synchronous>, transform_indices = @transform_2, window_bounds = array<i64: 768, 1024>}, {pipeline_mode = #tpu.pipeline_mode<synchronous>, transform_indices = @transform_3, window_bounds = array<i64: 1, 1024>}, {pipeline_mode = #tpu.pipeline_mode<synchronous>, transform_indices = @transform_4, window_bounds = array<i64: 1024, 768>}, {pipeline_mode = #tpu.pipeline_mode<synchronous>, transform_indices = @transform_5, window_bounds = array<i64: 1, 768>}, {pipeline_mode = #tpu.pipeline_mode<synchronous>, transform_indices = @transform_6, window_bounds = array<i64: 4, 8, 768>}]} {
    %c0 = arith.constant 0 : index
    %c0_0 = arith.constant 0 : index
    %c0_1 = arith.constant 0 : index
    %0 = vector.load %arg2[%c0, %c0_0, %c0_1] : memref<4x8x768xf32, #tpu.memory_space<vmem>>, vector<4x8x768xf32>
    %c0_2 = arith.constant 0 : index
    %c0_3 = arith.constant 0 : index
    %1 = vector.load %arg1[%c0_2, %c0_3] : memref<4x8xf32, #tpu.memory_space<vmem>>, vector<4x8xf32>
    %2 = vector.shape_cast %1 : vector<4x8xf32> to vector<4x1x8xf32>
    %3 = arith.truncf %0 : vector<4x8x768xf32> to vector<4x8x768xbf16>
    %cst = arith.constant 7.680000e+02 : f32
    %4 = math.sqrt %cst : f32
    %cst_4 = arith.constant 1.000000e+00 : f32
    %5 = arith.divf %cst_4, %4 : f32
    "tpu.trace_start"() <{level = 10 : i32, message = "bqd,bkd->bqk"}> : () -> ()
    %cst_5 = arith.constant dense<0.000000e+00> : vector<4x8x8xf32>
    %6 = tpu.matmul %3, %3, %cst_5 {dimension_numbers = #tpu.dot_dimension_numbers<[2], [2], [1], [1], [0, 0, 0, 1, 1, 1], [0], [0]>} : vector<4x8x768xbf16>, vector<4x8x768xbf16>, vector<4x8x8xf32> -> vector<4x8x8xf32>
    "tpu.trace_stop"() : () -> ()
    %7 = vector.broadcast %5 : f32 to vector<4x8x8xf32>
    %8 = arith.mulf %6, %7 : vector<4x8x8xf32>
    %cst_6 = arith.constant 0.000000e+00 : f32
    %9 = vector.broadcast %cst_6 : f32 to vector<4x1x8xf32>
    %10 = arith.cmpf oeq, %2, %9 : vector<4x1x8xf32>
    %cst_7 = arith.constant -1.000000e+30 : f32
    %cst_8 = arith.constant 0.000000e+00 : f32
    %11 = vector.broadcast %cst_7 : f32 to vector<4x1x8xf32>
    %12 = vector.broadcast %cst_8 : f32 to vector<4x1x8xf32>
    %13 = arith.select %10, %11, %12 : vector<4x1x8xi1>, vector<4x1x8xf32>
    %14 = vector.broadcast %13 : vector<4x1x8xf32> to vector<4x8x8xf32>
    %15 = arith.addf %8, %14 : vector<4x8x8xf32>
    %cst_9 = arith.constant dense<0xFF800000> : vector<4x8xf32>
    %16 = vector.multi_reduction <maximumf>, %15, %cst_9 [2] : vector<4x8x8xf32> to vector<4x8xf32>
    %cst_10 = arith.constant 0xFF800000 : f32
    %17 = vector.broadcast %cst_10 : f32 to vector<4x8xf32>
    %18 = arith.maximumf %17, %16 : vector<4x8xf32>
    %19 = vector.shape_cast %18 : vector<4x8xf32> to vector<4x8x1xf32>
    %20 = vector.broadcast %19 : vector<4x8x1xf32> to vector<4x8x8xf32>
    %21 = arith.subf %15, %20 : vector<4x8x8xf32>
    %22 = math.exp %21 : vector<4x8x8xf32>
    %cst_11 = arith.constant dense<0.000000e+00> : vector<4x8xf32>
    %23 = vector.multi_reduction <add>, %22, %cst_11 [2] : vector<4x8x8xf32> to vector<4x8xf32>
    %24 = vector.shape_cast %23 : vector<4x8xf32> to vector<4x8x1xf32>
    %25 = vector.broadcast %24 : vector<4x8x1xf32> to vector<4x8x8xf32>
    %26 = arith.divf %22, %25 : vector<4x8x8xf32>
    %27 = arith.truncf %26 : vector<4x8x8xf32> to vector<4x8x8xbf16>
    "tpu.trace_start"() <{level = 10 : i32, message = "bqk,bkd->bqd"}> : () -> ()
    %cst_12 = arith.constant dense<0.000000e+00> : vector<4x8x768xf32>
    %28 = tpu.matmul %27, %3, %cst_12 {dimension_numbers = #tpu.dot_dimension_numbers<[2], [1], [1], [2], [0, 0, 0, 1, 1, 2], [0], [0]>} : vector<4x8x8xbf16>, vector<4x8x768xbf16>, vector<4x8x768xf32> -> vector<4x8x768xf32>
    "tpu.trace_stop"() : () -> ()
    %29 = arith.addf %0, %28 : vector<4x8x768xf32>
    %cst_13 = arith.constant dense<0.000000e+00> : vector<4x8xf32>
    %30 = vector.multi_reduction <add>, %29, %cst_13 [2] : vector<4x8x768xf32> to vector<4x8xf32>
    %31 = vector.shape_cast %30 : vector<4x8xf32> to vector<4x8x1xf32>
    %cst_14 = arith.constant 7.680000e+02 : f32
    %32 = vector.broadcast %cst_14 : f32 to vector<4x8x1xf32>
    %33 = arith.divf %31, %32 : vector<4x8x1xf32>
    %34 = vector.broadcast %33 : vector<4x8x1xf32> to vector<4x8x768xf32>
    %35 = arith.subf %29, %34 : vector<4x8x768xf32>
    %36 = arith.mulf %35, %35 : vector<4x8x768xf32>
    %cst_15 = arith.constant dense<0.000000e+00> : vector<4x8xf32>
    %37 = vector.multi_reduction <add>, %36, %cst_15 [2] : vector<4x8x768xf32> to vector<4x8xf32>
    %38 = vector.shape_cast %37 : vector<4x8xf32> to vector<4x8x1xf32>
    %cst_16 = arith.constant 7.680000e+02 : f32
    %39 = vector.broadcast %cst_16 : f32 to vector<4x8x1xf32>
    %40 = arith.divf %38, %39 : vector<4x8x1xf32>
    %41 = vector.broadcast %33 : vector<4x8x1xf32> to vector<4x8x768xf32>
    %42 = arith.subf %29, %41 : vector<4x8x768xf32>
    %cst_17 = arith.constant 9.99999974E-6 : f32
    %43 = vector.broadcast %cst_17 : f32 to vector<4x8x1xf32>
    %44 = arith.addf %40, %43 : vector<4x8x1xf32>
    %45 = math.rsqrt %44 : vector<4x8x1xf32>
    %46 = vector.broadcast %45 : vector<4x8x1xf32> to vector<4x8x768xf32>
    %47 = arith.mulf %42, %46 : vector<4x8x768xf32>
    %48 = vector.shape_cast %47 : vector<4x8x768xf32> to vector<32x768xf32>
    %49 = arith.truncf %48 : vector<32x768xf32> to vector<32x768xbf16>
    %c0_18 = arith.constant 0 : index
    %c0_19 = arith.constant 0 : index
    %50 = vector.load %arg3[%c0_18, %c0_19] : memref<768x1024xbf16, #tpu.memory_space<vmem>>, vector<768x1024xbf16>
    %cst_20 = arith.constant dense<0.000000e+00> : vector<32x1024xf32>
    %51 = tpu.matmul %49, %50, %cst_20 {dimension_numbers = #tpu.dot_dimension_numbers<[1], [0], [0], [1], [0, 0, 1, 1], [], []>} : vector<32x768xbf16>, vector<768x1024xbf16>, vector<32x1024xf32> -> vector<32x1024xf32>
    %c0_21 = arith.constant 0 : index
    %c0_22 = arith.constant 0 : index
    %52 = vector.load %arg4[%c0_21, %c0_22] : memref<1x1024xf32, #tpu.memory_space<vmem>>, vector<1x1024xf32>
    %53 = vector.broadcast %52 : vector<1x1024xf32> to vector<32x1024xf32>
    %54 = arith.addf %51, %53 : vector<32x1024xf32>
    %cst_23 = arith.constant 0.000000e+00 : f32
    %55 = vector.broadcast %cst_23 : f32 to vector<32x1024xf32>
    %56 = arith.maximumf %54, %55 : vector<32x1024xf32>
    %57 = arith.truncf %56 : vector<32x1024xf32> to vector<32x1024xbf16>
    %c0_24 = arith.constant 0 : index
    %c0_25 = arith.constant 0 : index
    %58 = vector.load %arg5[%c0_24, %c0_25] : memref<1024x768xbf16, #tpu.memory_space<vmem>>, vector<1024x768xbf16>
    %cst_26 = arith.constant dense<0.000000e+00> : vector<32x768xf32>
    %59 = tpu.matmul %57, %58, %cst_26 {dimension_numbers = #tpu.dot_dimension_numbers<[1], [0], [0], [1], [0, 0, 1, 1], [], []>} : vector<32x1024xbf16>, vector<1024x768xbf16>, vector<32x768xf32> -> vector<32x768xf32>
    %60 = arith.addf %48, %59 : vector<32x768xf32>
    %c0_27 = arith.constant 0 : index
    %c0_28 = arith.constant 0 : index
    %61 = vector.load %arg6[%c0_27, %c0_28] : memref<1x768xf32, #tpu.memory_space<vmem>>, vector<1x768xf32>
    %62 = vector.broadcast %61 : vector<1x768xf32> to vector<32x768xf32>
    %63 = arith.addf %60, %62 : vector<32x768xf32>
    %cst_29 = arith.constant dense<0.000000e+00> : vector<32xf32>
    %64 = vector.multi_reduction <add>, %63, %cst_29 [1] : vector<32x768xf32> to vector<32xf32>
    %65 = vector.shape_cast %64 : vector<32xf32> to vector<32x1xf32>
    %cst_30 = arith.constant 7.680000e+02 : f32
    %66 = vector.broadcast %cst_30 : f32 to vector<32x1xf32>
    %67 = arith.divf %65, %66 : vector<32x1xf32>
    %68 = vector.broadcast %67 : vector<32x1xf32> to vector<32x768xf32>
    %69 = arith.subf %63, %68 : vector<32x768xf32>
    %70 = arith.mulf %69, %69 : vector<32x768xf32>
    %cst_31 = arith.constant dense<0.000000e+00> : vector<32xf32>
    %71 = vector.multi_reduction <add>, %70, %cst_31 [1] : vector<32x768xf32> to vector<32xf32>
    %72 = vector.shape_cast %71 : vector<32xf32> to vector<32x1xf32>
    %cst_32 = arith.constant 7.680000e+02 : f32
    %73 = vector.broadcast %cst_32 : f32 to vector<32x1xf32>
    %74 = arith.divf %72, %73 : vector<32x1xf32>
    %75 = vector.broadcast %67 : vector<32x1xf32> to vector<32x768xf32>
    %76 = arith.subf %63, %75 : vector<32x768xf32>
    %cst_33 = arith.constant 9.99999974E-6 : f32
    %77 = vector.broadcast %cst_33 : f32 to vector<32x1xf32>
    %78 = arith.addf %74, %77 : vector<32x1xf32>
    %79 = math.rsqrt %78 : vector<32x1xf32>
    %80 = vector.broadcast %79 : vector<32x1xf32> to vector<32x768xf32>
    %81 = arith.mulf %76, %80 : vector<32x768xf32>
    %82 = vector.shape_cast %81 : vector<32x768xf32> to vector<4x8x768xf32>
    %c0_34 = arith.constant 0 : index
    %c0_35 = arith.constant 0 : index
    %c0_36 = arith.constant 0 : index
    %83 = vector.load %arg7[%c0_34, %c0_35, %c0_36] : memref<4x8x768xf32, #tpu.memory_space<vmem>>, vector<4x8x768xf32>
    tpu.vector_store %arg7[%c0_34, %c0_35, %c0_36], %82 {strides = array<i32>} : memref<4x8x768xf32, #tpu.memory_space<vmem>>, vector<4x8x768xf32>,
    return
  }
  func.func @transform_0(%arg0: i32) -> (i32, i32) {
    %c0_i32 = arith.constant 0 : i32
    %c0_i32_0 = arith.constant 0 : i32
    %c0_i32_1 = arith.constant 0 : i32
    return %c0_i32, %c0_i32_0 : i32, i32
  }
  func.func @transform_1(%arg0: i32) -> (i32, i32, i32) {
    %c0_i32 = arith.constant 0 : i32
    %c0_i32_0 = arith.constant 0 : i32
    %c0_i32_1 = arith.constant 0 : i32
    %c0_i32_2 = arith.constant 0 : i32
    return %c0_i32, %c0_i32_0, %c0_i32_1 : i32, i32, i32
  }
  func.func @transform_2(%arg0: i32) -> (i32, i32) {
    %c0_i32 = arith.constant 0 : i32
    %c0_i32_0 = arith.constant 0 : i32
    %c0_i32_1 = arith.constant 0 : i32
    return %c0_i32, %c0_i32_0 : i32, i32
  }
  func.func @transform_3(%arg0: i32) -> (i32, i32) {
    %c0_i32 = arith.constant 0 : i32
    %c0_i32_0 = arith.constant 0 : i32
    %c0_i32_1 = arith.constant 0 : i32
    return %c0_i32, %c0_i32_0 : i32, i32
  }
  func.func @transform_4(%arg0: i32) -> (i32, i32) {
    %c0_i32 = arith.constant 0 : i32
    %c0_i32_0 = arith.constant 0 : i32
    %c0_i32_1 = arith.constant 0 : i32
    return %c0_i32, %c0_i32_0 : i32, i32
  }
  func.func @transform_5(%arg0: i32) -> (i32, i32) {
    %c0_i32 = arith.constant 0 : i32
    %c0_i32_0 = arith.constant 0 : i32
    %c0_i32_1 = arith.constant 0 : i32
    return %c0_i32, %c0_i32_0 : i32, i32
  }
  func.func @transform_6(%arg0: i32) -> (i32, i32, i32) {
    %c0_i32 = arith.constant 0 : i32
    %c0_i32_0 = arith.constant 0 : i32
    %c0_i32_1 = arith.constant 0 : i32
    %c0_i32_2 = arith.constant 0 : i32
    return %c0_i32, %c0_i32_0, %c0_i32_1 : i32, i32, i32
  }
}

</mosaic_0001>

<bundles_post_ra>
// kernel: tpu_custom_call.1
= control target key start
LH: loop header
LB: loop body
LE: loop exit
PB: predicated region body
PF: predicated region fallthrough
CT: control target
= control target key end

     0   :  { %11 = vsyncpa [#allocation3], 0  ;;  %s10662_s0 = inlined_call_operand.hbm [shape: f32[4,8], index: 0, kind: input, shape index: {}]   ;;  %s10663_s1 = inlined_call_operand.hbm [shape: f32[4,8,768], index: 1, kind: input, shape index: {}]   ;;  %s10664_s2 = inlined_call_operand.hbm [shape: bf16[768,1024], index: 2, kind: input, shape index: {}]   ;;  %s10665_s3 = inlined_call_operand.hbm [shape: f32[1,1024], index: 3, kind: input, shape index: {}]   ;;  %s10666_s4 = inlined_call_operand.hbm [shape: bf16[1024,768], index: 4, kind: input, shape index: {}]   ;;  %s10667_s5 = inlined_call_operand.hbm [shape: f32[1,768], index: 5, kind: input, shape index: {}]   ;;  %s10668_s6 = inlined_call_operand.hbm [shape: f32[4,8,768], index: 6, kind: output, shape index: {}]  }
   0x1   :  { %12 = vsyncpa [#allocation6], 0 }
   0x2   :  { %13 = vsyncpa [#allocation9], 0 }
   0x3   :  { %14 = vsyncpa [#allocation12], 0 }
   0x4   :  { %15 = vsyncpa [#allocation4], 0  ;;  %s9550_s21 = smov [#allocation5]   ;;  %s9386_s25 = scalar_lea.hbm %s10663_s1, 3072 }
   0x5   :  { %s31_s22 = sshll.u32 %s9550_s21, 4  ;;  %p9387_p0 = scmp.ne.s32.totalorder %s10663_s1, %s9386_s25  ;;  %s32_s22 = int_to_ptr.vmem [resolvable:$true] %s31_s22 }
   0x6   :  { %p9390_p1 = scmp.lt.u32.totalorder %s9386_s25, %s10663_s1 }
   0x8   :  { %p9392_p2 = pnand %p9390_p1, %p9387_p0 }
   0xa   :  { %9395 = shalt.err (!%p9392_p2)
}
   0xb   :  { %s9396_s30 = scalar_lea.vmem %s32_s22, 3072  ;;  %p9401_p4 = scmp.lt.s32.totalorder %s32_s22, %s32_s22 }
   0xc   :  { %p9397_p3 = scmp.ne.s32.totalorder %s32_s22, %s9396_s30  ;;  %p9402_p5 = scmp.lt.s32.totalorder %s9396_s30, %s9396_s30 }
   0xe   :  { %p9403_p6 = por %p9402_p5, %p9401_p4 }
  0x10   :  { %p9404_p7 = pnand %p9403_p6, %p9397_p3 }
  0x12   :  { %9407 = shalt.err (!%p9404_p7)
}
  0x13   :  { %s9551_s7 = smov 768   ;;  %s9552_s8 = smov 48  }
  0x14   :  { %37 = dma.hbm_to_vmem [thread:$0]  %s10663_s1, 3072, %s32_s22, [#allocation6], %s9551_s7, %s9551_s7, %s9552_s8  }
  0x15   :  { %s9553_s11 = smov [#allocation8]   ;;  %s9554_s13 = smov [#allocation2]  }
  0x16   :  { %s56_s12 = sshll.u32 %s9553_s11, 4  ;;  %s22_s14 = sshll.u32 %s9554_s13, 4  ;;  %s57_s12 = int_to_ptr.vmem [resolvable:$true] %s56_s12  ;;  %s23_s14 = int_to_ptr.vmem [resolvable:$true] %s22_s14 }
  0x17   :  { %s9408_s17 = scalar_lea.hbm %s10665_s3, 128 }
  0x18   :  { %p9409_p8 = scmp.ne.s32.totalorder %s10665_s3, %s9408_s17  ;;  %p9412_p9 = scmp.lt.u32.totalorder %s9408_s17, %s10665_s3 }
  0x1a   :  { %p9414_p10 = pnand %p9412_p9, %p9409_p8 }
  0x1c   :  { %9417 = shalt.err (!%p9414_p10)
}
  0x1d   :  { %s9418_s1 = scalar_lea.vmem %s57_s12, 128  ;;  %p9423_p12 = scmp.lt.s32.totalorder %s57_s12, %s57_s12 }
  0x1e   :  { %p9419_p11 = scmp.ne.s32.totalorder %s57_s12, %s9418_s1  ;;  %p9424_p13 = scmp.lt.s32.totalorder %s9418_s1, %s9418_s1 }
  0x20   :  { %p9425_p0 = por %p9424_p13, %p9423_p12 }
  0x22   :  { %p9426_p1 = pnand %p9425_p0, %p9419_p11 }
  0x24   :  { %9429 = shalt.err (!%p9426_p1)
}
  0x25   :  { %59 = dma.hbm_to_vmem [thread:$0]  %s10665_s3, 128, %s57_s12, [#allocation9]  }
  0x26   :  { %s9430_s26 = scalar_lea.hbm %s10662_s0, 64 }
  0x27   :  { %p9431_p2 = scmp.ne.s32.totalorder %s10662_s0, %s9430_s26  ;;  %p9434_p3 = scmp.lt.u32.totalorder %s9430_s26, %s10662_s0 }
  0x29   :  { %p9436_p4 = pnand %p9434_p3, %p9431_p2 }
  0x2b   :  { %9439 = shalt.err (!%p9436_p4)
}
  0x2c   :  { %s9440_s9 = scalar_lea.vmem %s23_s14, 64  ;;  %p9445_p6 = scmp.lt.s32.totalorder %s23_s14, %s23_s14 }
  0x2d   :  { %p9441_p5 = scmp.ne.s32.totalorder %s23_s14, %s9440_s9  ;;  %p9446_p7 = scmp.lt.s32.totalorder %s9440_s9, %s9440_s9 }
  0x2f   :  { %p9447_p8 = por %p9446_p7, %p9445_p6 }
  0x31   :  { %p9448_p9 = pnand %p9447_p8, %p9441_p5 }
  0x33   :  { %9451 = shalt.err (!%p9448_p9)
}
  0x34   :  { %25 = dma.hbm_to_vmem [thread:$0]  %s10662_s0, 64, %s23_s14, [#allocation3]  }
  0x35   :  { %s9555_s11 = smov [#allocation7]   ;;  %s9452_s16 = scalar_lea.hbm %s10664_s2, 49152 }
  0x36   :  { %s43_s12 = sshll.u32 %s9555_s11, 4  ;;  %p9453_p10 = scmp.ne.s32.totalorder %s10664_s2, %s9452_s16  ;;  %s44_s12 = int_to_ptr.vmem [resolvable:$true] %s43_s12 }
  0x37   :  { %p9456_p11 = scmp.lt.u32.totalorder %s9452_s16, %s10664_s2 }
  0x39   :  { %p9458_p12 = pnand %p9456_p11, %p9453_p10 }
  0x3b   :  { %9461 = shalt.err (!%p9458_p12)
}
  0x3c   :  { %s9462_s21 = scalar_lea.vmem %s44_s12, 49152  ;;  %p9467_p0 = scmp.lt.s32.totalorder %s44_s12, %s44_s12 }
  0x3d   :  { %p9463_p13 = scmp.ne.s32.totalorder %s44_s12, %s9462_s21  ;;  %p9468_p1 = scmp.lt.s32.totalorder %s9462_s21, %s9462_s21 }
  0x3f   :  { %p9469_p2 = por %p9468_p1, %p9467_p0 }
  0x41   :  { %p9470_p3 = pnand %p9469_p2, %p9463_p13 }
  0x43   :  { %9473 = shalt.err (!%p9470_p3)
}
  0x44   :  { %s9556_s0 = smov 512   ;;  %s9557_s14 = smov 32  }
  0x45   :  { %49 = dma.hbm_to_vmem [thread:$0]  %s10664_s2, 49152, %s44_s12, [#allocation6], %s9556_s0, %s9556_s0, %s9557_s14  }
  0x46   :  { %s9558_s23 = smov [#allocation10]   ;;  %s9474_s27 = scalar_lea.hbm %s10666_s4, 49152 }
  0x47   :  { %s65_s24 = sshll.u32 %s9558_s23, 4  ;;  %p9475_p4 = scmp.ne.s32.totalorder %s10666_s4, %s9474_s27  ;;  %s66_s24 = int_to_ptr.vmem [resolvable:$true] %s65_s24 }
  0x48   :  { %p9478_p5 = scmp.lt.u32.totalorder %s9474_s27, %s10666_s4 }
  0x4a   :  { %p9480_p6 = pnand %p9478_p5, %p9475_p4 }
  0x4c   :  { %9483 = shalt.err (!%p9480_p6)
}
  0x4d   :  { %s9484_s3 = scalar_lea.vmem %s66_s24, 49152  ;;  %p9489_p8 = scmp.lt.s32.totalorder %s66_s24, %s66_s24 }
  0x4e   :  { %p9485_p7 = scmp.ne.s32.totalorder %s66_s24, %s9484_s3  ;;  %p9490_p9 = scmp.lt.s32.totalorder %s9484_s3, %s9484_s3 }
  0x50   :  { %p9491_p10 = por %p9490_p9, %p9489_p8 }
  0x52   :  { %p9492_p11 = pnand %p9491_p10, %p9485_p7 }
  0x54   :  { %9495 = shalt.err (!%p9492_p11)
}
  0x55   :  { %s9559_s2 = smov 384   ;;  %s9560_s10 = smov 24  }
  0x56   :  { %71 = dma.hbm_to_vmem [thread:$0]  %s10666_s4, 49152, %s66_s24, [#allocation9], %s9559_s2, %s9559_s2, %s9560_s10  }
  0x57   :  { %s9561_s13 = smov [#allocation11]   ;;  %s9496_s18 = scalar_lea.hbm %s10667_s5, 96 }
  0x58   :  { %s78_s15 = sshll.u32 %s9561_s13, 4  ;;  %p9497_p12 = scmp.ne.s32.totalorder %s10667_s5, %s9496_s18  ;;  %s79_s15 = int_to_ptr.vmem [resolvable:$true] %s78_s15 }
  0x59   :  { %p9500_p13 = scmp.lt.u32.totalorder %s9496_s18, %s10667_s5 }
  0x5b   :  { %p9502_p0 = pnand %p9500_p13, %p9497_p12 }
  0x5d   :  { %9505 = shalt.err (!%p9502_p0)
}
  0x5e   :  { %s9506_s14 = scalar_lea.vmem %s79_s15, 96  ;;  %p9511_p2 = scmp.lt.s32.totalorder %s79_s15, %s79_s15 }
  0x5f   :  { %p9507_p1 = scmp.ne.s32.totalorder %s79_s15, %s9506_s14  ;;  %p9512_p3 = scmp.lt.s32.totalorder %s9506_s14, %s9506_s14 }
  0x61   :  { %p9513_p4 = por %p9512_p3, %p9511_p2 }
  0x63   :  { %p9514_p5 = pnand %p9513_p4, %p9507_p1 }
  0x65   :  { %9517 = shalt.err (!%p9514_p5)
}
  0x66   :  { %81 = dma.hbm_to_vmem [thread:$0]  %s10667_s5, 96, %s79_s15, [#allocation12]  }
  0x67   :  { %9540 = dma.done.wait [#allocation3], 64  }
  0x68   :  { %9541 = vsyncadd [#allocation3], 4294967232 }
  0x69   :  { %9542 = dma.done.wait [#allocation6], 52224  }
  0x6a   :  { %9543 = vsyncadd [#allocation6], 4294915072 }
  0x6b   :  { %9544 = dma.done.wait [#allocation9], 49280  }
  0x6c   :  { %9545 = vsyncadd [#allocation9], 4294918016 }
  0x6d   :  { %9546 = dma.done.wait [#allocation12], 96  }
  0x6e   :  { %9547 = vsyncadd [#allocation12], 4294967200  ;;  %v102_v0 = vld [vmem:[#allocation5 + $0x8] sm:$0xff]  ;;  %v108_v1 = vld [vmem:[#allocation5 + $0x38] sm:$0xff]  ;;  %v9562_v48 = vmov 1966171168   ;;  %v138_v50 = vlaneseq }
  0x6f   :  { %v101_v2 = vld [vmem:[#allocation5] sm:$0xff]  ;;  %v9676_v3 = vpack.c.bf16 %v102_v0, %v102_v0  ;;  %v9678_v4 = vpack.c.bf16 %v108_v1, %v108_v1  ;;  %v107_v6 = vld [vmem:[#allocation5 + $0x30] sm:$0xff]  ;;  %v104_v7 = vld [vmem:[#allocation5 + $0x18] sm:$0xff]  ;;  %v136_v49 = vunpack.c.l.s4 %v9562_v48  ;;  %v9563_v59 = vmov 0.0   ;;  %s9565_s5 = smov [#allocation13]  }
  0x70   :  { %v9680_v5 = vpack.c.bf16 %v101_v2, %v101_v2  ;;  %v9682_v8 = vpack.c.bf16 %v107_v6, %v107_v6  ;;  %v9684_v9 = vpack.c.bf16 %v104_v7, %v104_v7  ;;  %v110_v10 = vld [vmem:[#allocation5 + $0x48] sm:$0xff]  ;;  %v103_v12 = vld [vmem:[#allocation5 + $0x10] sm:$0xff]  ;;  %v109_v13 = vld [vmem:[#allocation5 + $0x40] sm:$0xff]  ;;  %v9772_v52 = vshrl.u32 %v138_v50, 7  ;;  %s7729_s22 = sshll.u32 %s9565_s5, 4  ;;  %s7730_s22 = int_to_ptr.vmem [resolvable:$true] %s7729_s22 }
  0x71   :  { %179 = vmatprep.subr.bf16.mxu0 %v9676_v3  ;;  %299 = vmatprep.subr.bf16.mxu1 %v9678_v4  ;;  %v9688_v11 = vpack.c.bf16 %v110_v10, %v110_v10  ;;  %v106_v14 = vld [vmem:[#allocation5 + $0x28] sm:$0xff]  ;;  %v112_v15 = vld [vmem:[#allocation5 + $0x58] sm:$0xff]  ;;  %v9696_v16 = vpack.c.bf16 %v103_v12, %v103_v12  ;;  %v9698_v17 = vpack.c.bf16 %v109_v13, %v109_v13  ;;  %v105_v20 = vld [vmem:[#allocation5 + $0x20] sm:$0xff]  ;;  %v137_v51 = vunpack.c.0.s8 %v136_v49  ;;  %s9518_s23 = scalar_lea.vmem %s7730_s22, 3072  ;;  %p9523_p7 = scmp.lt.s32.totalorder %s7730_s22, %s7730_s22 }
  0x72   :  { %180 = vmatpush1.bf16.xpose.msra.mxu0 %v9680_v5  ;;  %300 = vmatpush1.bf16.xpose.msra.mxu1 %v9682_v8  ;;  %v9700_v18 = vpack.c.bf16 %v106_v14, %v106_v14  ;;  %v9702_v19 = vpack.c.bf16 %v112_v15, %v112_v15  ;;  %v111_v21 = vld [vmem:[#allocation5 + $0x50] sm:$0xff]  ;;  %v114_v22 = vld [vmem:[#allocation5 + $0x68] sm:$0xff]  ;;  %v120_v23 = vld [vmem:[#allocation5 + $0x98] sm:$0xff]  ;;  %v9712_v24 = vpack.c.bf16 %v105_v20, %v105_v20  ;;  %v9776_v58 = vsub.s32 0, %v9772_v52  ;;  %p9519_p6 = scmp.ne.s32.totalorder %s7730_s22, %s9518_s23  ;;  %p9524_p8 = scmp.lt.s32.totalorder %s9518_s23, %s9518_s23 }
  0x73   :  { %211 = vmatprep.mubr.bf16.mxu0 %v9676_v3  ;;  %331 = vmatprep.mubr.bf16.mxu1 %v9678_v4  ;;  %v9714_v25 = vpack.c.bf16 %v111_v21, %v111_v21  ;;  %v9716_v26 = vpack.c.bf16 %v114_v22, %v114_v22  ;;  %v9718_v27 = vpack.c.bf16 %v120_v23, %v120_v23  ;;  %v113_v28 = vld [vmem:[#allocation5 + $0x60] sm:$0xff]  ;;  %v119_v29 = vld [vmem:[#allocation5 + $0x90] sm:$0xff]  ;;  %v116_v30 = vld [vmem:[#allocation5 + $0x78] sm:$0xff]  ;;  %vm699_vm2 = vcmask 64512  }
  0x74   :  { %219 = vmatprep.subr.bf16.mxu0 %v9684_v9  ;;  %339 = vmatprep.subr.bf16.mxu1 %v9688_v11  ;;  %v122_v31 = vld [vmem:[#allocation5 + $0xa8] sm:$0xff]  ;;  %v9728_v32 = vpack.c.bf16 %v113_v28, %v113_v28  ;;  %v9730_v33 = vpack.c.bf16 %v119_v29, %v119_v29  ;;  %v9732_v34 = vpack.c.bf16 %v116_v30, %v116_v30  ;;  %v115_v36 = vld [vmem:[#allocation5 + $0x70] sm:$0xff]  ;;  %v121_v37 = vld [vmem:[#allocation5 + $0xa0] sm:$0xff]  ;;  %vm751_vm5 = vcmask 1043456   ;;  %p9525_p9 = por %p9524_p8, %p9523_p7 }
  0x75   :  { %v9734_v35 = vpack.c.bf16 %v122_v31, %v122_v31  ;;  %v118_v38 = vld [vmem:[#allocation5 + $0x88] sm:$0xff]  ;;  %v124_v39 = vld [vmem:[#allocation5 + $0xb8] sm:$0xff]  ;;  %v9744_v40 = vpack.c.bf16 %v115_v36, %v115_v36  ;;  %v9746_v41 = vpack.c.bf16 %v121_v37, %v121_v37  ;;  %v117_v44 = vld [vmem:[#allocation5 + $0x80] sm:$0xff]  ;;  %v140_v54 = vsub.s32 %v137_v51, %v9772_v52 }
  0x76   :  { %v9748_v42 = vpack.c.bf16 %v118_v38, %v118_v38  ;;  %v9750_v43 = vpack.c.bf16 %v124_v39, %v124_v39  ;;  %v123_v45 = vld [vmem:[#allocation5 + $0xb0] sm:$0xff]  ;;  %v9760_v46 = vpack.c.bf16 %v117_v44, %v117_v44  ;;  %v7744_v53 = vld.sshfl [vmem:[#allocation2] sm:$0x33 pattern:$0x75316420]  ;;  %p9526_p10 = pnand %p9525_p9, %p9519_p6 }
  0x77   :  { %v9762_v47 = vpack.c.bf16 %v123_v45, %v123_v45  ;;  %v134_v55 = vcombine.high %v7744_v53, %v7744_v53  ;;  %v141_v56 = vrot.slane %v7744_v53, %v140_v54 }
  0x79   :  { %212 = vmatmul.mubr.bf16.vlgmr.msra.gmra.mrb[0].mxu0 %v9680_v5  ;;  %332 = vmatmul.mubr.bf16.vlgmr.msra.gmra.mrb[0].mxu1 %v9682_v8  ;;  %v148_v57 = vrot.slane %v134_v55, %v140_v54  ;;  %vm663_vm0 = vcmp.eq.f32.partialorder %v141_v56, 0.0  ;;  %v149_v28 = vcombine.high %v141_v56, %v141_v56 }
  0x7a   :  { %220 = vmatpush1.bf16.xpose.msra.mxu0 %v9696_v16  ;;  %340 = vmatpush1.bf16.xpose.msra.mxu1 %v9698_v17  ;;  %v667_v60 = vsel %vm663_vm0, -1e+30, %v9563_v59 }
  0x7b   :  { %251 = vmatprep.mubr.bf16.mxu0 %v9684_v9  ;;  %371 = vmatprep.mubr.bf16.mxu1 %v9688_v11  ;;  %vm664_vm1 = vcmp.eq.f32.partialorder %v148_v57, 0.0  ;;  %v678_v62 = vrot.slane %v667_v60, %v9776_v58  ;;  %v150_v29 = vcombine.high %v148_v57, %v148_v57  ;;  %vm665_vm3 = vcmp.eq.f32.partialorder %v149_v28, 0.0 }
  0x7c   :  { %259 = vmatprep.subr.bf16.mxu0 %v9700_v18  ;;  %379 = vmatprep.subr.bf16.mxu1 %v9702_v19  ;;  %v668_v61 = vsel %vm664_vm1, -1e+30, %v9563_v59  ;;  %v669_v30 = vsel %vm665_vm3, -1e+30, %v9563_v59  ;;  %v9564_v28 = vmov 0  }
  0x7d   :  { %v682_v10 = vrot.slane %v668_v61, %v9776_v58  ;;  %vm666_vm4 = vcmp.eq.f32.partialorder %v150_v29, 0.0  ;;  %v686_v36 = vrot.slane %v669_v30, %v9776_v58 }
  0x7e   :  { %v670_v31 = vsel %vm666_vm4, -1e+30, %v9563_v59 }
  0x7f   :  { %v690_v37 = vrot.slane %v670_v31, %v9776_v58 }
  0x85   :  { %252 = vmatmul.mubr.bf16.vlgmr.msra.gmra.mrb[0].mxu0 %v9696_v16  ;;  %372 = vmatmul.mubr.bf16.vlgmr.msra.gmra.mrb[0].mxu1 %v9698_v17 }
  0x86   :  { %260 = vmatpush1.bf16.xpose.msra.mxu0 %v9712_v24  ;;  %380 = vmatpush1.bf16.xpose.msra.mxu1 %v9714_v25 }
  0x87   :  { %291 = vmatprep.mubr.bf16.mxu0 %v9700_v18  ;;  %411 = vmatprep.mubr.bf16.mxu1 %v9702_v19 }
  0x88   :  { %419 = vmatprep.subr.bf16.mxu0 %v9716_v26  ;;  %539 = vmatprep.subr.bf16.mxu1 %v9718_v27 }
  0x91   :  { %292 = vmatmul.mubr.bf16.vlgmr.msra.gmra.mrb[0].mxu0 %v9712_v24  ;;  %412 = vmatmul.mubr.bf16.vlgmr.msra.gmra.mrb[0].mxu1 %v9714_v25 }
  0x92   :  { %420 = vmatpush1.bf16.xpose.msra.mxu0 %v9728_v32  ;;  %540 = vmatpush1.bf16.xpose.msra.mxu1 %v9730_v33 }
  0x93   :  { %451 = vmatprep.mubr.bf16.mxu0 %v9716_v26  ;;  %571 = vmatprep.mubr.bf16.mxu1 %v9718_v27 }
  0x94   :  { %459 = vmatprep.subr.bf16.mxu0 %v9732_v34  ;;  %579 = vmatprep.subr.bf16.mxu1 %v9734_v35 }
  0x99   :  { %452 = vmatmul.mubr.bf16.vlgmr.msra.gmra.mrb[4].mxu0 %v9728_v32  ;;  %572 = vmatmul.mubr.bf16.vlgmr.msra.gmra.mrb[4].mxu1 %v9730_v33 }
  0x9a   :  { %460 = vmatpush1.bf16.xpose.msra.mxu0 %v9744_v40  ;;  %580 = vmatpush1.bf16.xpose.msra.mxu1 %v9746_v41 }
  0x9b   :  { %491 = vmatprep.mubr.bf16.mxu0 %v9732_v34  ;;  %611 = vmatprep.mubr.bf16.mxu1 %v9734_v35 }
  0x9c   :  { %499 = vmatprep.subr.bf16.mxu0 %v9748_v42  ;;  %619 = vmatprep.subr.bf16.mxu1 %v9750_v43 }
  0xa5   :  { %492 = vmatmul.mubr.bf16.vlgmr.msra.gmra.mrb[4].mxu0 %v9744_v40  ;;  %612 = vmatmul.mubr.bf16.vlgmr.msra.gmra.mrb[4].mxu1 %v9746_v41 }
  0xa6   :  { %500 = vmatpush1.bf16.xpose.msra.mxu0 %v9760_v46  ;;  %620 = vmatpush1.bf16.xpose.msra.mxu1 %v9762_v47 }
  0xa7   :  { %531 = vmatprep.mubr.bf16.mxu0 %v9748_v42  ;;  %651 = vmatprep.mubr.bf16.mxu1 %v9750_v43 }
  0xa8   :  { %7745 = vmatprep.subr.msk.bf16.mxu0 %vm751_vm5, %v9676_v3  ;;  %7747 = vmatprep.subr.msk.bf16.mxu1 %vm751_vm5, %v9684_v9 }
  0xb1   :  { %532 = vmatmul.mubr.bf16.vlgmr.msra.gmra.mrb[4].mxu0 %v9760_v46  ;;  %652 = vmatmul.mubr.bf16.vlgmr.msra.gmra.mrb[4].mxu1 %v9762_v47 }
  0xb2   :  { %802 = vmatprep.mubr.bf16.mxu0 %v9564_v28  ;;  %843 = vmatprep.mubr.bf16.mxu1 %v9564_v28 }
 0x164   :  { %v293_v63 = vpop.f32.mrb[0].mxu0  ;;  %v413_v0 = vpop.f32.mrb[0].mxu1 }
 0x165   :  { %v659_v1 = vmul.f32 0.03608439, %v293_v63  ;;  %v660_v2 = vmul.f32 0.03608439, %v413_v0  ;;  %v295_v6 = vpop.f32.mrb[1].mxu0  ;;  %v415_v7 = vpop.f32.mrb[1].mxu1 }
 0x166   :  { %v296_v12 = vpop.f32.mrb[2].mxu0  ;;  %v416_v13 = vpop.f32.mrb[2].mxu1 }
 0x167   :  { %v297_v14 = vpop.f32.mrb[3].mxu0  ;;  %v417_v15 = vpop.f32.mrb[3].mxu1  ;;  %v695_v20 = vadd.f32 %v678_v62, %v659_v1  ;;  %v696_v22 = vadd.f32 %v682_v10, %v660_v2 }
 0x169   :  { %v700_v21 = vsel %vm699_vm2, %v695_v20, -inf  ;;  %v703_v23 = vsel %vm699_vm2, %v696_v22, -inf }
 0x16a   :  { %701 = vmax.xlane.f32.xlu0 %v700_v21 }
 0x16e   :  { %704 = vmax.xlane.f32.xlu0 %v703_v23  ;;  %v759_v23 = vsel %vm751_vm5, %v9696_v16, 0 }
 0x16f   :  { %812 = vmatpush1.bf16.msra.mxu1 %v759_v23 }
 0x170   :  { %7751 = vmatprep.subr.msk.bf16.mxu1 %vm751_vm5, %v9678_v4 }
 0x184   :  { %v533_v38 = vpop.f32.mrb[4].mxu0  ;;  %v653_v39 = vpop.f32.mrb[4].mxu1 }
 0x185   :  { %v661_v44 = vmul.f32 0.03608439, %v533_v38  ;;  %v535_v45 = vpop.f32.mrb[5].mxu0  ;;  %v662_v48 = vmul.f32 0.03608439, %v653_v39  ;;  %v655_v49 = vpop.f32.mrb[5].mxu1 }
 0x186   :  { %v536_v50 = vpop.f32.mrb[6].mxu0  ;;  %v656_v51 = vpop.f32.mrb[6].mxu1  ;;  %v1185_v45 = vsel %vm751_vm5, %v9730_v33, 0  ;;  %v1191_v33 = vsel %vm751_vm5, %v9746_v41, 0  ;;  %v9361_v41 = vld [vmem:[#allocation5] sm:$0xff] }
 0x187   :  { %v537_v53 = vpop.f32.mrb[7].mxu0  ;;  %v697_v54 = vadd.f32 %v686_v36, %v661_v44  ;;  %v698_v55 = vadd.f32 %v690_v37, %v662_v48  ;;  %v657_v56 = vpop.f32.mrb[7].mxu1  ;;  %v765_v36 = vsel %vm751_vm5, %v9712_v24, 0  ;;  %v897_v37 = vsel %vm751_vm5, %v9682_v8, 0  ;;  %v9362_v51 = vld [vmem:[#allocation5 + $0x8] sm:$0xff] }
 0x188   :  { %v903_v8 = vsel %vm751_vm5, %v9698_v17, 0  ;;  %v909_v44 = vsel %vm751_vm5, %v9714_v25, 0  ;;  %v1047_v17 = vsel %vm751_vm5, %v9744_v40, 0  ;;  %v1053_v40 = vsel %vm751_vm5, %v9760_v46, 0 }
 0x189   :  { %v706_v57 = vsel %vm699_vm2, %v697_v54, -inf  ;;  %v709_v59 = vsel %vm699_vm2, %v698_v55, -inf  ;;  %v1197_v46 = vsel %vm751_vm5, %v9762_v47, 0 }
 0x18a   :  { %707 = vmax.xlane.f32.xlu1 %v706_v57 }
 0x18e   :  { %710 = vmax.xlane.f32.xlu1 %v709_v59  ;;  %v9363_v59 = vld [vmem:[#allocation5 + $0x10] sm:$0xff] }
 0x1f7   :  { %v702_v60 = vpop.xlane.xlu0 %701 }
 0x1f8   :  { %v712_v61 = vsub.f32 %v695_v20, %v702_v60 }
 0x1fa   :  { %v716_v62 = vmul.f32 1.442695, %v712_v61 }
 0x1fb   :  { %v705_v63 = vpop.xlane.xlu0 %704 }
 0x1fc   :  { %9329 = vpow2.f32 %v716_v62  ;;  %v713_v0 = vsub.f32 %v696_v22, %v705_v63  ;;  %v753_v22 = vsel %vm751_vm5, %v9680_v5, 0  ;;  %v9364_v62 = vld [vmem:[#allocation5 + $0x18] sm:$0xff] }
 0x1fd   :  { %771 = vmatpush1.bf16.msra.mxu0 %v753_v22 }
 0x1fe   :  { %v718_v1 = vmul.f32 1.442695, %v713_v0  ;;  %7749 = vmatprep.subr.msk.bf16.mxu0 %vm751_vm5, %v9700_v18 }
 0x200   :  { %9331 = vpow2.f32 %v718_v1 }
 0x206   :  { %v9330_v2 = vpop.eup %9329 }
 0x207   :  { %v724_v6 = vsel %vm699_vm2, %v9330_v2, 0.0 }
 0x208   :  { %725 = vadd.xlane.f32.xlu0 %v724_v6 }
 0x20a   :  { %v9332_v7 = vpop.eup %9331 }
 0x20b   :  { %v727_v10 = vsel %vm699_vm2, %v9332_v7, 0.0 }
 0x20c   :  { %728 = vadd.xlane.f32.xlu1 %v727_v10 }
 0x217   :  { %v708_v12 = vpop.xlane.xlu1 %707 }
 0x218   :  { %v714_v13 = vsub.f32 %v697_v54, %v708_v12 }
 0x21a   :  { %v720_v14 = vmul.f32 1.442695, %v714_v13 }
 0x21b   :  { %v711_v15 = vpop.xlane.xlu1 %710 }
 0x21c   :  { %9333 = vpow2.f32 %v720_v14  ;;  %v715_v20 = vsub.f32 %v698_v55, %v711_v15  ;;  %v9366_v14 = vld [vmem:[#allocation5 + $0x28] sm:$0xff] }
 0x21e   :  { %v722_v21 = vmul.f32 1.442695, %v715_v20 }
 0x220   :  { %9335 = vpow2.f32 %v722_v21 }
 0x226   :  { %v9334_v3 = vpop.eup %9333 }
 0x227   :  { %v730_v5 = vsel %vm699_vm2, %v9334_v3, 0.0 }
 0x228   :  { %731 = vadd.xlane.f32.xlu0 %v730_v5 }
 0x22a   :  { %v9336_v9 = vpop.eup %9335 }
 0x22b   :  { %v733_v16 = vsel %vm699_vm2, %v9336_v9, 0.0 }
 0x22c   :  { %734 = vadd.xlane.f32.xlu1 %v733_v16 }
 0x295   :  { %v726_v29 = vpop.xlane.xlu0 %725 }
 0x296   :  { %9337 = vrcp.f32 %v726_v29 }
 0x299   :  { %v729_v30 = vpop.xlane.xlu1 %728 }
 0x29a   :  { %9339 = vrcp.f32 %v729_v30 }
 0x2a0   :  { %v9338_v18 = vpop.eup %9337 }
 0x2a1   :  { %v737_v31 = vmul.f32 %v9338_v18, %v9330_v2 }
 0x2a3   :  { %v744_v4 = vpack.c.bf16 %v737_v31, %v737_v31 }
 0x2a4   :  { %v9340_v38 = vpop.eup %9339 }
 0x2a5   :  { %7746 = vmatmul.mubr.msk.bf16.vlgmr.msra.gmra.mrb[8].mxu0 %vm699_vm2, %v744_v4  ;;  %7748 = vmatmul.mubr.msk.bf16.vlgmr.msra.gmra.mrb[8].mxu1 %vm699_vm2, %v744_v4  ;;  %v739_v39 = vmul.f32 %v9340_v38, %v9332_v7  ;;  %v9365_v7 = vld [vmem:[#allocation5 + $0x20] sm:$0xff] }
 0x2a6   :  { %853 = vmatpush1.bf16.msra.mxu0 %v765_v36  ;;  %915 = vmatpush1.bf16.msra.mxu1 %v897_v37 }
 0x2a7   :  { %884 = vmatprep.mubr.bf16.mxu0 %v9564_v28  ;;  %946 = vmatprep.mubr.bf16.mxu1 %v9564_v28  ;;  %v745_v24 = vpack.c.bf16 %v739_v39, %v739_v39  ;;  %v9370_v39 = vld [vmem:[#allocation5 + $0x48] sm:$0xff] }
 0x2a8   :  { %7753 = vmatprep.subr.msk.bf16.mxu0 %vm751_vm5, %v9688_v11  ;;  %7755 = vmatprep.subr.msk.bf16.mxu1 %vm751_vm5, %v9702_v19  ;;  %v1041_v11 = vsel %vm751_vm5, %v9728_v32, 0 }
 0x2ad   :  { %7750 = vmatmul.mubr.msk.bf16.vlgmr.msra.gmra.mrb[12].mxu0 %vm699_vm2, %v744_v4  ;;  %7752 = vmatmul.mubr.msk.bf16.vlgmr.msra.gmra.mrb[12].mxu1 %vm699_vm2, %v745_v24  ;;  %v9369_v4 = vld [vmem:[#allocation5 + $0x40] sm:$0xff] }
 0x2ae   :  { %956 = vmatpush1.bf16.msra.mxu0 %v903_v8  ;;  %997 = vmatpush1.bf16.msra.mxu1 %v909_v44 }
 0x2af   :  { %987 = vmatprep.mubr.bf16.mxu0 %v9564_v28  ;;  %1028 = vmatprep.mubr.bf16.mxu1 %v9564_v28 }
 0x2b0   :  { %7757 = vmatprep.subr.msk.bf16.mxu0 %vm751_vm5, %v9716_v26  ;;  %7759 = vmatprep.subr.msk.bf16.mxu1 %vm751_vm5, %v9732_v34 }
 0x2b5   :  { %v732_v19 = vpop.xlane.xlu0 %731  ;;  %7754 = vmatmul.mubr.msk.bf16.vlgmr.msra.gmra.mrb[16].mxu0 %vm699_vm2, %v745_v24  ;;  %7756 = vmatmul.mubr.msk.bf16.vlgmr.msra.gmra.mrb[16].mxu1 %vm699_vm2, %v745_v24 }
 0x2b6   :  { %9341 = vrcp.f32 %v732_v19  ;;  %1059 = vmatpush1.bf16.msra.mxu0 %v1041_v11  ;;  %1100 = vmatpush1.bf16.msra.mxu1 %v1047_v17 }
 0x2b7   :  { %1090 = vmatprep.mubr.bf16.mxu0 %v9564_v28  ;;  %1131 = vmatprep.mubr.bf16.mxu1 %v9564_v28 }
 0x2b8   :  { %7761 = vmatprep.subr.msk.bf16.mxu0 %vm751_vm5, %v9748_v42  ;;  %7763 = vmatprep.subr.msk.bf16.mxu1 %vm751_vm5, %v9718_v27 }
 0x2b9   :  { %v735_v25 = vpop.xlane.xlu1 %734 }
 0x2ba   :  { %9343 = vrcp.f32 %v735_v25  ;;  %v9371_v25 = vld [vmem:[#allocation5 + $0x50] sm:$0xff] }
 0x2c0   :  { %v9342_v26 = vpop.eup %9341 }
 0x2c1   :  { %v741_v32 = vmul.f32 %v9342_v26, %v9334_v3  ;;  %v9367_v3 = vld [vmem:[#allocation5 + $0x30] sm:$0xff] }
 0x2c3   :  { %v746_v34 = vpack.c.bf16 %v741_v32, %v741_v32 }
 0x2c4   :  { %v9344_v48 = vpop.eup %9343 }
 0x2c5   :  { %7758 = vmatmul.mubr.msk.bf16.vlgmr.msra.gmra.mrb[20].mxu0 %vm699_vm2, %v746_v34  ;;  %7760 = vmatmul.mubr.msk.bf16.vlgmr.msra.gmra.mrb[20].mxu1 %vm699_vm2, %v746_v34  ;;  %v743_v42 = vmul.f32 %v9344_v48, %v9336_v9  ;;  %v9368_v9 = vld [vmem:[#allocation5 + $0x38] sm:$0xff] }
 0x2c6   :  { %1141 = vmatpush1.bf16.msra.mxu0 %v1053_v40  ;;  %1203 = vmatpush1.bf16.msra.mxu1 %v1185_v45 }
 0x2c7   :  { %1172 = vmatprep.mubr.bf16.mxu0 %v9564_v28  ;;  %1234 = vmatprep.mubr.bf16.mxu1 %v9564_v28  ;;  %v747_v27 = vpack.c.bf16 %v743_v42, %v743_v42 }
 0x2c8   :  { %7765 = vmatprep.subr.msk.bf16.mxu0 %vm751_vm5, %v9734_v35  ;;  %7767 = vmatprep.subr.msk.bf16.mxu1 %vm751_vm5, %v9750_v43 }
 0x2cd   :  { %7762 = vmatmul.mubr.msk.bf16.vlgmr.msra.gmra.mrb[24].mxu0 %vm699_vm2, %v746_v34  ;;  %7764 = vmatmul.mubr.msk.bf16.vlgmr.msra.gmra.mrb[24].mxu1 %vm699_vm2, %v747_v27  ;;  %v9372_v34 = vld [vmem:[#allocation5 + $0x58] sm:$0xff] }
 0x2ce   :  { %1244 = vmatpush1.bf16.msra.mxu0 %v1191_v33  ;;  %1285 = vmatpush1.bf16.msra.mxu1 %v1197_v46  ;;  %v9373_v33 = vld [vmem:[#allocation5 + $0x60] sm:$0xff] }
 0x2cf   :  { %1275 = vmatprep.mubr.bf16.mxu0 %v9564_v28  ;;  %1316 = vmatprep.mubr.bf16.mxu1 %v9564_v28 }
 0x2d5   :  { %7766 = vmatmul.mubr.msk.bf16.vlgmr.msra.gmra.mrb[28].mxu0 %vm699_vm2, %v747_v27  ;;  %7768 = vmatmul.mubr.msk.bf16.vlgmr.msra.gmra.mrb[28].mxu1 %vm699_vm2, %v747_v27 }
 0x378   :  { %v804_v35 = vpop.f32.mrb[8].mxu0  ;;  %v845_v43 = vpop.f32.mrb[8].mxu1 }
 0x379   :  { %v9862_v49 = vadd.f32 %v9361_v41, %v804_v35  ;;  %v806_v47 = vpop.f32.mrb[9].mxu0  ;;  %v847_v50 = vpop.f32.mrb[9].mxu1  ;;  %v9866_v60 = vadd.f32 %v9363_v59, %v845_v43  ;;  %v9374_v41 = vld [vmem:[#allocation5 + $0x68] sm:$0xff] }
 0x37a   :  { %v9864_v53 = vadd.f32 %v9362_v51, %v806_v47  ;;  %v808_v54 = vpop.f32.mrb[10].mxu0  ;;  %v849_v55 = vpop.f32.mrb[10].mxu1  ;;  %v9870_v63 = vadd.f32 %v9364_v62, %v847_v50 }
 0x37b   :  { %v809_v56 = vpop.f32.mrb[11].mxu0  ;;  %v850_v57 = vpop.f32.mrb[11].mxu1 }
 0x37c   :  { %v1349_v61 = vadd.f32 %v9864_v53, %v9862_v49  ;;  %v9375_v56 = vld [vmem:[#allocation5 + $0x70] sm:$0xff] }
 0x37e   :  { %v1350_v0 = vadd.f32 %v1349_v61, %v9866_v60  ;;  %v9376_v61 = vld [vmem:[#allocation5 + $0x78] sm:$0xff] }
 0x380   :  { %v1351_v1 = vadd.f32 %v1350_v0, %v9870_v63  ;;  %v886_v2 = vpop.f32.mrb[12].mxu0  ;;  %v948_v6 = vpop.f32.mrb[12].mxu1 }
 0x381   :  { %v9874_v10 = vadd.f32 %v9365_v7, %v886_v2  ;;  %v888_v12 = vpop.f32.mrb[13].mxu0  ;;  %v950_v13 = vpop.f32.mrb[13].mxu1  ;;  %v9879_v5 = vadd.f32 %v9367_v3, %v948_v6  ;;  %v9377_v7 = vld [vmem:[#allocation5 + $0x80] sm:$0xff] }
 0x382   :  { %v9876_v15 = vadd.f32 %v9366_v14, %v888_v12  ;;  %v890_v20 = vpop.f32.mrb[14].mxu0  ;;  %v952_v21 = vpop.f32.mrb[14].mxu1  ;;  %v9881_v16 = vadd.f32 %v9368_v9, %v950_v13 }
 0x383   :  { %v1352_v22 = vadd.f32 %v1351_v1, %v9874_v10  ;;  %v891_v23 = vpop.f32.mrb[15].mxu0  ;;  %v953_v28 = vpop.f32.mrb[15].mxu1  ;;  %v9378_v20 = vld [vmem:[#allocation5 + $0x88] sm:$0xff] }
 0x384   :  { %v1356_v31 = vadd.f32 %v9881_v16, %v9879_v5 }
 0x385   :  { %v1353_v29 = vadd.f32 %v1352_v22, %v9876_v15 }
 0x387   :  { %1354 = vadd.xlane.f32.xlu0 %v1353_v29  ;;  %v9379_v29 = vld [vmem:[#allocation5 + $0x90] sm:$0xff] }
 0x388   :  { %v989_v30 = vpop.f32.mrb[16].mxu0  ;;  %v1030_v18 = vpop.f32.mrb[16].mxu1 }
 0x389   :  { %v9886_v36 = vadd.f32 %v9369_v4, %v989_v30  ;;  %v991_v37 = vpop.f32.mrb[17].mxu0  ;;  %v1032_v38 = vpop.f32.mrb[17].mxu1  ;;  %v9891_v26 = vadd.f32 %v9371_v25, %v1030_v18  ;;  %v9380_v18 = vld [vmem:[#allocation5 + $0x98] sm:$0xff] }
 0x38a   :  { %v9888_v24 = vadd.f32 %v9370_v39, %v991_v37  ;;  %v993_v8 = vpop.f32.mrb[18].mxu0  ;;  %v1034_v44 = vpop.f32.mrb[18].mxu1  ;;  %v9894_v40 = vadd.f32 %v9372_v34, %v1032_v38 }
 0x38b   :  { %v1357_v11 = vadd.f32 %v1356_v31, %v9886_v36  ;;  %v994_v17 = vpop.f32.mrb[19].mxu0  ;;  %v1035_v19 = vpop.f32.mrb[19].mxu1  ;;  %v9381_v8 = vld [vmem:[#allocation5 + $0xa0] sm:$0xff] }
 0x38c   :  { %v9382_v19 = vld [vmem:[#allocation5 + $0xa8] sm:$0xff] }
 0x38d   :  { %v1358_v32 = vadd.f32 %v1357_v11, %v9888_v24 }
 0x38f   :  { %v1359_v45 = vadd.f32 %v1358_v32, %v9891_v26 }
 0x391   :  { %v1360_v48 = vadd.f32 %v1359_v45, %v9894_v40 }
 0x393   :  { %1361 = vadd.xlane.f32.xlu1 %v1360_v48 }
 0x398   :  { %v1092_v42 = vpop.f32.mrb[20].mxu0  ;;  %v1133_v27 = vpop.f32.mrb[20].mxu1 }
 0x399   :  { %v9898_v46 = vadd.f32 %v9373_v33, %v1092_v42  ;;  %v1094_v35 = vpop.f32.mrb[21].mxu0  ;;  %v1135_v43 = vpop.f32.mrb[21].mxu1  ;;  %v9902_v57 = vadd.f32 %v9375_v56, %v1133_v27  ;;  %v9383_v27 = vld [vmem:[#allocation5 + $0xb0] sm:$0xff]  ;;  %v1762_v56 = vld [vmem:[#allocation7 + $0x800] sm:$0xff] }
 0x39a   :  { %v9900_v47 = vadd.f32 %v9374_v41, %v1094_v35  ;;  %v1096_v50 = vpop.f32.mrb[22].mxu0  ;;  %v1137_v51 = vpop.f32.mrb[22].mxu1  ;;  %v9906_v62 = vadd.f32 %v9376_v61, %v1135_v43  ;;  %v9384_v43 = vld [vmem:[#allocation5 + $0xb8] sm:$0xff] }
 0x39b   :  { %v1097_v54 = vpop.f32.mrb[23].mxu0  ;;  %v1138_v55 = vpop.f32.mrb[23].mxu1 }
 0x39c   :  { %v1363_v59 = vadd.f32 %v9900_v47, %v9898_v46  ;;  %v1506_v54 = vld [vmem:[#allocation7] sm:$0xff] }
 0x39d   :  { %v1510_v55 = vld [vmem:[#allocation7 + $0x20] sm:$0xff] }
 0x39e   :  { %v1364_v0 = vadd.f32 %v1363_v59, %v9902_v57  ;;  %v7769_v59 = vcombine.low %v1506_v54, %v1510_v55  ;;  %v7770_v61 = vcombine.high %v1506_v54, %v1510_v55  ;;  %v1546_v54 = vld [vmem:[#allocation7 + $0x140] sm:$0xff] }
 0x39f   :  { %v1550_v55 = vld [vmem:[#allocation7 + $0x160] sm:$0xff] }
 0x3a0   :  { %v1365_v1 = vadd.f32 %v1364_v0, %v9906_v62  ;;  %v1174_v2 = vpop.f32.mrb[24].mxu0  ;;  %v1236_v6 = vpop.f32.mrb[24].mxu1  ;;  %v1766_v0 = vld [vmem:[#allocation7 + $0x820] sm:$0xff]  ;;  %3852 = vmatprep.subr.bf16.mxu1 %v7770_v61 }
 0x3a1   :  { %v9910_v12 = vadd.f32 %v9377_v7, %v1174_v2  ;;  %v1176_v13 = vpop.f32.mrb[25].mxu0  ;;  %v1238_v14 = vpop.f32.mrb[25].mxu1  ;;  %v9915_v30 = vadd.f32 %v9379_v29, %v1236_v6  ;;  %v1518_v2 = vld [vmem:[#allocation7 + $0x60] sm:$0xff]  ;;  %v8025_v6 = vcombine.low %v1762_v56, %v1766_v0  ;;  %v8026_v7 = vcombine.high %v1762_v56, %v1766_v0  ;;  %3853 = vmatpush1.bf16.msra.mxu1 %v7769_v59 }
 0x3a2   :  { %v9912_v21 = vadd.f32 %v9378_v20, %v1176_v13  ;;  %v1178_v22 = vpop.f32.mrb[26].mxu0  ;;  %v1240_v23 = vpop.f32.mrb[26].mxu1  ;;  %v9917_v31 = vadd.f32 %v9380_v18, %v1238_v14  ;;  %v1770_v14 = vld [vmem:[#allocation7 + $0x840] sm:$0xff] }
 0x3a3   :  { %v1366_v28 = vadd.f32 %v1365_v1, %v9910_v12  ;;  %v1179_v3 = vpop.f32.mrb[27].mxu0  ;;  %v1241_v9 = vpop.f32.mrb[27].mxu1  ;;  %v1514_v1 = vld [vmem:[#allocation7 + $0x40] sm:$0xff]  ;;  %3958 = vmatprep.subr.bf16.mxu0 %v8026_v7 }
 0x3a4   :  { %v1370_v39 = vadd.f32 %v9917_v31, %v9915_v30  ;;  %v7778_v13 = vcombine.high %v1514_v1, %v1518_v2  ;;  %v1774_v20 = vld [vmem:[#allocation7 + $0x860] sm:$0xff]  ;;  %v7777_v29 = vcombine.low %v1514_v1, %v1518_v2  ;;  %3959 = vmatpush1.bf16.msra.mxu0 %v8025_v6  ;;  %v7810_v1 = vcombine.high %v1546_v54, %v1550_v55 }
 0x3a5   :  { %v1367_v4 = vadd.f32 %v1366_v28, %v9912_v21  ;;  %v1522_v22 = vld [vmem:[#allocation7 + $0x80] sm:$0xff]  ;;  %v8034_v23 = vcombine.high %v1770_v14, %v1774_v20  ;;  %v8033_v18 = vcombine.low %v1770_v14, %v1774_v20  ;;  %v7809_v20 = vcombine.low %v1546_v54, %v1550_v55 }
 0x3a6   :  { %v1526_v28 = vld [vmem:[#allocation7 + $0xa0] sm:$0xff]  ;;  %3854 = vmatprep.subr.bf16.mxu1 %v7778_v13 }
 0x3a7   :  { %1368 = vadd.xlane.f32.xlu0 %v1367_v4  ;;  %v1778_v3 = vld [vmem:[#allocation7 + $0x880] sm:$0xff]  ;;  %v7786_v4 = vcombine.high %v1522_v22, %v1526_v28  ;;  %3960 = vmatprep.subr.bf16.mxu0 %v8034_v23 }
 0x3a8   :  { %v1277_v37 = vpop.f32.mrb[28].mxu0  ;;  %v1318_v38 = vpop.f32.mrb[28].mxu1  ;;  %v1782_v9 = vld [vmem:[#allocation7 + $0x8a0] sm:$0xff]  ;;  %3855 = vmatpush1.bf16.msra.mxu1 %v7777_v29  ;;  %3961 = vmatpush1.bf16.msra.mxu0 %v8033_v18 }
 0x3a9   :  { %v9922_v44 = vadd.f32 %v9381_v8, %v1277_v37  ;;  %v1279_v11 = vpop.f32.mrb[29].mxu0  ;;  %v1320_v17 = vpop.f32.mrb[29].mxu1  ;;  %v9927_v33 = vadd.f32 %v9383_v27, %v1318_v38  ;;  %v8042_v37 = vcombine.high %v1778_v3, %v1782_v9  ;;  %v1530_v38 = vld [vmem:[#allocation7 + $0xc0] sm:$0xff]  ;;  %3856 = vmatprep.subr.bf16.mxu1 %v7786_v4 }
 0x3aa   :  { %v9924_v25 = vadd.f32 %v9382_v19, %v1279_v11  ;;  %v1281_v32 = vpop.f32.mrb[30].mxu0  ;;  %v1322_v34 = vpop.f32.mrb[30].mxu1  ;;  %v9930_v41 = vadd.f32 %v9384_v43, %v1320_v17  ;;  %v1786_v8 = vld [vmem:[#allocation7 + $0x8c0] sm:$0xff]  ;;  %v7785_v17 = vcombine.low %v1522_v22, %v1526_v28  ;;  %v8041_v19 = vcombine.low %v1778_v3, %v1782_v9 }
 0x3ab   :  { %v1371_v45 = vadd.f32 %v1370_v39, %v9922_v44  ;;  %v1282_v48 = vpop.f32.mrb[31].mxu0  ;;  %v1323_v42 = vpop.f32.mrb[31].mxu1  ;;  %v1534_v39 = vld [vmem:[#allocation7 + $0xe0] sm:$0xff]  ;;  %3962 = vmatprep.subr.bf16.mxu0 %v8042_v37 }
 0x3ac   :  { %v1790_v11 = vld [vmem:[#allocation7 + $0x8e0] sm:$0xff]  ;;  %v7794_v32 = vcombine.high %v1530_v38, %v1534_v39  ;;  %3857 = vmatpush1.bf16.msra.mxu1 %v7785_v17  ;;  %3963 = vmatpush1.bf16.msra.mxu0 %v8041_v19 }
 0x3ad   :  { %v1372_v35 = vadd.f32 %v1371_v45, %v9924_v25  ;;  %v8050_v34 = vcombine.high %v1786_v8, %v1790_v11  ;;  %v1538_v45 = vld [vmem:[#allocation7 + $0x100] sm:$0xff]  ;;  %v8049_v43 = vcombine.low %v1786_v8, %v1790_v11 }
 0x3ae   :  { %v1542_v48 = vld [vmem:[#allocation7 + $0x120] sm:$0xff]  ;;  %3858 = vmatprep.subr.bf16.mxu1 %v7794_v32 }
 0x3af   :  { %v1373_v50 = vadd.f32 %v1372_v35, %v9927_v33  ;;  %v1794_v42 = vld [vmem:[#allocation7 + $0x900] sm:$0xff]  ;;  %v7793_v35 = vcombine.low %v1530_v38, %v1534_v39  ;;  %3964 = vmatprep.subr.bf16.mxu0 %v8050_v34  ;;  %v7801_v61 = vcombine.low %v1538_v45, %v1542_v48 }
 0x3b0   :  { %v1798_v27 = vld [vmem:[#allocation7 + $0x920] sm:$0xff]  ;;  %3965 = vmatpush1.bf16.msra.mxu0 %v8049_v43 }
 0x3b1   :  { %v1374_v51 = vadd.f32 %v1373_v50, %v9930_v41  ;;  %v7802_v50 = vcombine.high %v1538_v45, %v1542_v48  ;;  %v1802_v56 = vld [vmem:[#allocation7 + $0x940] sm:$0xff]  ;;  %3859 = vmatpush1.bf16.msra.mxu1 %v7793_v35  ;;  %v8057_v0 = vcombine.low %v1794_v42, %v1798_v27 }
 0x3b2   :  { %v1806_v59 = vld [vmem:[#allocation7 + $0x960] sm:$0xff] }
 0x3b3   :  { %1375 = vadd.xlane.f32.xlu1 %v1374_v51  ;;  %v8058_v51 = vcombine.high %v1794_v42, %v1798_v27  ;;  %3860 = vmatprep.subr.bf16.mxu1 %v7802_v50  ;;  %v8066_v2 = vcombine.high %v1802_v56, %v1806_v59  ;;  %v1554_v6 = vld [vmem:[#allocation7 + $0x180] sm:$0xff]  ;;  %v8065_v22 = vcombine.low %v1802_v56, %v1806_v59 }
 0x3b4   :  { %v1558_v7 = vld [vmem:[#allocation7 + $0x1a0] sm:$0xff] }
 0x3b5   :  { %3966 = vmatprep.subr.bf16.mxu0 %v8058_v51  ;;  %v1810_v13 = vld [vmem:[#allocation7 + $0x980] sm:$0xff]  ;;  %3861 = vmatpush1.bf16.msra.mxu1 %v7801_v61  ;;  %v7818_v23 = vcombine.high %v1554_v6, %v1558_v7  ;;  %v7817_v4 = vcombine.low %v1554_v6, %v1558_v7 }
 0x3b6   :  { %v1814_v14 = vld [vmem:[#allocation7 + $0x9a0] sm:$0xff]  ;;  %3967 = vmatpush1.bf16.msra.mxu0 %v8057_v0  ;;  %3862 = vmatprep.subr.bf16.mxu1 %v7810_v1 }
 0x3b7   :  { %3968 = vmatprep.subr.bf16.mxu0 %v8066_v2  ;;  %v8074_v28 = vcombine.high %v1810_v13, %v1814_v14  ;;  %v1562_v3 = vld [vmem:[#allocation7 + $0x1c0] sm:$0xff]  ;;  %v8073_v37 = vcombine.low %v1810_v13, %v1814_v14 }
 0x3b8   :  { %v1566_v9 = vld [vmem:[#allocation7 + $0x1e0] sm:$0xff] }
 0x3b9   :  { %v1818_v29 = vld [vmem:[#allocation7 + $0x9c0] sm:$0xff]  ;;  %3863 = vmatpush1.bf16.msra.mxu1 %v7809_v20  ;;  %v7826_v38 = vcombine.high %v1562_v3, %v1566_v9  ;;  %v7825_v32 = vcombine.low %v1562_v3, %v1566_v9 }
 0x3ba   :  { %v1822_v18 = vld [vmem:[#allocation7 + $0x9e0] sm:$0xff]  ;;  %3969 = vmatpush1.bf16.msra.mxu0 %v8065_v22  ;;  %3864 = vmatprep.subr.bf16.mxu1 %v7818_v23 }
 0x3bb   :  { %3970 = vmatprep.subr.bf16.mxu0 %v8074_v28  ;;  %v8082_v39 = vcombine.high %v1818_v29, %v1822_v18  ;;  %v1570_v8 = vld [vmem:[#allocation7 + $0x200] sm:$0xff]  ;;  %v8081_v34 = vcombine.low %v1818_v29, %v1822_v18 }
 0x3bc   :  { %v1574_v11 = vld [vmem:[#allocation7 + $0x220] sm:$0xff] }
 0x3bd   :  { %v1826_v17 = vld [vmem:[#allocation7 + $0xa00] sm:$0xff]  ;;  %3865 = vmatpush1.bf16.msra.mxu1 %v7817_v4  ;;  %v7834_v45 = vcombine.high %v1570_v8, %v1574_v11  ;;  %v7833_v42 = vcombine.low %v1570_v8, %v1574_v11 }
 0x3be   :  { %v1830_v19 = vld [vmem:[#allocation7 + $0xa20] sm:$0xff]  ;;  %3971 = vmatpush1.bf16.msra.mxu0 %v8073_v37  ;;  %3866 = vmatprep.subr.bf16.mxu1 %v7826_v38 }
 0x3bf   :  { %3972 = vmatprep.subr.bf16.mxu0 %v8082_v39  ;;  %v8090_v48 = vcombine.high %v1826_v17, %v1830_v19  ;;  %v8089_v27 = vcombine.low %v1826_v17, %v1830_v19  ;;  %v1578_v8 = vld [vmem:[#allocation7 + $0x240] sm:$0xff] }
 0x3c0   :  { %v1582_v11 = vld [vmem:[#allocation7 + $0x260] sm:$0xff] }
 0x3c1   :  { %3867 = vmatpush1.bf16.msra.mxu1 %v7825_v32  ;;  %v1834_v17 = vld [vmem:[#allocation7 + $0xa40] sm:$0xff]  ;;  %v7842_v19 = vcombine.high %v1578_v8, %v1582_v11 }
 0x3c2   :  { %3973 = vmatpush1.bf16.msra.mxu0 %v8081_v34  ;;  %3868 = vmatprep.subr.bf16.mxu1 %v7834_v45  ;;  %v1838_v32 = vld [vmem:[#allocation7 + $0xa60] sm:$0xff]  ;;  %v7841_v34 = vcombine.low %v1578_v8, %v1582_v11 }
 0x3c3   :  { %3974 = vmatprep.subr.bf16.mxu0 %v8090_v48  ;;  %v8097_v45 = vcombine.low %v1834_v17, %v1838_v32  ;;  %v8098_v48 = vcombine.high %v1834_v17, %v1838_v32 }
 0x3c5   :  { %3869 = vmatpush1.bf16.msra.mxu1 %v7833_v42 }
 0x3c6   :  { %3975 = vmatpush1.bf16.msra.mxu0 %v8089_v27  ;;  %3870 = vmatprep.subr.bf16.mxu1 %v7842_v19 }
 0x3c7   :  { %3976 = vmatprep.subr.bf16.mxu0 %v8098_v48 }
 0x3c9   :  { %3871 = vmatpush1.bf16.msra.mxu1 %v7841_v34 }
 0x3ca   :  { %3977 = vmatpush1.bf16.msra.mxu0 %v8097_v45 }
 0x414   :  { %v1355_v35 = vpop.xlane.xlu0 %1354 }
 0x415   :  { %v1378_v43 = vmul.f32 0.0013020834, %v1355_v35 }
 0x417   :  { %v9935_v50 = vsub.f32 %v9862_v49, %v1378_v43  ;;  %v9938_v51 = vsub.f32 %v9864_v53, %v1378_v43  ;;  %v9941_v54 = vsub.f32 %v9866_v60, %v1378_v43  ;;  %v9944_v55 = vsub.f32 %v9870_v63, %v1378_v43 }
 0x418   :  { %v9951_v61 = vsub.f32 %v9874_v10, %v1378_v43  ;;  %v9956_v0 = vsub.f32 %v9876_v15, %v1378_v43  ;;  %v1586_v43 = vld [vmem:[#allocation7 + $0x280] sm:$0xff] }
 0x419   :  { %v1406_v56 = vmul.f32 %v9935_v50, %v9935_v50  ;;  %v1407_v59 = vmul.f32 %v9938_v51, %v9938_v51  ;;  %v1408_v49 = vmul.f32 %v9941_v54, %v9941_v54  ;;  %v1409_v60 = vmul.f32 %v9944_v55, %v9944_v55 }
 0x41a   :  { %v1410_v1 = vmul.f32 %v9951_v61, %v9951_v61  ;;  %v1411_v10 = vmul.f32 %v9956_v0, %v9956_v0 }
 0x41b   :  { %v1430_v53 = vadd.f32 %v1407_v59, %v1406_v56  ;;  %v1590_v56 = vld [vmem:[#allocation7 + $0x2a0] sm:$0xff] }
 0x41c   :  { %v1842_v59 = vld [vmem:[#allocation7 + $0xa80] sm:$0xff] }
 0x41d   :  { %v1431_v63 = vadd.f32 %v1430_v53, %v1408_v49  ;;  %v1846_v49 = vld [vmem:[#allocation7 + $0xaa0] sm:$0xff] }
 0x41e   :  { %v1594_v53 = vld [vmem:[#allocation7 + $0x2c0] sm:$0xff] }
 0x41f   :  { %v1432_v2 = vadd.f32 %v1431_v63, %v1409_v60  ;;  %v1598_v60 = vld [vmem:[#allocation7 + $0x2e0] sm:$0xff] }
 0x420   :  { %v1362_v6 = vpop.xlane.xlu1 %1361 }
 0x421   :  { %v1379_v7 = vmul.f32 0.0013020834, %v1362_v6  ;;  %v1433_v13 = vadd.f32 %v1432_v2, %v1410_v1  ;;  %v1850_v1 = vld [vmem:[#allocation7 + $0xac0] sm:$0xff] }
 0x422   :  { %v1854_v2 = vld [vmem:[#allocation7 + $0xae0] sm:$0xff] }
 0x423   :  { %v1434_v14 = vadd.f32 %v1433_v13, %v1411_v10  ;;  %v9965_v20 = vsub.f32 %v9879_v5, %v1379_v7  ;;  %v9968_v15 = vsub.f32 %v9881_v16, %v1379_v7  ;;  %v9971_v22 = vsub.f32 %v9886_v36, %v1379_v7 }
 0x424   :  { %v9974_v23 = vsub.f32 %v9888_v24, %v1379_v7  ;;  %v9981_v9 = vsub.f32 %v9891_v26, %v1379_v7  ;;  %v9986_v36 = vsub.f32 %v9894_v40, %v1379_v7  ;;  %v7850_v7 = vcombine.high %v1586_v43, %v1590_v56 }
 0x425   :  { %1435 = vadd.xlane.f32.xlu0 %v1434_v14  ;;  %v1412_v28 = vmul.f32 %v9965_v20, %v9965_v20  ;;  %v1413_v3 = vmul.f32 %v9968_v15, %v9968_v15  ;;  %v1414_v5 = vmul.f32 %v9971_v22, %v9971_v22  ;;  %v8105_v10 = vcombine.low %v1842_v59, %v1846_v49 }
 0x426   :  { %v1415_v24 = vmul.f32 %v9974_v23, %v9974_v23  ;;  %v1416_v18 = vmul.f32 %v9981_v9, %v9981_v9  ;;  %v1417_v37 = vmul.f32 %v9986_v36, %v9986_v36  ;;  %v8106_v14 = vcombine.high %v1842_v59, %v1846_v49  ;;  %3872 = vmatprep.subr.bf16.mxu1 %v7850_v7  ;;  %v1610_v59 = vld [vmem:[#allocation7 + $0x340] sm:$0xff] }
 0x427   :  { %v1437_v16 = vadd.f32 %v1413_v3, %v1412_v28  ;;  %v7858_v28 = vcombine.high %v1594_v53, %v1598_v60  ;;  %v1614_v49 = vld [vmem:[#allocation7 + $0x360] sm:$0xff] }
 0x428   :  { %3978 = vmatprep.subr.bf16.mxu0 %v8106_v14 }
 0x429   :  { %v1438_v29 = vadd.f32 %v1437_v16, %v1414_v5  ;;  %v8114_v5 = vcombine.high %v1850_v1, %v1854_v2  ;;  %3979 = vmatpush1.bf16.msra.mxu0 %v8105_v10  ;;  %v1626_v10 = vld [vmem:[#allocation7 + $0x3c0] sm:$0xff] }
 0x42b   :  { %v1439_v4 = vadd.f32 %v1438_v29, %v1415_v24  ;;  %v8113_v29 = vcombine.low %v1850_v1, %v1854_v2  ;;  %3980 = vmatprep.subr.bf16.mxu0 %v8114_v5  ;;  %v1874_v1 = vld [vmem:[#allocation7 + $0xb80] sm:$0xff] }
 0x42c   :  { %v1878_v2 = vld [vmem:[#allocation7 + $0xba0] sm:$0xff] }
 0x42d   :  { %v1440_v26 = vadd.f32 %v1439_v4, %v1416_v18  ;;  %3981 = vmatpush1.bf16.msra.mxu0 %v8113_v29 }
 0x42f   :  { %v1441_v38 = vadd.f32 %v1440_v26, %v1417_v37  ;;  %v1606_v26 = vld [vmem:[#allocation7 + $0x320] sm:$0xff] }
 0x431   :  { %1442 = vadd.xlane.f32.xlu1 %v1441_v38  ;;  %v1858_v38 = vld [vmem:[#allocation7 + $0xb00] sm:$0xff] }
 0x434   :  { %v1369_v39 = vpop.xlane.xlu0 %1368 }
 0x435   :  { %v1380_v40 = vmul.f32 0.0013020834, %v1369_v39 }
 0x437   :  { %v9995_v42 = vsub.f32 %v9898_v46, %v1380_v40  ;;  %v9998_v27 = vsub.f32 %v9900_v47, %v1380_v40  ;;  %v10001_v35 = vsub.f32 %v9902_v57, %v1380_v40  ;;  %v10004_v63 = vsub.f32 %v9906_v62, %v1380_v40 }
 0x438   :  { %v7849_v57 = vcombine.low %v1586_v43, %v1590_v56  ;;  %v10011_v6 = vsub.f32 %v9910_v12, %v1380_v40  ;;  %v10016_v3 = vsub.f32 %v9912_v21, %v1380_v40  ;;  %v7857_v12 = vcombine.low %v1594_v53, %v1598_v60  ;;  %v1602_v21 = vld [vmem:[#allocation7 + $0x300] sm:$0xff] }
 0x439   :  { %v1418_v46 = vmul.f32 %v9995_v42, %v9995_v42  ;;  %v1419_v47 = vmul.f32 %v9998_v27, %v9998_v27  ;;  %v1420_v13 = vmul.f32 %v10001_v35, %v10001_v35  ;;  %v1421_v16 = vmul.f32 %v10004_v63, %v10004_v63  ;;  %v1862_v40 = vld [vmem:[#allocation7 + $0xb20] sm:$0xff] }
 0x43a   :  { %3873 = vmatpush1.bf16.msra.mxu1 %v7849_v57  ;;  %v1422_v18 = vmul.f32 %v10011_v6, %v10011_v6  ;;  %v1423_v8 = vmul.f32 %v10016_v3, %v10016_v3  ;;  %v7866_v17 = vcombine.high %v1602_v21, %v1606_v26  ;;  %v7865_v19 = vcombine.low %v1602_v21, %v1606_v26  ;;  %v1866_v60 = vld [vmem:[#allocation7 + $0xb40] sm:$0xff]  ;;  %v10054_v21 = vld [vmem:[#allocation7 + $0x30] sm:$0xff] }
 0x43b   :  { %v1444_v62 = vadd.f32 %v1419_v47, %v1418_v46  ;;  %3874 = vmatprep.subr.bf16.mxu1 %v7858_v28  ;;  %v8121_v32 = vcombine.low %v1858_v38, %v1862_v40  ;;  %v8122_v34 = vcombine.high %v1858_v38, %v1862_v40  ;;  %v1870_v46 = vld [vmem:[#allocation7 + $0xb60] sm:$0xff] }
 0x43c   :  { %v1618_v47 = vld [vmem:[#allocation7 + $0x380] sm:$0xff]  ;;  %v8129_v28 = vcombine.low %v1866_v60, %v1870_v46  ;;  %v8130_v5 = vcombine.high %v1866_v60, %v1870_v46 }
 0x43d   :  { %v1445_v24 = vadd.f32 %v1444_v62, %v1420_v13  ;;  %3982 = vmatprep.subr.bf16.mxu0 %v8122_v34  ;;  %v1622_v57 = vld [vmem:[#allocation7 + $0x3a0] sm:$0xff] }
 0x43e   :  { %3875 = vmatpush1.bf16.msra.mxu1 %v7857_v12  ;;  %3983 = vmatpush1.bf16.msra.mxu0 %v8121_v32  ;;  %v1630_v13 = vld [vmem:[#allocation7 + $0x3e0] sm:$0xff] }
 0x43f   :  { %v1446_v4 = vadd.f32 %v1445_v24, %v1421_v16  ;;  %3876 = vmatprep.subr.bf16.mxu1 %v7866_v17  ;;  %v1882_v16 = vld [vmem:[#allocation7 + $0xbc0] sm:$0xff]  ;;  %3984 = vmatprep.subr.bf16.mxu0 %v8130_v5 }
 0x440   :  { %v1376_v37 = vpop.xlane.xlu1 %1375  ;;  %v10045_v24 = vld [vmem:[#allocation7 + $0x400] sm:$0xff] }
 0x441   :  { %v1381_v39 = vmul.f32 0.0013020834, %v1376_v37  ;;  %v1447_v11 = vadd.f32 %v1446_v4, %v1422_v18  ;;  %v10047_v12 = vld [vmem:[#allocation7 + $0x420] sm:$0xff]  ;;  %v8138_v18 = vcombine.high %v1874_v1, %v1878_v2  ;;  %v10052_v37 = vld [vmem:[#allocation7 + $0x10] sm:$0xff] }
 0x442   :  { %3877 = vmatpush1.bf16.msra.mxu1 %v7865_v19  ;;  %v1886_v4 = vld [vmem:[#allocation7 + $0xbe0] sm:$0xff]  ;;  %3985 = vmatpush1.bf16.msra.mxu0 %v8129_v28  ;;  %v7773_v32 = vcombine.low %v10052_v37, %v10054_v21  ;;  %v7898_v60 = vcombine.high %v10045_v24, %v10047_v12 }
 0x443   :  { %v1448_v45 = vadd.f32 %v1447_v11, %v1423_v8  ;;  %v10025_v48 = vsub.f32 %v9915_v30, %v1381_v39  ;;  %v10028_v43 = vsub.f32 %v9917_v31, %v1381_v39  ;;  %v10031_v56 = vsub.f32 %v9922_v44, %v1381_v39  ;;  %3986 = vmatprep.subr.bf16.mxu0 %v8138_v18  ;;  %v1642_v5 = vld [vmem:[#allocation7 + $0x440] sm:$0xff] }
 0x444   :  { %v10034_v53 = vsub.f32 %v9924_v25, %v1381_v39  ;;  %v7873_v44 = vcombine.low %v1610_v59, %v1614_v49  ;;  %v10041_v7 = vsub.f32 %v9927_v33, %v1381_v39  ;;  %v7874_v25 = vcombine.high %v1610_v59, %v1614_v49 }
 0x445   :  { %1449 = vadd.xlane.f32.xlu0 %v1448_v45  ;;  %v1424_v30 = vmul.f32 %v10025_v48, %v10025_v48  ;;  %v1425_v31 = vmul.f32 %v10028_v43, %v10028_v43  ;;  %v1426_v62 = vmul.f32 %v10031_v56, %v10031_v56  ;;  %v10050_v29 = vsub.f32 %v9930_v41, %v1381_v39 }
 0x446   :  { %3878 = vmatprep.subr.bf16.mxu1 %v7874_v25  ;;  %v7882_v33 = vcombine.high %v1618_v47, %v1622_v57  ;;  %v1427_v26 = vmul.f32 %v10034_v53, %v10034_v53  ;;  %v7881_v8 = vcombine.low %v1618_v47, %v1622_v57  ;;  %v8137_v11 = vcombine.low %v1874_v1, %v1878_v2 }
 0x447   :  { %v1451_v14 = vadd.f32 %v1425_v31, %v1424_v30  ;;  %3879 = vmatpush1.bf16.msra.mxu1 %v7873_v44  ;;  %v7890_v41 = vcombine.high %v1626_v10, %v1630_v13  ;;  %v7897_v39 = vcombine.low %v10045_v24, %v10047_v12  ;;  %v1428_v17 = vmul.f32 %v10041_v7, %v10041_v7  ;;  %v1646_v24 = vld [vmem:[#allocation7 + $0x460] sm:$0xff]  ;;  %v1520_v12 = vld [vmem:[#allocation7 + $0x70] sm:$0xff] }
 0x448   :  { %3880 = vmatprep.subr.bf16.mxu1 %v7882_v33  ;;  %v8146_v19 = vcombine.high %v1882_v16, %v1886_v4  ;;  %v1429_v34 = vmul.f32 %v10050_v29, %v10050_v29  ;;  %v7889_v59 = vcombine.low %v1626_v10, %v1630_v13  ;;  %3987 = vmatpush1.bf16.msra.mxu0 %v8137_v11 }
 0x449   :  { %v1452_v38 = vadd.f32 %v1451_v14, %v1426_v62  ;;  %v8145_v49 = vcombine.low %v1882_v16, %v1886_v4  ;;  %v7774_v47 = vcombine.high %v10052_v37, %v10054_v21  ;;  %v1650_v4 = vld [vmem:[#allocation7 + $0x480] sm:$0xff]  ;;  %v1524_v21 = vld [vmem:[#allocation7 + $0x90] sm:$0xff] }
 0x44a   :  { %3988 = vmatprep.subr.bf16.mxu0 %v8146_v19  ;;  %v1654_v37 = vld [vmem:[#allocation7 + $0x4a0] sm:$0xff] }
 0x44b   :  { %v1453_v40 = vadd.f32 %v1452_v38, %v1427_v26  ;;  %3881 = vmatpush1.bf16.msra.mxu1 %v7881_v8  ;;  %v1528_v26 = vld [vmem:[#allocation7 + $0xb0] sm:$0xff]  ;;  %v7905_v38 = vcombine.low %v1642_v5, %v1646_v24  ;;  %v1662_v19 = vld [vmem:[#allocation7 + $0x4e0] sm:$0xff] }
 0x44c   :  { %3882 = vmatprep.subr.bf16.mxu1 %v7890_v41  ;;  %3989 = vmatpush1.bf16.msra.mxu0 %v8145_v49  ;;  %v7914_v41 = vcombine.high %v1650_v4, %v1654_v37  ;;  %v7913_v49 = vcombine.low %v1650_v4, %v1654_v37 }
 0x44d   :  { %v1454_v45 = vadd.f32 %v1453_v40, %v1428_v17  ;;  %4170 = vmatprep.subr.bf16.mxu0 %v7774_v47  ;;  %v7790_v17 = vcombine.high %v1524_v21, %v1528_v26  ;;  %v1658_v40 = vld [vmem:[#allocation7 + $0x4c0] sm:$0xff] }
 0x44e   :  { %v1670_v47 = vld [vmem:[#allocation7 + $0x520] sm:$0xff] }
 0x44f   :  { %v1455_v46 = vadd.f32 %v1454_v45, %v1429_v34  ;;  %3883 = vmatpush1.bf16.msra.mxu1 %v7889_v59  ;;  %v1532_v34 = vld [vmem:[#allocation7 + $0xd0] sm:$0xff] }
 0x450   :  { %3905 = vmatprep.subr.bf16.mxu1 %v7898_v60  ;;  %v1536_v45 = vld [vmem:[#allocation7 + $0xf0] sm:$0xff]  ;;  %v7789_v60 = vcombine.low %v1524_v21, %v1528_v26 }
 0x451   :  { %1456 = vadd.xlane.f32.xlu1 %v1455_v46  ;;  %v1666_v46 = vld [vmem:[#allocation7 + $0x500] sm:$0xff] }
 0x452   :  { %v7929_v37 = vcombine.low %v1666_v46, %v1670_v47 }
 0x4b2   :  { %v1436_v30 = vpop.xlane.xlu0 %1435 }
 0x4b3   :  { %v1458_v31 = vmul.f32 0.0013020834, %v1436_v30  ;;  %v1540_v30 = vld [vmem:[#allocation7 + $0x110] sm:$0xff] }
 0x4b5   :  { %v1462_v44 = vadd.f32 1e-05, %v1458_v31  ;;  %v1544_v31 = vld [vmem:[#allocation7 + $0x130] sm:$0xff] }
 0x4b6   :  { %v7805_v21 = vcombine.low %v1540_v30, %v1544_v31 }
 0x4b7   :  { %9345 = vrsqrt.f32 %v1462_v44 }
 0x4be   :  { %v1443_v57 = vpop.xlane.xlu1 %1442 }
 0x4bf   :  { %v1459_v1 = vmul.f32 0.0013020834, %v1443_v57  ;;  %v7921_v57 = vcombine.low %v1658_v40, %v1662_v19 }
 0x4c1   :  { %v1463_v2 = vadd.f32 1e-05, %v1459_v1  ;;  %v10070_v25 = vpop.eup %9345  ;;  %v7797_v1 = vcombine.low %v1532_v34, %v1536_v45 }
 0x4c2   :  { %v10076_v13 = vmul.f32 %v10070_v25, %v9938_v51  ;;  %v10080_v62 = vmul.f32 %v10070_v25, %v9956_v0  ;;  %v10084_v14 = vmul.f32 %v10070_v25, %v9935_v50  ;;  %v10088_v28 = vmul.f32 %v10070_v25, %v9951_v61  ;;  %v1516_v61 = vld [vmem:[#allocation7 + $0x50] sm:$0xff] }
 0x4c3   :  { %9347 = vrsqrt.f32 %v1463_v2  ;;  %v7782_v18 = vcombine.high %v1516_v61, %v1520_v12  ;;  %v7781_v8 = vcombine.low %v1516_v61, %v1520_v12  ;;  %v7930_v2 = vcombine.high %v1666_v46, %v1670_v47  ;;  %v1678_v12 = vld [vmem:[#allocation7 + $0x560] sm:$0xff] }
 0x4cd   :  { %v10072_v10 = vpop.eup %9347 }
 0x4ce   :  { %v10092_v16 = vmul.f32 %v10072_v10, %v9968_v15  ;;  %v10096_v51 = vmul.f32 %v10072_v10, %v9986_v36  ;;  %v10100_v0 = vmul.f32 %v10072_v10, %v9965_v20  ;;  %v10104_v50 = vmul.f32 %v10072_v10, %v9981_v9 }
 0x4cf   :  { %v7906_v9 = vcombine.high %v1642_v5, %v1646_v24  ;;  %v7806_v5 = vcombine.high %v1540_v30, %v1544_v31  ;;  %v1674_v24 = vld [vmem:[#allocation7 + $0x540] sm:$0xff] }
 0x4d0   :  { %10678 = vst [vmem:[#allocation19_spill] sm:$0xff] %v10096_v51  ;;  %10679 = vst [vmem:[#allocation20_spill] sm:$0xff] %v10104_v50  ;;  %v10108_v33 = vpack.c.bf16 %v10092_v16, %v10076_v13  ;;  %v10112_v15 = vpack.c.bf16 %v10096_v51, %v10080_v62  ;;  %v10116_v36 = vpack.c.bf16 %v10100_v0, %v10084_v14  ;;  %v1698_v30 = vld [vmem:[#allocation7 + $0x600] sm:$0xff] }
 0x4d1   :  { %v10120_v20 = vpack.c.bf16 %v10104_v50, %v10088_v28 }
 0x4d2   :  { %3884 = vmatprep.mubr.bf16.mxu1 %v10108_v33  ;;  %3990 = vmatprep.mubr.bf16.mxu0 %v10112_v15  ;;  %v1450_v11 = vpop.xlane.xlu0 %1449 }
 0x4d3   :  { %3885 = vmatmul.mubr.bf16.vlgmr.msra.gmra.mrb[32].mxu1 %v10116_v36  ;;  %3991 = vmatmul.mubr.bf16.vlgmr.msra.gmra.mrb[32].mxu0 %v10120_v20  ;;  %v1460_v59 = vmul.f32 0.0013020834, %v1450_v11  ;;  %v1682_v11 = vld [vmem:[#allocation7 + $0x580] sm:$0xff] }
 0x4d4   :  { %3906 = vmatpush1.bf16.msra.mxu1 %v7897_v39  ;;  %4171 = vmatpush1.bf16.msra.mxu0 %v7773_v32  ;;  %v7922_v39 = vcombine.high %v1658_v40, %v1662_v19  ;;  %v7798_v32 = vcombine.high %v1532_v34, %v1536_v45  ;;  %v1560_v40 = vld [vmem:[#allocation7 + $0x1b0] sm:$0xff]  ;;  %v7937_v19 = vcombine.low %v1674_v24, %v1678_v12 }
 0x4d5   :  { %3907 = vmatprep.subr.bf16.mxu1 %v7906_v9  ;;  %4172 = vmatprep.subr.bf16.mxu0 %v7782_v18  ;;  %v1464_v44 = vadd.f32 1e-05, %v1460_v59  ;;  %v1548_v9 = vld [vmem:[#allocation7 + $0x150] sm:$0xff] }
 0x4d6   :  { %v1552_v18 = vld [vmem:[#allocation7 + $0x170] sm:$0xff] }
 0x4d7   :  { %9349 = vrsqrt.f32 %v1464_v44  ;;  %v7813_v34 = vcombine.low %v1548_v9, %v1552_v18 }
 0x4d8   :  { %3908 = vmatpush1.bf16.msra.mxu1 %v7905_v38  ;;  %4173 = vmatpush1.bf16.msra.mxu0 %v7781_v8  ;;  %v7938_v38 = vcombine.high %v1674_v24, %v1678_v12  ;;  %v7814_v8 = vcombine.high %v1548_v9, %v1552_v18 }
 0x4d9   :  { %3909 = vmatprep.subr.bf16.mxu1 %v7914_v41  ;;  %4174 = vmatprep.subr.bf16.mxu0 %v7790_v17  ;;  %v1686_v41 = vld [vmem:[#allocation7 + $0x5a0] sm:$0xff]  ;;  %v1556_v17 = vld [vmem:[#allocation7 + $0x190] sm:$0xff] }
 0x4da   :  { %v7946_v45 = vcombine.high %v1682_v11, %v1686_v41  ;;  %v7822_v59 = vcombine.high %v1556_v17, %v1560_v40  ;;  %v7945_v46 = vcombine.low %v1682_v11, %v1686_v41  ;;  %v7821_v47 = vcombine.low %v1556_v17, %v1560_v40  ;;  %v1580_v17 = vld [vmem:[#allocation7 + $0x250] sm:$0xff] }
 0x4db   :  { %v1584_v40 = vld [vmem:[#allocation7 + $0x270] sm:$0xff] }
 0x4dc   :  { %3910 = vmatpush1.bf16.msra.mxu1 %v7913_v49  ;;  %4175 = vmatpush1.bf16.msra.mxu0 %v7789_v60  ;;  %v1690_v49 = vld [vmem:[#allocation7 + $0x5c0] sm:$0xff] }
 0x4dd   :  { %3911 = vmatprep.subr.bf16.mxu1 %v7922_v39  ;;  %4176 = vmatprep.subr.bf16.mxu0 %v7798_v32  ;;  %v1694_v60 = vld [vmem:[#allocation7 + $0x5e0] sm:$0xff]  ;;  %v1564_v39 = vld [vmem:[#allocation7 + $0x1d0] sm:$0xff] }
 0x4de   :  { %v1457_v61 = vpop.xlane.xlu1 %1456  ;;  %v1568_v32 = vld [vmem:[#allocation7 + $0x1f0] sm:$0xff]  ;;  %v7954_v31 = vcombine.high %v1690_v49, %v1694_v60  ;;  %v7953_v24 = vcombine.low %v1690_v49, %v1694_v60  ;;  %v1718_v49 = vld [vmem:[#allocation7 + $0x6a0] sm:$0xff] }
 0x4df   :  { %v1461_v4 = vmul.f32 0.0013020834, %v1457_v61  ;;  %v7830_v44 = vcombine.high %v1564_v39, %v1568_v32  ;;  %v7829_v61 = vcombine.low %v1564_v39, %v1568_v32  ;;  %v1588_v60 = vld [vmem:[#allocation7 + $0x290] sm:$0xff] }
 0x4e0   :  { %3912 = vmatpush1.bf16.msra.mxu1 %v7921_v57  ;;  %4177 = vmatpush1.bf16.msra.mxu0 %v7797_v1  ;;  %v1702_v57 = vld [vmem:[#allocation7 + $0x620] sm:$0xff]  ;;  %v1572_v1 = vld [vmem:[#allocation7 + $0x210] sm:$0xff] }
 0x4e1   :  { %v1465_v26 = vadd.f32 1e-05, %v1461_v4  ;;  %3913 = vmatprep.subr.bf16.mxu1 %v7930_v2  ;;  %4178 = vmatprep.subr.bf16.mxu0 %v7806_v5  ;;  %v1576_v2 = vld [vmem:[#allocation7 + $0x230] sm:$0xff]  ;;  %v10126_v5 = vpop.eup %9349  ;;  %v7962_v12 = vcombine.high %v1698_v30, %v1702_v57  ;;  %v7961_v11 = vcombine.low %v1698_v30, %v1702_v57 }
 0x4e2   :  { %v7838_v9 = vcombine.high %v1572_v1, %v1576_v2  ;;  %v10132_v4 = vmul.f32 %v10126_v5, %v9998_v27  ;;  %v10160_v41 = vmul.f32 %v10126_v5, %v10011_v6  ;;  %v1592_v39 = vld [vmem:[#allocation7 + $0x2b0] sm:$0xff] }
 0x4e3   :  { %9351 = vrsqrt.f32 %v1465_v26  ;;  %v7854_v30 = vcombine.high %v1588_v60, %v1592_v39  ;;  %v1596_v57 = vld [vmem:[#allocation7 + $0x2d0] sm:$0xff] }
 0x4e4   :  { %3914 = vmatpush1.bf16.msra.mxu1 %v7929_v37  ;;  %4179 = vmatpush1.bf16.msra.mxu0 %v7805_v21  ;;  %v10136_v37 = vmul.f32 %v10126_v5, %v10016_v3  ;;  %v10140_v21 = vmul.f32 %v10126_v5, %v9995_v42  ;;  %v7837_v42 = vcombine.low %v1572_v1, %v1576_v2  ;;  %v1600_v1 = vld [vmem:[#allocation7 + $0x2f0] sm:$0xff] }
 0x4e5   :  { %3915 = vmatprep.subr.bf16.mxu1 %v7938_v38  ;;  %4180 = vmatprep.subr.bf16.mxu0 %v7814_v8  ;;  %v1706_v8 = vld [vmem:[#allocation7 + $0x640] sm:$0xff]  ;;  %10683 = vst [vmem:[#allocation24_spill] sm:$0xff] %v10160_v41 }
 0x4e6   :  { %10680 = vst [vmem:[#allocation21_spill] sm:$0xff] %v10136_v37 }
 0x4e8   :  { %3916 = vmatpush1.bf16.msra.mxu1 %v7937_v19  ;;  %4181 = vmatpush1.bf16.msra.mxu0 %v7813_v34  ;;  %v10184_v19 = vmul.f32 %v10070_v25, %v9944_v55  ;;  %v1714_v34 = vld [vmem:[#allocation7 + $0x680] sm:$0xff] }
 0x4e9   :  { %3917 = vmatprep.subr.bf16.mxu1 %v7946_v45  ;;  %4182 = vmatprep.subr.bf16.mxu0 %v7822_v59  ;;  %v7846_v59 = vcombine.high %v1580_v17, %v1584_v40  ;;  %v7977_v2 = vcombine.low %v1714_v34, %v1718_v49 }
 0x4ec   :  { %3918 = vmatpush1.bf16.msra.mxu1 %v7945_v46  ;;  %4183 = vmatpush1.bf16.msra.mxu0 %v7821_v47  ;;  %v7845_v46 = vcombine.low %v1580_v17, %v1584_v40  ;;  %v7978_v47 = vcombine.high %v1714_v34, %v1718_v49  ;;  %v7861_v17 = vcombine.low %v1596_v57, %v1600_v1  ;;  %v1612_v34 = vld [vmem:[#allocation7 + $0x350] sm:$0xff] }
 0x4ed   :  { %v10128_v18 = vpop.eup %9351  ;;  %3919 = vmatprep.subr.bf16.mxu1 %v7954_v31  ;;  %4184 = vmatprep.subr.bf16.mxu0 %v7830_v44  ;;  %v1722_v31 = vld [vmem:[#allocation7 + $0x6c0] sm:$0xff]  ;;  %v1616_v49 = vld [vmem:[#allocation7 + $0x370] sm:$0xff] }
 0x4ee   :  { %v10144_v26 = vmul.f32 %v10128_v18, %v10028_v43  ;;  %v10148_v38 = vmul.f32 %v10128_v18, %v10050_v29  ;;  %v10152_v27 = vmul.f32 %v10128_v18, %v10025_v48  ;;  %v10156_v3 = vmul.f32 %v10128_v18, %v10041_v7  ;;  %v1710_v29 = vld [vmem:[#allocation7 + $0x660] sm:$0xff] }
 0x4ef   :  { %v10164_v43 = vmul.f32 %v10072_v10, %v9974_v23  ;;  %v7970_v45 = vcombine.high %v1706_v8, %v1710_v29  ;;  %v7969_v55 = vcombine.low %v1706_v8, %v1710_v29  ;;  %v1726_v44 = vld [vmem:[#allocation7 + $0x6e0] sm:$0xff] }
 0x4f0   :  { %10681 = vst [vmem:[#allocation22_spill] sm:$0xff] %v10148_v38  ;;  %10682 = vst [vmem:[#allocation23_spill] sm:$0xff] %v10156_v3  ;;  %3920 = vmatpush1.bf16.msra.mxu1 %v7953_v24  ;;  %4185 = vmatpush1.bf16.msra.mxu0 %v7829_v61  ;;  %v10168_v48 = vpack.c.bf16 %v10144_v26, %v10132_v4  ;;  %v10172_v7 = vpack.c.bf16 %v10148_v38, %v10136_v37  ;;  %v1734_v8 = vld [vmem:[#allocation7 + $0x720] sm:$0xff]  ;;  %v1521_v38 = vld [vmem:[#allocation7 + $0x78] sm:$0xff] }
 0x4f1   :  { %v10176_v6 = vpack.c.bf16 %v10152_v27, %v10140_v21  ;;  %3921 = vmatprep.subr.bf16.mxu1 %v7962_v12  ;;  %4186 = vmatprep.subr.bf16.mxu0 %v7838_v9  ;;  %v10180_v23 = vpack.c.bf16 %v10156_v3, %v10160_v41  ;;  %v10192_v32 = vpack.c.bf16 %v10164_v43, %v10184_v19  ;;  %v1730_v9 = vld [vmem:[#allocation7 + $0x700] sm:$0xff] }
 0x4f2   :  { %3894 = vmatprep.mubr.bf16.mxu1 %v10168_v48  ;;  %4000 = vmatprep.mubr.bf16.mxu0 %v10172_v7  ;;  %v7853_v24 = vcombine.low %v1588_v60, %v1592_v39  ;;  %v7986_v61 = vcombine.high %v1722_v31, %v1726_v44  ;;  %v7862_v12 = vcombine.high %v1596_v57, %v1600_v1 }
 0x4f3   :  { %3895 = vmatmul.mubr.bf16.gmra.mrb[36].mxu1 %v10176_v6  ;;  %4001 = vmatmul.mubr.bf16.gmra.mrb[36].mxu0 %v10180_v23  ;;  %v7985_v29 = vcombine.low %v1722_v31, %v1726_v44  ;;  %v7994_v40 = vcombine.high %v1730_v9, %v1734_v8  ;;  %v7993_v60 = vcombine.low %v1730_v9, %v1734_v8  ;;  %v1620_v31 = vld [vmem:[#allocation7 + $0x390] sm:$0xff] }
 0x4f4   :  { %3922 = vmatpush1.bf16.msra.mxu1 %v7961_v11  ;;  %4187 = vmatpush1.bf16.msra.mxu0 %v7837_v42  ;;  %v1604_v11 = vld [vmem:[#allocation7 + $0x310] sm:$0xff]  ;;  %v7877_v1 = vcombine.low %v1612_v34, %v1616_v49 }
 0x4f5   :  { %3937 = vmatprep.mubr.bf16.mxu1 %v10192_v32  ;;  %4202 = vmatprep.mubr.bf16.mxu0 %v10108_v33  ;;  %v1608_v42 = vld [vmem:[#allocation7 + $0x330] sm:$0xff] }
 0x4f6   :  { %3923 = vmatprep.subr.bf16.mxu1 %v7970_v45  ;;  %4188 = vmatprep.subr.bf16.mxu0 %v7846_v59  ;;  %v7870_v45 = vcombine.high %v1604_v11, %v1608_v42  ;;  %v1738_v59 = vld [vmem:[#allocation7 + $0x740] sm:$0xff]  ;;  %v7869_v39 = vcombine.low %v1604_v11, %v1608_v42  ;;  %v1624_v44 = vld [vmem:[#allocation7 + $0x3b0] sm:$0xff] }
 0x4f7   :  { %v1628_v9 = vld [vmem:[#allocation7 + $0x3d0] sm:$0xff]  ;;  %v7885_v42 = vcombine.low %v1620_v31, %v1624_v44 }
 0x4f8   :  { %3924 = vmatpush1.bf16.msra.mxu1 %v7969_v55  ;;  %4189 = vmatpush1.bf16.msra.mxu0 %v7845_v46  ;;  %v1742_v55 = vld [vmem:[#allocation7 + $0x760] sm:$0xff]  ;;  %v1632_v8 = vld [vmem:[#allocation7 + $0x3f0] sm:$0xff] }
 0x4f9   :  { %3925 = vmatprep.subr.bf16.mxu1 %v7978_v47  ;;  %4190 = vmatprep.subr.bf16.mxu0 %v7854_v30  ;;  %v8002_v46 = vcombine.high %v1738_v59, %v1742_v55  ;;  %v7878_v47 = vcombine.high %v1612_v34, %v1616_v49  ;;  %v1746_v30 = vld [vmem:[#allocation7 + $0x780] sm:$0xff]  ;;  %v8001_v57 = vcombine.low %v1738_v59, %v1742_v55  ;;  %v1636_v59 = vld [vmem:[#allocation7 + $0x410] sm:$0xff] }
 0x4fa   :  { %v1640_v55 = vld [vmem:[#allocation7 + $0x430] sm:$0xff]  ;;  %v7893_v49 = vcombine.low %v1628_v9, %v1632_v8 }
 0x4fc   :  { %3926 = vmatpush1.bf16.msra.mxu1 %v7977_v2  ;;  %4191 = vmatpush1.bf16.msra.mxu0 %v7853_v24  ;;  %v1750_v2 = vld [vmem:[#allocation7 + $0x7a0] sm:$0xff] }
 0x4fd   :  { %3927 = vmatprep.subr.bf16.mxu1 %v7986_v61  ;;  %4192 = vmatprep.subr.bf16.mxu0 %v7862_v12  ;;  %v8010_v24 = vcombine.high %v1746_v30, %v1750_v2  ;;  %v7886_v61 = vcombine.high %v1620_v31, %v1624_v44  ;;  %v1754_v12 = vld [vmem:[#allocation7 + $0x7c0] sm:$0xff]  ;;  %v8009_v11 = vcombine.low %v1746_v30, %v1750_v2  ;;  %v1515_v2 = vld [vmem:[#allocation7 + $0x48] sm:$0xff] }
 0x4fe   :  { %v10202_v30 = vmul.f32 %v10128_v18, %v10034_v53  ;;  %v10206_v31 = vmul.f32 %v10070_v25, %v9941_v54  ;;  %v1519_v44 = vld [vmem:[#allocation7 + $0x68] sm:$0xff]  ;;  %v7901_v53 = vcombine.low %v1636_v59, %v1640_v55 }
 0x4ff   :  { %v7780_v25 = vcombine.high %v1515_v2, %v1519_v44 }
 0x500   :  { %3928 = vmatpush1.bf16.msra.mxu1 %v7985_v29  ;;  %4193 = vmatpush1.bf16.msra.mxu0 %v7861_v17  ;;  %v1758_v29 = vld [vmem:[#allocation7 + $0x7e0] sm:$0xff]  ;;  %10684 = vst [vmem:[#allocation25_spill] sm:$0xff] %v10202_v30 }
 0x501   :  { %3929 = vmatprep.subr.bf16.mxu1 %v7994_v40  ;;  %4194 = vmatprep.subr.bf16.mxu0 %v7870_v45  ;;  %v8018_v17 = vcombine.high %v1754_v12, %v1758_v29  ;;  %v7894_v40 = vcombine.high %v1628_v9, %v1632_v8  ;;  %v1507_v45 = vld [vmem:[#allocation7 + $0x8] sm:$0xff]  ;;  %v8017_v34 = vcombine.low %v1754_v12, %v1758_v29  ;;  %v1656_v9 = vld [vmem:[#allocation7 + $0x4b0] sm:$0xff] }
 0x502   :  { %v1523_v12 = vld [vmem:[#allocation7 + $0x88] sm:$0xff]  ;;  %v7779_v8 = vcombine.low %v1515_v2, %v1519_v44 }
 0x503   :  { %v1527_v29 = vld [vmem:[#allocation7 + $0xa8] sm:$0xff] }
 0x504   :  { %3930 = vmatpush1.bf16.msra.mxu1 %v7993_v60  ;;  %4195 = vmatpush1.bf16.msra.mxu0 %v7869_v39  ;;  %v1511_v60 = vld [vmem:[#allocation7 + $0x28] sm:$0xff]  ;;  %v10198_v39 = vmul.f32 %v10072_v10, %v9971_v22  ;;  %v10210_v22 = vmul.f32 %v10126_v5, %v10004_v63  ;;  %v1652_v63 = vld [vmem:[#allocation7 + $0x490] sm:$0xff] }
 0x505   :  { %3931 = vmatprep.subr.bf16.mxu1 %v8002_v46  ;;  %4196 = vmatprep.subr.bf16.mxu0 %v7878_v47  ;;  %v7772_v46 = vcombine.high %v1507_v45, %v1511_v60  ;;  %v7902_v47 = vcombine.high %v1636_v59, %v1640_v55  ;;  %v1535_v59 = vld [vmem:[#allocation7 + $0xe8] sm:$0xff]  ;;  %v1660_v55 = vld [vmem:[#allocation7 + $0x4d0] sm:$0xff] }
 0x506   :  { %10685 = vst [vmem:[#allocation26_spill] sm:$0xff] %v10210_v22  ;;  %v10214_v10 = vpack.c.bf16 %v10198_v39, %v10206_v31  ;;  %v10218_v54 = vpack.c.bf16 %v10202_v30, %v10210_v22  ;;  %v1539_v2 = vld [vmem:[#allocation7 + $0x108] sm:$0xff] }
 0x507   :  { %v1543_v44 = vld [vmem:[#allocation7 + $0x128] sm:$0xff] }
 0x508   :  { %3932 = vmatpush1.bf16.msra.mxu1 %v8001_v57  ;;  %4197 = vmatpush1.bf16.msra.mxu0 %v7877_v1  ;;  %v1644_v57 = vld [vmem:[#allocation7 + $0x450] sm:$0xff] }
 0x509   :  { %3933 = vmatprep.subr.bf16.mxu1 %v8010_v24  ;;  %4198 = vmatprep.subr.bf16.mxu0 %v7886_v61  ;;  %v1648_v1 = vld [vmem:[#allocation7 + $0x470] sm:$0xff]  ;;  %v7771_v24 = vcombine.low %v1507_v45, %v1511_v60  ;;  %v1531_v45 = vld [vmem:[#allocation7 + $0xc8] sm:$0xff]  ;;  %v10230_v60 = vmul.f32 %v10126_v5, %v10001_v35 }
 0x50a   :  { %v7910_v61 = vcombine.high %v1644_v57, %v1648_v1  ;;  %v1668_v35 = vld [vmem:[#allocation7 + $0x510] sm:$0xff] }
 0x50b   :  { %v1672_v5 = vld [vmem:[#allocation7 + $0x530] sm:$0xff] }
 0x50c   :  { %3934 = vmatpush1.bf16.msra.mxu1 %v8009_v11  ;;  %4199 = vmatpush1.bf16.msra.mxu0 %v7885_v42  ;;  %v7909_v11 = vcombine.low %v1644_v57, %v1648_v1  ;;  %v10226_v42 = vmul.f32 %v10128_v18, %v10031_v56  ;;  %v7917_v56 = vcombine.low %v1652_v63, %v1656_v9 }
 0x50d   :  { %3935 = vmatprep.subr.bf16.mxu1 %v8018_v17  ;;  %4200 = vmatprep.subr.bf16.mxu0 %v7894_v40  ;;  %v7788_v17 = vcombine.high %v1523_v12, %v1527_v29  ;;  %v7918_v40 = vcombine.high %v1652_v63, %v1656_v9  ;;  %v7796_v18 = vcombine.high %v1531_v45, %v1535_v59 }
 0x50e   :  { %v7795_v57 = vcombine.low %v1531_v45, %v1535_v59  ;;  %v7803_v63 = vcombine.low %v1539_v2, %v1543_v44  ;;  %v7933_v9 = vcombine.low %v1668_v35, %v1672_v5  ;;  %v1684_v45 = vld [vmem:[#allocation7 + $0x590] sm:$0xff] }
 0x50f   :  { %v1688_v59 = vld [vmem:[#allocation7 + $0x5b0] sm:$0xff] }
 0x510   :  { %3936 = vmatpush1.bf16.msra.mxu1 %v8017_v34  ;;  %4201 = vmatpush1.bf16.msra.mxu0 %v7893_v49  ;;  %v1664_v34 = vld [vmem:[#allocation7 + $0x4f0] sm:$0xff]  ;;  %v7787_v49 = vcombine.low %v1523_v12, %v1527_v29 }
 0x511   :  { %4011 = vmatprep.subr.bf16.mxu1 %v7772_v46  ;;  %4223 = vmatprep.subr.bf16.mxu0 %v7902_v47  ;;  %v10234_v46 = vpack.c.bf16 %v10226_v42, %v10230_v60  ;;  %v7926_v47 = vcombine.high %v1660_v55, %v1664_v34  ;;  %v7925_v1 = vcombine.low %v1660_v55, %v1664_v34  ;;  %v1676_v12 = vld [vmem:[#allocation7 + $0x550] sm:$0xff] }
 0x512   :  { %v1680_v29 = vld [vmem:[#allocation7 + $0x570] sm:$0xff] }
 0x513   :  { %3938 = vmatmul.mubr.bf16.vlgmr.msra.gmra.mrb[32].mxu1 %v10214_v10  ;;  %4203 = vmatmul.mubr.bf16.vlgmr.msra.gmra.mrb[40].mxu0 %v10116_v36  ;;  %v7941_v34 = vcombine.low %v1676_v12, %v1680_v29 }
 0x514   :  { %3947 = vmatprep.mubr.bf16.mxu1 %v10218_v54  ;;  %4012 = vmatpush1.bf16.msra.mxu1 %v7771_v24  ;;  %v7804_v24 = vcombine.high %v1539_v2, %v1543_v44  ;;  %v1692_v2 = vld [vmem:[#allocation7 + $0x5d0] sm:$0xff] }
 0x515   :  { %4212 = vmatprep.mubr.bf16.mxu0 %v10168_v48  ;;  %4224 = vmatpush1.bf16.msra.mxu0 %v7901_v53  ;;  %v7934_v53 = vcombine.high %v1668_v35, %v1672_v5  ;;  %v1696_v44 = vld [vmem:[#allocation7 + $0x5f0] sm:$0xff]  ;;  %v7949_v5 = vcombine.low %v1684_v45, %v1688_v59 }
 0x516   :  { %4013 = vmatprep.subr.bf16.mxu1 %v7780_v25  ;;  %4225 = vmatprep.subr.bf16.mxu0 %v7910_v61  ;;  %v1547_v25 = vld [vmem:[#allocation7 + $0x148] sm:$0xff] }
 0x517   :  { %v1551_v61 = vld [vmem:[#allocation7 + $0x168] sm:$0xff] }
 0x518   :  { %4014 = vmatpush1.bf16.msra.mxu1 %v7779_v8  ;;  %v7812_v8 = vcombine.high %v1547_v25, %v1551_v61  ;;  %v7811_v55 = vcombine.low %v1547_v25, %v1551_v61  ;;  %v1700_v25 = vld [vmem:[#allocation7 + $0x610] sm:$0xff] }
 0x519   :  { %4226 = vmatpush1.bf16.msra.mxu0 %v7909_v11  ;;  %4015 = vmatprep.subr.bf16.mxu1 %v7788_v17  ;;  %v7942_v11 = vcombine.high %v1676_v12, %v1680_v29  ;;  %v1555_v17 = vld [vmem:[#allocation7 + $0x188] sm:$0xff]  ;;  %v1704_v61 = vld [vmem:[#allocation7 + $0x630] sm:$0xff]  ;;  %v7957_v29 = vcombine.low %v1692_v2, %v1696_v44 }
 0x51a   :  { %4227 = vmatprep.subr.bf16.mxu0 %v7918_v40  ;;  %v1559_v40 = vld [vmem:[#allocation7 + $0x1a8] sm:$0xff] }
 0x51b   :  { %3948 = vmatmul.mubr.bf16.gmra.mrb[36].mxu1 %v10234_v46  ;;  %4213 = vmatmul.mubr.bf16.gmra.mrb[44].mxu0 %v10176_v6  ;;  %v7819_v35 = vcombine.low %v1555_v17, %v1559_v40 }
 0x51c   :  { %4016 = vmatpush1.bf16.msra.mxu1 %v7787_v49  ;;  %4043 = vmatprep.mubr.bf16.mxu1 %v10108_v33  ;;  %v7820_v49 = vcombine.high %v1555_v17, %v1559_v40  ;;  %v1708_v17 = vld [vmem:[#allocation7 + $0x650] sm:$0xff] }
 0x51d   :  { %4228 = vmatpush1.bf16.msra.mxu0 %v7917_v56  ;;  %4255 = vmatprep.mubr.bf16.mxu0 %v10192_v32  ;;  %v7950_v56 = vcombine.high %v1684_v45, %v1688_v59  ;;  %v1712_v40 = vld [vmem:[#allocation7 + $0x670] sm:$0xff]  ;;  %v7965_v59 = vcombine.low %v1700_v25, %v1704_v61 }
 0x51e   :  { %4017 = vmatprep.subr.bf16.mxu1 %v7796_v18  ;;  %4229 = vmatprep.subr.bf16.mxu0 %v7926_v47  ;;  %v1563_v18 = vld [vmem:[#allocation7 + $0x1c8] sm:$0xff] }
 0x51f   :  { %v1567_v47 = vld [vmem:[#allocation7 + $0x1e8] sm:$0xff] }
 0x520   :  { %4018 = vmatpush1.bf16.msra.mxu1 %v7795_v57  ;;  %v7828_v57 = vcombine.high %v1563_v18, %v1567_v47  ;;  %v7827_v12 = vcombine.low %v1563_v18, %v1567_v47  ;;  %v1716_v18 = vld [vmem:[#allocation7 + $0x690] sm:$0xff] }
 0x521   :  { %4230 = vmatpush1.bf16.msra.mxu0 %v7925_v1  ;;  %4019 = vmatprep.subr.bf16.mxu1 %v7804_v24  ;;  %v7958_v1 = vcombine.high %v1692_v2, %v1696_v44  ;;  %v1571_v24 = vld [vmem:[#allocation7 + $0x208] sm:$0xff]  ;;  %v1720_v47 = vld [vmem:[#allocation7 + $0x6b0] sm:$0xff]  ;;  %v7973_v44 = vcombine.low %v1708_v17, %v1712_v40 }
 0x522   :  { %4231 = vmatprep.subr.bf16.mxu0 %v7934_v53  ;;  %v1575_v53 = vld [vmem:[#allocation7 + $0x228] sm:$0xff] }
 0x523   :  { %v7835_v45 = vcombine.low %v1571_v24, %v1575_v53 }
 0x524   :  { %4020 = vmatpush1.bf16.msra.mxu1 %v7803_v63  ;;  %v7836_v63 = vcombine.high %v1571_v24, %v1575_v53  ;;  %v1724_v24 = vld [vmem:[#allocation7 + $0x6d0] sm:$0xff] }
 0x525   :  { %4232 = vmatpush1.bf16.msra.mxu0 %v7933_v9  ;;  %4021 = vmatprep.subr.bf16.mxu1 %v7812_v8  ;;  %v7966_v9 = vcombine.high %v1700_v25, %v1704_v61  ;;  %v1579_v8 = vld [vmem:[#allocation7 + $0x248] sm:$0xff]  ;;  %v1728_v53 = vld [vmem:[#allocation7 + $0x6f0] sm:$0xff]  ;;  %v7981_v61 = vcombine.low %v1716_v18, %v1720_v47 }
 0x526   :  { %4233 = vmatprep.subr.bf16.mxu0 %v7942_v11  ;;  %v1583_v11 = vld [vmem:[#allocation7 + $0x268] sm:$0xff] }
 0x527   :  { %v7843_v2 = vcombine.low %v1579_v8, %v1583_v11 }
 0x528   :  { %4022 = vmatpush1.bf16.msra.mxu1 %v7811_v55  ;;  %v7844_v55 = vcombine.high %v1579_v8, %v1583_v11  ;;  %v1732_v8 = vld [vmem:[#allocation7 + $0x710] sm:$0xff] }
 0x529   :  { %4234 = vmatpush1.bf16.msra.mxu0 %v7941_v34  ;;  %4023 = vmatprep.subr.bf16.mxu1 %v7820_v49  ;;  %v7974_v34 = vcombine.high %v1708_v17, %v1712_v40  ;;  %v1587_v49 = vld [vmem:[#allocation7 + $0x288] sm:$0xff]  ;;  %v1736_v11 = vld [vmem:[#allocation7 + $0x730] sm:$0xff]  ;;  %v7989_v40 = vcombine.low %v1724_v24, %v1728_v53 }
 0x52a   :  { %4235 = vmatprep.subr.bf16.mxu0 %v7950_v56  ;;  %v1591_v56 = vld [vmem:[#allocation7 + $0x2a8] sm:$0xff] }
 0x52b   :  { %v7851_v25 = vcombine.low %v1587_v49, %v1591_v56 }
 0x52c   :  { %4024 = vmatpush1.bf16.msra.mxu1 %v7819_v35  ;;  %v7852_v35 = vcombine.high %v1587_v49, %v1591_v56  ;;  %v1740_v49 = vld [vmem:[#allocation7 + $0x750] sm:$0xff] }
 0x52d   :  { %4236 = vmatpush1.bf16.msra.mxu0 %v7949_v5  ;;  %4025 = vmatprep.subr.bf16.mxu1 %v7828_v57  ;;  %v7982_v5 = vcombine.high %v1716_v18, %v1720_v47  ;;  %v1595_v57 = vld [vmem:[#allocation7 + $0x2c8] sm:$0xff]  ;;  %v1744_v56 = vld [vmem:[#allocation7 + $0x770] sm:$0xff]  ;;  %v7997_v47 = vcombine.low %v1732_v8, %v1736_v11 }
 0x52e   :  { %4237 = vmatprep.subr.bf16.mxu0 %v7958_v1  ;;  %v1599_v1 = vld [vmem:[#allocation7 + $0x2e8] sm:$0xff] }
 0x52f   :  { %v7859_v17 = vcombine.low %v1595_v57, %v1599_v1 }
 0x530   :  { %4026 = vmatpush1.bf16.msra.mxu1 %v7827_v12  ;;  %v7860_v12 = vcombine.high %v1595_v57, %v1599_v1  ;;  %v1748_v57 = vld [vmem:[#allocation7 + $0x790] sm:$0xff] }
 0x531   :  { %4238 = vmatpush1.bf16.msra.mxu0 %v7957_v29  ;;  %4027 = vmatprep.subr.bf16.mxu1 %v7836_v63  ;;  %v7990_v29 = vcombine.high %v1724_v24, %v1728_v53  ;;  %v1603_v63 = vld [vmem:[#allocation7 + $0x308] sm:$0xff]  ;;  %v1752_v1 = vld [vmem:[#allocation7 + $0x7b0] sm:$0xff]  ;;  %v8005_v53 = vcombine.low %v1740_v49, %v1744_v56 }
 0x532   :  { %4239 = vmatprep.subr.bf16.mxu0 %v7966_v9  ;;  %v1607_v9 = vld [vmem:[#allocation7 + $0x328] sm:$0xff] }
 0x533   :  { %v7867_v18 = vcombine.low %v1603_v63, %v1607_v9 }
 0x534   :  { %4028 = vmatpush1.bf16.msra.mxu1 %v7835_v45  ;;  %v7868_v45 = vcombine.high %v1603_v63, %v1607_v9  ;;  %v1756_v63 = vld [vmem:[#allocation7 + $0x7d0] sm:$0xff] }
 0x535   :  { %4240 = vmatpush1.bf16.msra.mxu0 %v7965_v59  ;;  %4029 = vmatprep.subr.bf16.mxu1 %v7844_v55  ;;  %v7998_v59 = vcombine.high %v1732_v8, %v1736_v11  ;;  %v1611_v55 = vld [vmem:[#allocation7 + $0x348] sm:$0xff]  ;;  %v1760_v9 = vld [vmem:[#allocation7 + $0x7f0] sm:$0xff]  ;;  %v8013_v11 = vcombine.low %v1748_v57, %v1752_v1 }
 0x536   :  { %4241 = vmatprep.subr.bf16.mxu0 %v7974_v34  ;;  %v1615_v34 = vld [vmem:[#allocation7 + $0x368] sm:$0xff] }
 0x537   :  { %v7875_v24 = vcombine.low %v1611_v55, %v1615_v34 }
 0x538   :  { %4030 = vmatpush1.bf16.msra.mxu1 %v7843_v2  ;;  %v7876_v2 = vcombine.high %v1611_v55, %v1615_v34  ;;  %v1764_v55 = vld [vmem:[#allocation7 + $0x810] sm:$0xff] }
 0x539   :  { %4242 = vmatpush1.bf16.msra.mxu0 %v7973_v44  ;;  %4031 = vmatprep.subr.bf16.mxu1 %v7852_v35  ;;  %v8006_v44 = vcombine.high %v1740_v49, %v1744_v56  ;;  %v1619_v35 = vld [vmem:[#allocation7 + $0x388] sm:$0xff]  ;;  %v1768_v34 = vld [vmem:[#allocation7 + $0x830] sm:$0xff]  ;;  %v8021_v56 = vcombine.low %v1756_v63, %v1760_v9 }
 0x53a   :  { %4243 = vmatprep.subr.bf16.mxu0 %v7982_v5  ;;  %v1623_v5 = vld [vmem:[#allocation7 + $0x3a8] sm:$0xff] }
 0x53b   :  { %v7883_v8 = vcombine.low %v1619_v35, %v1623_v5 }
 0x53c   :  { %4032 = vmatpush1.bf16.msra.mxu1 %v7851_v25  ;;  %v7884_v25 = vcombine.high %v1619_v35, %v1623_v5  ;;  %v1772_v35 = vld [vmem:[#allocation7 + $0x850] sm:$0xff] }
 0x53d   :  { %4244 = vmatpush1.bf16.msra.mxu0 %v7981_v61  ;;  %4033 = vmatprep.subr.bf16.mxu1 %v7860_v12  ;;  %v8014_v61 = vcombine.high %v1748_v57, %v1752_v1  ;;  %v1627_v12 = vld [vmem:[#allocation7 + $0x3c8] sm:$0xff]  ;;  %v1776_v5 = vld [vmem:[#allocation7 + $0x870] sm:$0xff]  ;;  %v8029_v1 = vcombine.low %v1764_v55, %v1768_v34 }
 0x53e   :  { %4245 = vmatprep.subr.bf16.mxu0 %v7990_v29  ;;  %v1631_v29 = vld [vmem:[#allocation7 + $0x3e8] sm:$0xff] }
 0x53f   :  { %v7891_v49 = vcombine.low %v1627_v12, %v1631_v29 }
 0x540   :  { %4034 = vmatpush1.bf16.msra.mxu1 %v7859_v17  ;;  %v7892_v17 = vcombine.high %v1627_v12, %v1631_v29  ;;  %v1780_v12 = vld [vmem:[#allocation7 + $0x890] sm:$0xff] }
 0x541   :  { %4246 = vmatpush1.bf16.msra.mxu0 %v7989_v40  ;;  %4035 = vmatprep.subr.bf16.mxu1 %v7868_v45  ;;  %v8022_v40 = vcombine.high %v1756_v63, %v1760_v9  ;;  %v1635_v45 = vld [vmem:[#allocation7 + $0x408] sm:$0xff]  ;;  %v1784_v29 = vld [vmem:[#allocation7 + $0x8b0] sm:$0xff]  ;;  %v8037_v9 = vcombine.low %v1772_v35, %v1776_v5 }
 0x542   :  { %4247 = vmatprep.subr.bf16.mxu0 %v7998_v59  ;;  %v1639_v59 = vld [vmem:[#allocation7 + $0x428] sm:$0xff] }
 0x543   :  { %v7899_v57 = vcombine.low %v1635_v45, %v1639_v59 }
 0x544   :  { %4036 = vmatpush1.bf16.msra.mxu1 %v7867_v18  ;;  %v7900_v18 = vcombine.high %v1635_v45, %v1639_v59  ;;  %v1788_v45 = vld [vmem:[#allocation7 + $0x8d0] sm:$0xff] }
 0x545   :  { %4248 = vmatpush1.bf16.msra.mxu0 %v7997_v47  ;;  %4037 = vmatprep.subr.bf16.mxu1 %v7876_v2  ;;  %v8030_v47 = vcombine.high %v1764_v55, %v1768_v34  ;;  %v1643_v2 = vld [vmem:[#allocation7 + $0x448] sm:$0xff]  ;;  %v1792_v59 = vld [vmem:[#allocation7 + $0x8f0] sm:$0xff]  ;;  %v8045_v34 = vcombine.low %v1780_v12, %v1784_v29 }
 0x546   :  { %4249 = vmatprep.subr.bf16.mxu0 %v8006_v44  ;;  %v1647_v44 = vld [vmem:[#allocation7 + $0x468] sm:$0xff] }
 0x547   :  { %v7907_v63 = vcombine.low %v1643_v2, %v1647_v44 }
 0x548   :  { %4038 = vmatpush1.bf16.msra.mxu1 %v7875_v24  ;;  %v7908_v24 = vcombine.high %v1643_v2, %v1647_v44  ;;  %v1796_v2 = vld [vmem:[#allocation7 + $0x910] sm:$0xff] }
 0x549   :  { %4250 = vmatpush1.bf16.msra.mxu0 %v8005_v53  ;;  %4039 = vmatprep.subr.bf16.mxu1 %v7884_v25  ;;  %v8038_v53 = vcombine.high %v1772_v35, %v1776_v5  ;;  %v1651_v25 = vld [vmem:[#allocation7 + $0x488] sm:$0xff]  ;;  %v1800_v44 = vld [vmem:[#allocation7 + $0x930] sm:$0xff]  ;;  %v8053_v5 = vcombine.low %v1788_v45, %v1792_v59 }
 0x54a   :  { %4251 = vmatprep.subr.bf16.mxu0 %v8014_v61  ;;  %v1655_v61 = vld [vmem:[#allocation7 + $0x4a8] sm:$0xff] }
 0x54b   :  { %v7915_v55 = vcombine.low %v1651_v25, %v1655_v61 }
 0x54c   :  { %4040 = vmatpush1.bf16.msra.mxu1 %v7883_v8  ;;  %v7916_v8 = vcombine.high %v1651_v25, %v1655_v61  ;;  %v1804_v25 = vld [vmem:[#allocation7 + $0x950] sm:$0xff] }
 0x54d   :  { %4252 = vmatpush1.bf16.msra.mxu0 %v8013_v11  ;;  %4041 = vmatprep.subr.bf16.mxu1 %v7892_v17  ;;  %v8046_v11 = vcombine.high %v1780_v12, %v1784_v29  ;;  %v1659_v17 = vld [vmem:[#allocation7 + $0x4c8] sm:$0xff]  ;;  %v1808_v61 = vld [vmem:[#allocation7 + $0x970] sm:$0xff]  ;;  %v8061_v29 = vcombine.low %v1796_v2, %v1800_v44 }
 0x54e   :  { %4253 = vmatprep.subr.bf16.mxu0 %v8022_v40  ;;  %v1663_v40 = vld [vmem:[#allocation7 + $0x4e8] sm:$0xff] }
 0x54f   :  { %v7923_v35 = vcombine.low %v1659_v17, %v1663_v40 }
 0x550   :  { %4042 = vmatpush1.bf16.msra.mxu1 %v7891_v49  ;;  %v7924_v49 = vcombine.high %v1659_v17, %v1663_v40  ;;  %v1812_v17 = vld [vmem:[#allocation7 + $0x990] sm:$0xff] }
 0x551   :  { %4254 = vmatpush1.bf16.msra.mxu0 %v8021_v56  ;;  %4064 = vmatprep.subr.bf16.mxu1 %v7900_v18  ;;  %v8054_v56 = vcombine.high %v1788_v45, %v1792_v59  ;;  %v1667_v18 = vld [vmem:[#allocation7 + $0x508] sm:$0xff]  ;;  %v1816_v40 = vld [vmem:[#allocation7 + $0x9b0] sm:$0xff]  ;;  %v8069_v59 = vcombine.low %v1804_v25, %v1808_v61 }
 0x552   :  { %4276 = vmatprep.subr.bf16.mxu0 %v8030_v47  ;;  %v1671_v47 = vld [vmem:[#allocation7 + $0x528] sm:$0xff] }
 0x553   :  { %4044 = vmatmul.mubr.bf16.vlgmr.msra.gmra.mrb[40].mxu1 %v10116_v36  ;;  %v7931_v12 = vcombine.low %v1667_v18, %v1671_v47 }
 0x554   :  { %4256 = vmatmul.mubr.bf16.vlgmr.msra.gmra.mrb[40].mxu0 %v10214_v10  ;;  %4053 = vmatprep.mubr.bf16.mxu1 %v10168_v48 }
 0x555   :  { %4065 = vmatpush1.bf16.msra.mxu1 %v7899_v57  ;;  %4265 = vmatprep.mubr.bf16.mxu0 %v10218_v54  ;;  %v7932_v57 = vcombine.high %v1667_v18, %v1671_v47  ;;  %v1820_v18 = vld [vmem:[#allocation7 + $0x9d0] sm:$0xff] }
 0x556   :  { %4277 = vmatpush1.bf16.msra.mxu0 %v8029_v1  ;;  %4066 = vmatprep.subr.bf16.mxu1 %v7908_v24  ;;  %v8062_v1 = vcombine.high %v1796_v2, %v1800_v44  ;;  %v1675_v24 = vld [vmem:[#allocation7 + $0x548] sm:$0xff]  ;;  %v1824_v47 = vld [vmem:[#allocation7 + $0x9f0] sm:$0xff]  ;;  %v8077_v44 = vcombine.low %v1812_v17, %v1816_v40 }
 0x557   :  { %4278 = vmatprep.subr.bf16.mxu0 %v8038_v53  ;;  %v1679_v53 = vld [vmem:[#allocation7 + $0x568] sm:$0xff] }
 0x558   :  { %v7939_v45 = vcombine.low %v1675_v24, %v1679_v53 }
 0x559   :  { %4067 = vmatpush1.bf16.msra.mxu1 %v7907_v63  ;;  %v7940_v63 = vcombine.high %v1675_v24, %v1679_v53  ;;  %v1828_v24 = vld [vmem:[#allocation7 + $0xa10] sm:$0xff] }
 0x55a   :  { %4279 = vmatpush1.bf16.msra.mxu0 %v8037_v9  ;;  %4068 = vmatprep.subr.bf16.mxu1 %v7916_v8  ;;  %v8070_v9 = vcombine.high %v1804_v25, %v1808_v61  ;;  %v1683_v8 = vld [vmem:[#allocation7 + $0x588] sm:$0xff]  ;;  %v1832_v53 = vld [vmem:[#allocation7 + $0xa30] sm:$0xff]  ;;  %v8085_v61 = vcombine.low %v1820_v18, %v1824_v47 }
 0x55b   :  { %4054 = vmatmul.mubr.bf16.gmra.mrb[44].mxu1 %v10176_v6  ;;  %4280 = vmatprep.subr.bf16.mxu0 %v8046_v11  ;;  %v1687_v11 = vld [vmem:[#allocation7 + $0x5a8] sm:$0xff] }
 0x55c   :  { %4266 = vmatmul.mubr.bf16.gmra.mrb[44].mxu0 %v10234_v46  ;;  %4096 = vmatprep.mubr.bf16.mxu1 %v10192_v32  ;;  %v7947_v2 = vcombine.low %v1683_v8, %v1687_v11 }
 0x55d   :  { %4069 = vmatpush1.bf16.msra.mxu1 %v7915_v55  ;;  %4308 = vmatprep.mubr.bf16.mxu0 %v10112_v15  ;;  %v7948_v55 = vcombine.high %v1683_v8, %v1687_v11  ;;  %v1836_v8 = vld [vmem:[#allocation7 + $0xa50] sm:$0xff] }
 0x55e   :  { %4281 = vmatpush1.bf16.msra.mxu0 %v8045_v34  ;;  %4070 = vmatprep.subr.bf16.mxu1 %v7924_v49  ;;  %v8078_v34 = vcombine.high %v1812_v17, %v1816_v40  ;;  %v1691_v49 = vld [vmem:[#allocation7 + $0x5c8] sm:$0xff]  ;;  %v1840_v11 = vld [vmem:[#allocation7 + $0xa70] sm:$0xff]  ;;  %v8093_v40 = vcombine.low %v1828_v24, %v1832_v53 }
 0x55f   :  { %4282 = vmatprep.subr.bf16.mxu0 %v8054_v56  ;;  %v1695_v56 = vld [vmem:[#allocation7 + $0x5e8] sm:$0xff] }
 0x560   :  { %v7955_v25 = vcombine.low %v1691_v49, %v1695_v56 }
 0x561   :  { %4071 = vmatpush1.bf16.msra.mxu1 %v7923_v35  ;;  %v7956_v35 = vcombine.high %v1691_v49, %v1695_v56  ;;  %v1844_v49 = vld [vmem:[#allocation7 + $0xa90] sm:$0xff] }
 0x562   :  { %4283 = vmatpush1.bf16.msra.mxu0 %v8053_v5  ;;  %4072 = vmatprep.subr.bf16.mxu1 %v7932_v57  ;;  %v8086_v5 = vcombine.high %v1820_v18, %v1824_v47  ;;  %v1699_v57 = vld [vmem:[#allocation7 + $0x608] sm:$0xff]  ;;  %v1848_v56 = vld [vmem:[#allocation7 + $0xab0] sm:$0xff]  ;;  %v8101_v47 = vcombine.low %v1836_v8, %v1840_v11 }
 0x563   :  { %4284 = vmatprep.subr.bf16.mxu0 %v8062_v1  ;;  %v1703_v1 = vld [vmem:[#allocation7 + $0x628] sm:$0xff] }
 0x564   :  { %v7963_v17 = vcombine.low %v1699_v57, %v1703_v1 }
 0x565   :  { %4073 = vmatpush1.bf16.msra.mxu1 %v7931_v12  ;;  %v7964_v12 = vcombine.high %v1699_v57, %v1703_v1  ;;  %v1852_v57 = vld [vmem:[#allocation7 + $0xad0] sm:$0xff] }
 0x566   :  { %4285 = vmatpush1.bf16.msra.mxu0 %v8061_v29  ;;  %4074 = vmatprep.subr.bf16.mxu1 %v7940_v63  ;;  %v8094_v29 = vcombine.high %v1828_v24, %v1832_v53  ;;  %v1707_v63 = vld [vmem:[#allocation7 + $0x648] sm:$0xff]  ;;  %v1856_v1 = vld [vmem:[#allocation7 + $0xaf0] sm:$0xff]  ;;  %v8109_v53 = vcombine.low %v1844_v49, %v1848_v56 }
 0x567   :  { %4286 = vmatprep.subr.bf16.mxu0 %v8070_v9  ;;  %v1711_v9 = vld [vmem:[#allocation7 + $0x668] sm:$0xff] }
 0x568   :  { %v7971_v18 = vcombine.low %v1707_v63, %v1711_v9 }
 0x569   :  { %4075 = vmatpush1.bf16.msra.mxu1 %v7939_v45  ;;  %v7972_v45 = vcombine.high %v1707_v63, %v1711_v9  ;;  %v1860_v63 = vld [vmem:[#allocation7 + $0xb10] sm:$0xff] }
 0x56a   :  { %4287 = vmatpush1.bf16.msra.mxu0 %v8069_v59  ;;  %4076 = vmatprep.subr.bf16.mxu1 %v7948_v55  ;;  %v8102_v59 = vcombine.high %v1836_v8, %v1840_v11  ;;  %v1715_v55 = vld [vmem:[#allocation7 + $0x688] sm:$0xff]  ;;  %v1864_v9 = vld [vmem:[#allocation7 + $0xb30] sm:$0xff]  ;;  %v8117_v11 = vcombine.low %v1852_v57, %v1856_v1 }
 0x56b   :  { %4288 = vmatprep.subr.bf16.mxu0 %v8078_v34  ;;  %v1719_v34 = vld [vmem:[#allocation7 + $0x6a8] sm:$0xff] }
 0x56c   :  { %v7979_v24 = vcombine.low %v1715_v55, %v1719_v34 }
 0x56d   :  { %4077 = vmatpush1.bf16.msra.mxu1 %v7947_v2  ;;  %v7980_v2 = vcombine.high %v1715_v55, %v1719_v34  ;;  %v1868_v55 = vld [vmem:[#allocation7 + $0xb50] sm:$0xff] }
 0x56e   :  { %4289 = vmatpush1.bf16.msra.mxu0 %v8077_v44  ;;  %4078 = vmatprep.subr.bf16.mxu1 %v7956_v35  ;;  %v8110_v44 = vcombine.high %v1844_v49, %v1848_v56  ;;  %v1723_v35 = vld [vmem:[#allocation7 + $0x6c8] sm:$0xff]  ;;  %v1872_v34 = vld [vmem:[#allocation7 + $0xb70] sm:$0xff]  ;;  %v8125_v56 = vcombine.low %v1860_v63, %v1864_v9 }
 0x56f   :  { %4290 = vmatprep.subr.bf16.mxu0 %v8086_v5  ;;  %v1727_v5 = vld [vmem:[#allocation7 + $0x6e8] sm:$0xff] }
 0x570   :  { %v7987_v8 = vcombine.low %v1723_v35, %v1727_v5 }
 0x571   :  { %4079 = vmatpush1.bf16.msra.mxu1 %v7955_v25  ;;  %v7988_v25 = vcombine.high %v1723_v35, %v1727_v5  ;;  %v1876_v35 = vld [vmem:[#allocation7 + $0xb90] sm:$0xff] }
 0x572   :  { %4291 = vmatpush1.bf16.msra.mxu0 %v8085_v61  ;;  %4080 = vmatprep.subr.bf16.mxu1 %v7964_v12  ;;  %v8118_v61 = vcombine.high %v1852_v57, %v1856_v1  ;;  %v1731_v12 = vld [vmem:[#allocation7 + $0x708] sm:$0xff]  ;;  %v1880_v5 = vld [vmem:[#allocation7 + $0xbb0] sm:$0xff]  ;;  %v8133_v1 = vcombine.low %v1868_v55, %v1872_v34 }
 0x573   :  { %4292 = vmatprep.subr.bf16.mxu0 %v8094_v29  ;;  %v1735_v29 = vld [vmem:[#allocation7 + $0x728] sm:$0xff] }
 0x574   :  { %v7995_v49 = vcombine.low %v1731_v12, %v1735_v29 }
 0x575   :  { %4081 = vmatpush1.bf16.msra.mxu1 %v7963_v17  ;;  %v7996_v17 = vcombine.high %v1731_v12, %v1735_v29  ;;  %v1884_v12 = vld [vmem:[#allocation7 + $0xbd0] sm:$0xff] }
 0x576   :  { %4293 = vmatpush1.bf16.msra.mxu0 %v8093_v40  ;;  %4082 = vmatprep.subr.bf16.mxu1 %v7972_v45  ;;  %v8126_v40 = vcombine.high %v1860_v63, %v1864_v9  ;;  %v1739_v45 = vld [vmem:[#allocation7 + $0x748] sm:$0xff]  ;;  %v1888_v29 = vld [vmem:[#allocation7 + $0xbf0] sm:$0xff]  ;;  %v8141_v9 = vcombine.low %v1876_v35, %v1880_v5 }
 0x577   :  { %4294 = vmatprep.subr.bf16.mxu0 %v8102_v59  ;;  %v1743_v59 = vld [vmem:[#allocation7 + $0x768] sm:$0xff] }
 0x578   :  { %v8003_v57 = vcombine.low %v1739_v45, %v1743_v59 }
 0x579   :  { %4083 = vmatpush1.bf16.msra.mxu1 %v7971_v18  ;;  %v8004_v18 = vcombine.high %v1739_v45, %v1743_v59  ;;  %v8149_v59 = vcombine.low %v1884_v12, %v1888_v29 }
 0x57a   :  { %4295 = vmatpush1.bf16.msra.mxu0 %v8101_v47  ;;  %4084 = vmatprep.subr.bf16.mxu1 %v7980_v2  ;;  %v8134_v47 = vcombine.high %v1868_v55, %v1872_v34  ;;  %v1747_v2 = vld [vmem:[#allocation7 + $0x788] sm:$0xff] }
 0x57b   :  { %4296 = vmatprep.subr.bf16.mxu0 %v8110_v44  ;;  %v1751_v44 = vld [vmem:[#allocation7 + $0x7a8] sm:$0xff] }
 0x57c   :  { %v8011_v63 = vcombine.low %v1747_v2, %v1751_v44  ;;  %v8755_v34 = vld [vmem:[#allocation10 + $0x4] ss:$24 sps:$4 sm:$0xff]  }
 0x57d   :  { %4085 = vmatpush1.bf16.msra.mxu1 %v7979_v24  ;;  %v8012_v24 = vcombine.high %v1747_v2, %v1751_v44  ;;  %v8753_v2 = vld [vmem:[#allocation10] ss:$24 sps:$4 sm:$0xff]  }
 0x57e   :  { %4297 = vmatpush1.bf16.msra.mxu0 %v8109_v53  ;;  %4086 = vmatprep.subr.bf16.mxu1 %v7988_v25  ;;  %v8142_v53 = vcombine.high %v1876_v35, %v1880_v5  ;;  %v1755_v25 = vld [vmem:[#allocation7 + $0x7c8] sm:$0xff]  ;;  %v8758_v5 = vld [vmem:[#allocation10 + $0x34] ss:$24 sps:$4 sm:$0xff]  }
 0x57f   :  { %4298 = vmatprep.subr.bf16.mxu0 %v8118_v61  ;;  %v1759_v61 = vld [vmem:[#allocation7 + $0x7e8] sm:$0xff] }
 0x580   :  { %v8019_v45 = vcombine.low %v1755_v25, %v1759_v61  ;;  %v1779_v44 = vld [vmem:[#allocation7 + $0x888] sm:$0xff] }
 0x581   :  { %4087 = vmatpush1.bf16.msra.mxu1 %v7987_v8  ;;  %v8020_v8 = vcombine.high %v1755_v25, %v1759_v61  ;;  %v1783_v35 = vld [vmem:[#allocation7 + $0x8a8] sm:$0xff] }
 0x582   :  { %4299 = vmatpush1.bf16.msra.mxu0 %v8117_v11  ;;  %4088 = vmatprep.subr.bf16.mxu1 %v7996_v17  ;;  %v8150_v11 = vcombine.high %v1884_v12, %v1888_v29  ;;  %v1763_v17 = vld [vmem:[#allocation7 + $0x808] sm:$0xff]  ;;  %v8043_v12 = vcombine.low %v1779_v44, %v1783_v35 }
 0x583   :  { %4300 = vmatprep.subr.bf16.mxu0 %v8126_v40  ;;  %v1767_v40 = vld [vmem:[#allocation7 + $0x828] sm:$0xff] }
 0x584   :  { %v8028_v55 = vcombine.high %v1763_v17, %v1767_v40  ;;  %v1791_v25 = vld [vmem:[#allocation7 + $0x8e8] sm:$0xff] }
 0x585   :  { %4089 = vmatpush1.bf16.msra.mxu1 %v7995_v49  ;;  %v1771_v49 = vld [vmem:[#allocation7 + $0x848] sm:$0xff] }
 0x586   :  { %4301 = vmatpush1.bf16.msra.mxu0 %v8125_v56  ;;  %4090 = vmatprep.subr.bf16.mxu1 %v8004_v18  ;;  %v1775_v56 = vld [vmem:[#allocation7 + $0x868] sm:$0xff]  ;;  %v8027_v18 = vcombine.low %v1763_v17, %v1767_v40 }
 0x587   :  { %4302 = vmatprep.subr.bf16.mxu0 %v8134_v47  ;;  %v8036_v47 = vcombine.high %v1771_v49, %v1775_v56  ;;  %v8761_v61 = vld [vmem:[#allocation10 + $0x64] ss:$24 sps:$4 sm:$0xff]  }
 0x589   :  { %4091 = vmatpush1.bf16.msra.mxu1 %v8003_v57  ;;  %v8035_v57 = vcombine.low %v1771_v49, %v1775_v56 }
 0x58a   :  { %4303 = vmatpush1.bf16.msra.mxu0 %v8133_v1  ;;  %4092 = vmatprep.subr.bf16.mxu1 %v8012_v24  ;;  %v8044_v1 = vcombine.high %v1779_v44, %v1783_v35  ;;  %v8756_v24 = vld [vmem:[#allocation10 + $0x30] ss:$24 sps:$4 sm:$0xff]   ;;  %v8770_v44 = vld [vmem:[#allocation10 + $0xf4] ss:$24 sps:$4 sm:$0xff]  }
 0x58b   :  { %4304 = vmatprep.subr.bf16.mxu0 %v8142_v53  ;;  %v1787_v53 = vld [vmem:[#allocation7 + $0x8c8] sm:$0xff] }
 0x58c   :  { %v8052_v29 = vcombine.high %v1787_v53, %v1791_v25  ;;  %v8051_v17 = vcombine.low %v1787_v53, %v1791_v25  ;;  %v1819_v25 = vld [vmem:[#allocation7 + $0x9c8] sm:$0xff] }
 0x58d   :  { %4093 = vmatpush1.bf16.msra.mxu1 %v8011_v63  ;;  %v8759_v63 = vld [vmem:[#allocation10 + $0x60] ss:$24 sps:$4 sm:$0xff]  }
 0x58e   :  { %4305 = vmatpush1.bf16.msra.mxu0 %v8141_v9  ;;  %4094 = vmatprep.subr.bf16.mxu1 %v8020_v8  ;;  %v1795_v9 = vld [vmem:[#allocation7 + $0x908] sm:$0xff] }
 0x58f   :  { %4306 = vmatprep.subr.bf16.mxu0 %v8150_v11  ;;  %v1799_v8 = vld [vmem:[#allocation7 + $0x928] sm:$0xff]  ;;  %v8764_v11 = vld [vmem:[#allocation10 + $0x94] ss:$24 sps:$4 sm:$0xff]  }
 0x590   :  { %v8060_v40 = vcombine.high %v1795_v9, %v1799_v8  ;;  %v8059_v49 = vcombine.low %v1795_v9, %v1799_v8  ;;  %v8771_v8 = vld [vmem:[#allocation10 + $0x120] ss:$24 sps:$4 sm:$0xff]  }
 0x591   :  { %4095 = vmatpush1.bf16.msra.mxu1 %v8019_v45  ;;  %v8762_v45 = vld [vmem:[#allocation10 + $0x90] ss:$24 sps:$4 sm:$0xff]  }
 0x592   :  { %4307 = vmatpush1.bf16.msra.mxu0 %v8149_v59  ;;  %4117 = vmatprep.subr.bf16.mxu1 %v8028_v55  ;;  %v1803_v59 = vld [vmem:[#allocation7 + $0x948] sm:$0xff] }
 0x593   :  { %6840 = vmatprep.subr.bf16.mxu0 %v8755_v34  ;;  %v1807_v55 = vld [vmem:[#allocation7 + $0x968] sm:$0xff] }
 0x594   :  { %4097 = vmatmul.mubr.bf16.vlgmr.msra.gmra.mrb[40].mxu1 %v10214_v10  ;;  %v8767_v34 = vld [vmem:[#allocation10 + $0xc4] ss:$24 sps:$4 sm:$0xff]   ;;  %v8068_v56 = vcombine.high %v1803_v59, %v1807_v55 }
 0x595   :  { %4309 = vmatmul.mubr.bf16.vlgmr.msra.gmra.mrb[40].mxu0 %v10120_v20  ;;  %4106 = vmatprep.mubr.bf16.mxu1 %v10218_v54 }
 0x596   :  { %4118 = vmatpush1.bf16.msra.mxu1 %v8027_v18  ;;  %4318 = vmatprep.mubr.bf16.mxu0 %v10172_v7  ;;  %v8765_v18 = vld [vmem:[#allocation10 + $0xc0] ss:$24 sps:$4 sm:$0xff]  }
 0x597   :  { %4119 = vmatprep.subr.bf16.mxu1 %v8036_v47  ;;  %6841 = vmatpush1.bf16.msra.mxu0 %v8753_v2  ;;  %v1811_v47 = vld [vmem:[#allocation7 + $0x988] sm:$0xff] }
 0x598   :  { %6842 = vmatprep.subr.bf16.mxu0 %v8758_v5  ;;  %v1815_v2 = vld [vmem:[#allocation7 + $0x9a8] sm:$0xff]  ;;  %v8067_v5 = vcombine.low %v1803_v59, %v1807_v55  ;;  %v8774_v55 = vld [vmem:[#allocation10 + $0x150] ss:$24 sps:$4 sm:$0xff]  }
 0x59a   :  { %4120 = vmatpush1.bf16.msra.mxu1 %v8035_v57 }
 0x59b   :  { %4121 = vmatprep.subr.bf16.mxu1 %v8044_v1  ;;  %6843 = vmatpush1.bf16.msra.mxu0 %v8756_v24  ;;  %v8076_v1 = vcombine.high %v1811_v47, %v1815_v2  ;;  %v8768_v24 = vld [vmem:[#allocation10 + $0xf0] ss:$24 sps:$4 sm:$0xff]  }
 0x59c   :  { %4107 = vmatmul.mubr.bf16.gmra.mrb[44].mxu1 %v10234_v46  ;;  %6844 = vmatprep.subr.bf16.mxu0 %v8761_v61  ;;  %v1823_v61 = vld [vmem:[#allocation7 + $0x9e8] sm:$0xff] }
 0x59d   :  { %4319 = vmatmul.mubr.bf16.gmra.mrb[44].mxu0 %v10180_v23  ;;  %4149 = vmatprep.mubr.bf16.mxu1 %v10112_v15  ;;  %v8084_v9 = vcombine.high %v1819_v25, %v1823_v61 }
 0x59e   :  { %4122 = vmatpush1.bf16.msra.mxu1 %v8043_v12  ;;  %v8773_v12 = vld [vmem:[#allocation10 + $0x124] ss:$24 sps:$4 sm:$0xff]  }
 0x59f   :  { %4123 = vmatprep.subr.bf16.mxu1 %v8052_v29  ;;  %6845 = vmatpush1.bf16.msra.mxu0 %v8759_v63  ;;  %v8075_v63 = vcombine.low %v1811_v47, %v1815_v2  ;;  %v8777_v2 = vld [vmem:[#allocation10 + $0x180] ss:$24 sps:$4 sm:$0xff]  }
 0x5a0   :  { %6846 = vmatprep.subr.bf16.mxu0 %v8764_v11  ;;  %v1827_v11 = vld [vmem:[#allocation7 + $0xa08] sm:$0xff] }
 0x5a2   :  { %4124 = vmatpush1.bf16.msra.mxu1 %v8051_v17  ;;  %v1831_v17 = vld [vmem:[#allocation7 + $0xa28] sm:$0xff] }
 0x5a3   :  { %4125 = vmatprep.subr.bf16.mxu1 %v8060_v40  ;;  %6847 = vmatpush1.bf16.msra.mxu0 %v8762_v45  ;;  %v8776_v40 = vld [vmem:[#allocation10 + $0x154] ss:$24 sps:$4 sm:$0xff]   ;;  %v8083_v45 = vcombine.low %v1819_v25, %v1823_v61  ;;  %v8092_v59 = vcombine.high %v1827_v11, %v1831_v17  ;;  %v8780_v61 = vld [vmem:[#allocation10 + $0x1b0] ss:$24 sps:$4 sm:$0xff]  }
 0x5a4   :  { %6848 = vmatprep.subr.bf16.mxu0 %v8767_v34  ;;  %v1835_v34 = vld [vmem:[#allocation7 + $0xa48] sm:$0xff] }
 0x5a6   :  { %4126 = vmatpush1.bf16.msra.mxu1 %v8059_v49  ;;  %v10255_v35 = vpop.f32.mrb[32].mxu0  ;;  %v1839_v49 = vld [vmem:[#allocation7 + $0xa68] sm:$0xff] }
 0x5a7   :  { %4127 = vmatprep.subr.bf16.mxu1 %v8068_v56  ;;  %v10257_v57 = vpop.f32.mrb[33].mxu0  ;;  %6849 = vmatpush1.bf16.msra.mxu0 %v8765_v18  ;;  %v8779_v56 = vld [vmem:[#allocation10 + $0x184] ss:$24 sps:$4 sm:$0xff]   ;;  %v8091_v18 = vcombine.low %v1827_v11, %v1831_v17  ;;  %v8100_v47 = vcombine.high %v1835_v34, %v1839_v49  ;;  %v8783_v17 = vld [vmem:[#allocation10 + $0x1e0] ss:$24 sps:$4 sm:$0xff]  }
 0x5a8   :  { %v10259_v53 = vpop.f32.mrb[34].mxu0  ;;  %6850 = vmatprep.subr.bf16.mxu0 %v8770_v44  ;;  %v1843_v44 = vld [vmem:[#allocation7 + $0xa88] sm:$0xff] }
 0x5a9   :  { %v10261_v29 = vpop.f32.mrb[35].mxu0 }
 0x5aa   :  { %4128 = vmatpush1.bf16.msra.mxu1 %v8067_v5  ;;  %v1847_v5 = vld [vmem:[#allocation7 + $0xaa8] sm:$0xff] }
 0x5ab   :  { %4129 = vmatprep.subr.bf16.mxu1 %v8076_v1  ;;  %6851 = vmatpush1.bf16.msra.mxu0 %v8768_v24  ;;  %v8782_v1 = vld [vmem:[#allocation10 + $0x1b4] ss:$24 sps:$4 sm:$0xff]   ;;  %v8099_v24 = vcombine.low %v1835_v34, %v1839_v49  ;;  %v8108_v25 = vcombine.high %v1843_v44, %v1847_v5  ;;  %v8786_v49 = vld [vmem:[#allocation10 + $0x210] ss:$24 sps:$4 sm:$0xff]  }
 0x5ac   :  { %6852 = vmatprep.subr.bf16.mxu0 %v8773_v12  ;;  %v1851_v12 = vld [vmem:[#allocation7 + $0xac8] sm:$0xff] }
 0x5ae   :  { %4130 = vmatpush1.bf16.msra.mxu1 %v8075_v63  ;;  %v1855_v63 = vld [vmem:[#allocation7 + $0xae8] sm:$0xff] }
 0x5af   :  { %4131 = vmatprep.subr.bf16.mxu1 %v8084_v9  ;;  %6853 = vmatpush1.bf16.msra.mxu0 %v8771_v8  ;;  %v8785_v9 = vld [vmem:[#allocation10 + $0x1e4] ss:$24 sps:$4 sm:$0xff]   ;;  %v8107_v8 = vcombine.low %v1843_v44, %v1847_v5  ;;  %v8116_v11 = vcombine.high %v1851_v12, %v1855_v63  ;;  %v8789_v5 = vld [vmem:[#allocation10 + $0x240] ss:$24 sps:$4 sm:$0xff]  }
 0x5b0   :  { %6854 = vmatprep.subr.bf16.mxu0 %v8776_v40  ;;  %v1859_v40 = vld [vmem:[#allocation7 + $0xb08] sm:$0xff] }
 0x5b2   :  { %4132 = vmatpush1.bf16.msra.mxu1 %v8083_v45  ;;  %v1863_v45 = vld [vmem:[#allocation7 + $0xb28] sm:$0xff] }
 0x5b3   :  { %4133 = vmatprep.subr.bf16.mxu1 %v8092_v59  ;;  %6855 = vmatpush1.bf16.msra.mxu0 %v8774_v55  ;;  %v8788_v59 = vld [vmem:[#allocation10 + $0x214] ss:$24 sps:$4 sm:$0xff]   ;;  %v8115_v55 = vcombine.low %v1851_v12, %v1855_v63  ;;  %v8124_v34 = vcombine.high %v1859_v40, %v1863_v45 }
 0x5b4   :  { %6856 = vmatprep.subr.bf16.mxu0 %v8779_v56  ;;  %v1867_v56 = vld [vmem:[#allocation7 + $0xb48] sm:$0xff] }
 0x5b6   :  { %4134 = vmatpush1.bf16.msra.mxu1 %v8091_v18  ;;  %v1871_v18 = vld [vmem:[#allocation7 + $0xb68] sm:$0xff] }
 0x5b7   :  { %4135 = vmatprep.subr.bf16.mxu1 %v8100_v47  ;;  %6857 = vmatpush1.bf16.msra.mxu0 %v8777_v2  ;;  %v8791_v47 = vld [vmem:[#allocation10 + $0x244] ss:$24 sps:$4 sm:$0xff]   ;;  %v8123_v2 = vcombine.low %v1859_v40, %v1863_v45  ;;  %v8132_v44 = vcombine.high %v1867_v56, %v1871_v18  ;;  %v8131_v12 = vcombine.low %v1867_v56, %v1871_v18  ;;  %v1509_v56 = vld [vmem:[#allocation7 + $0x18] sm:$0xff] }
 0x5b8   :  { %6858 = vmatprep.subr.bf16.mxu0 %v8782_v1  ;;  %v1875_v1 = vld [vmem:[#allocation7 + $0xb88] sm:$0xff]  ;;  %v1513_v18 = vld [vmem:[#allocation7 + $0x38] sm:$0xff] }
 0x5b9   :  { %v1887_v40 = vld [vmem:[#allocation7 + $0xbe8] sm:$0xff] }
 0x5ba   :  { %4136 = vmatpush1.bf16.msra.mxu1 %v8099_v24  ;;  %v1879_v24 = vld [vmem:[#allocation7 + $0xba8] sm:$0xff] }
 0x5bb   :  { %4137 = vmatprep.subr.bf16.mxu1 %v8108_v25  ;;  %6859 = vmatpush1.bf16.msra.mxu0 %v8780_v61  ;;  %v8794_v25 = vld [vmem:[#allocation10 + $0x274] ss:$24 sps:$4 sm:$0xff]   ;;  %v8797_v45 = vld [vmem:[#allocation10 + $0x2a4] ss:$24 sps:$4 sm:$0xff]  }
 0x5bc   :  { %6860 = vmatprep.subr.bf16.mxu0 %v8785_v9  ;;  %v8140_v9 = vcombine.high %v1875_v1, %v1879_v24 }
 0x5be   :  { %4138 = vmatpush1.bf16.msra.mxu1 %v8107_v8  ;;  %v8792_v8 = vld [vmem:[#allocation10 + $0x270] ss:$24 sps:$4 sm:$0xff]  }
 0x5bf   :  { %4139 = vmatprep.subr.bf16.mxu1 %v8116_v11  ;;  %6861 = vmatpush1.bf16.msra.mxu0 %v8783_v17  ;;  %v1883_v17 = vld [vmem:[#allocation7 + $0xbc8] sm:$0xff] }
 0x5c0   :  { %6862 = vmatprep.subr.bf16.mxu0 %v8788_v59 }
 0x5c2   :  { %4140 = vmatpush1.bf16.msra.mxu1 %v8115_v55  ;;  %v8139_v55 = vcombine.low %v1875_v1, %v1879_v24  ;;  %v1525_v24 = vld [vmem:[#allocation7 + $0x98] sm:$0xff] }
 0x5c3   :  { %4141 = vmatprep.subr.bf16.mxu1 %v8124_v34  ;;  %6863 = vmatpush1.bf16.msra.mxu0 %v8786_v49  ;;  %v8148_v34 = vcombine.high %v1883_v17, %v1887_v40  ;;  %v8795_v49 = vld [vmem:[#allocation10 + $0x2a0] ss:$24 sps:$4 sm:$0xff]  }
 0x5c4   :  { %6864 = vmatprep.subr.bf16.mxu0 %v8791_v47  ;;  %v8800_v47 = vld [vmem:[#allocation10 + $0x2d4] ss:$24 sps:$4 sm:$0xff]  }
 0x5c6   :  { %4142 = vmatpush1.bf16.msra.mxu1 %v8123_v2  ;;  %v10263_v61 = vpop.f32.mrb[36].mxu0  ;;  %v8147_v2 = vcombine.low %v1883_v17, %v1887_v40  ;;  %v1533_v40 = vld [vmem:[#allocation7 + $0xd8] sm:$0xff] }
 0x5c7   :  { %4143 = vmatprep.subr.bf16.mxu1 %v8132_v44  ;;  %v10265_v63 = vpop.f32.mrb[37].mxu0  ;;  %6865 = vmatpush1.bf16.msra.mxu0 %v8789_v5  ;;  %v7776_v44 = vcombine.high %v1509_v56, %v1513_v18  ;;  %v8798_v5 = vld [vmem:[#allocation10 + $0x2d0] ss:$24 sps:$4 sm:$0xff]  }
 0x5c8   :  { %v10267_v11 = vpop.f32.mrb[38].mxu0  ;;  %6866 = vmatprep.subr.bf16.mxu0 %v8794_v25  ;;  %v1517_v25 = vld [vmem:[#allocation7 + $0x58] sm:$0xff] }
 0x5c9   :  { %v10269_v59 = vpop.f32.mrb[39].mxu0  ;;  %v7784_v1 = vcombine.high %v1517_v25, %v1521_v38 }
 0x5ca   :  { %4144 = vmatpush1.bf16.msra.mxu1 %v8131_v12  ;;  %v7775_v12 = vcombine.low %v1509_v56, %v1513_v18  ;;  %v1545_v56 = vld [vmem:[#allocation7 + $0x138] sm:$0xff] }
 0x5cb   :  { %4145 = vmatprep.subr.bf16.mxu1 %v8140_v9  ;;  %6867 = vmatpush1.bf16.msra.mxu0 %v8792_v8  ;;  %v1529_v9 = vld [vmem:[#allocation7 + $0xb8] sm:$0xff]  ;;  %v7783_v8 = vcombine.low %v1517_v25, %v1521_v38  ;;  %v10673_v38 = vsub.s32 1, %v9772_v52 }
 0x5cc   :  { %6868 = vmatprep.subr.bf16.mxu0 %v8797_v45  ;;  %v7792_v17 = vcombine.high %v1525_v24, %v1529_v9  ;;  %v1537_v45 = vld [vmem:[#allocation7 + $0xf8] sm:$0xff] }
 0x5cd   :  { %v7799_v18 = vcombine.low %v1533_v40, %v1537_v45 }
 0x5ce   :  { %4146 = vmatpush1.bf16.msra.mxu1 %v8139_v55  ;;  %v7791_v55 = vcombine.low %v1525_v24, %v1529_v9  ;;  %v1557_v24 = vld [vmem:[#allocation7 + $0x198] sm:$0xff] }
 0x5cf   :  { %4147 = vmatprep.subr.bf16.mxu1 %v8148_v34  ;;  %6869 = vmatpush1.bf16.msra.mxu0 %v8795_v49  ;;  %v7800_v34 = vcombine.high %v1533_v40, %v1537_v45  ;;  %v1541_v49 = vld [vmem:[#allocation7 + $0x118] sm:$0xff] }
 0x5d0   :  { %6870 = vmatprep.subr.bf16.mxu0 %v8800_v47  ;;  %v7808_v47 = vcombine.high %v1541_v49, %v1545_v56  ;;  %v7807_v25 = vcombine.low %v1541_v49, %v1545_v56  ;;  %v1561_v9 = vld [vmem:[#allocation7 + $0x1b8] sm:$0xff] }
 0x5d1   :  { %v1565_v56 = vld [vmem:[#allocation7 + $0x1d8] sm:$0xff]  ;;  %v7823_v30 = vcombine.low %v1557_v24, %v1561_v9 }
 0x5d2   :  { %4148 = vmatpush1.bf16.msra.mxu1 %v8147_v2  ;;  %v10275_v2 = vld [vmem:[#allocation8] sm:$0xff] }
 0x5d3   :  { %4329 = vmatprep.subr.bf16.mxu1 %v7776_v44  ;;  %6871 = vmatpush1.bf16.msra.mxu0 %v8798_v5  ;;  %v1549_v44 = vld [vmem:[#allocation7 + $0x158] sm:$0xff] }
 0x5d4   :  { %v1553_v5 = vld [vmem:[#allocation7 + $0x178] sm:$0xff] }
 0x5d5   :  { %4150 = vmatmul.mubr.bf16.vlgmr.msra.gmra.mrb[40].mxu1 %v10120_v20 }
 0x5d6   :  { %4159 = vmatprep.mubr.bf16.mxu1 %v10172_v7  ;;  %4330 = vmatpush1.bf16.msra.mxu1 %v7775_v12  ;;  %v1895_v12 = vrot.slane %v10275_v2, %v9776_v58 }
 0x5d7   :  { %4331 = vmatprep.subr.bf16.mxu1 %v7784_v1  ;;  %v7816_v1 = vcombine.high %v1549_v44, %v1553_v5 }
 0x5da   :  { %4332 = vmatpush1.bf16.msra.mxu1 %v7783_v8 }
 0x5db   :  { %4333 = vmatprep.subr.bf16.mxu1 %v7792_v17  ;;  %v7815_v17 = vcombine.low %v1549_v44, %v1553_v5 }
 0x5dd   :  { %4160 = vmatmul.mubr.bf16.gmra.mrb[44].mxu1 %v10180_v23 }
 0x5de   :  { %4334 = vmatpush1.bf16.msra.mxu1 %v7791_v55  ;;  %4361 = vmatprep.mubr.bf16.mxu1 %v10108_v33  ;;  %v1899_v33 = vrot.slane %v10275_v2, %v10673_v38  ;;  %v7824_v55 = vcombine.high %v1557_v24, %v1561_v9 }
 0x5df   :  { %4335 = vmatprep.subr.bf16.mxu1 %v7800_v34 }
 0x5e2   :  { %4336 = vmatpush1.bf16.msra.mxu1 %v7799_v18  ;;  %v1569_v18 = vld [vmem:[#allocation7 + $0x1f8] sm:$0xff] }
 0x5e3   :  { %4337 = vmatprep.subr.bf16.mxu1 %v7808_v47  ;;  %v7832_v44 = vcombine.high %v1565_v56, %v1569_v18 }
 0x5e6   :  { %4338 = vmatpush1.bf16.msra.mxu1 %v7807_v25  ;;  %v3939_v8 = vpop.f32.mrb[32].mxu1 }
 0x5e7   :  { %v8537_v40 = vadd.f32 %v3939_v8, %v1895_v12  ;;  %v3941_v45 = vpop.f32.mrb[33].mxu1  ;;  %4339 = vmatprep.subr.bf16.mxu1 %v7816_v1  ;;  %v1573_v1 = vld [vmem:[#allocation7 + $0x218] sm:$0xff] }
 0x5e8   :  { %v8539_v34 = vadd.f32 %v3941_v45, %v1899_v33  ;;  %v3943_v49 = vpop.f32.mrb[34].mxu1  ;;  %v1577_v8 = vld [vmem:[#allocation7 + $0x238] sm:$0xff] }
 0x5e9   :  { %v8538_v47 = vadd.f32 %v8537_v40, %v10255_v35  ;;  %v8541_v3 = vadd.f32 %v3943_v49, %v1895_v12  ;;  %v3945_v37 = vpop.f32.mrb[35].mxu1  ;;  %v7831_v40 = vcombine.low %v1565_v56, %v1569_v18  ;;  %v7840_v24 = vcombine.high %v1573_v1, %v1577_v8 }
 0x5ea   :  { %v8540_v41 = vadd.f32 %v8539_v34, %v10257_v57  ;;  %4340 = vmatpush1.bf16.msra.mxu1 %v7815_v17  ;;  %v8543_v38 = vadd.f32 %v3945_v37, %v1899_v33  ;;  %v8803_v17 = vld [vmem:[#allocation10 + $0x304] ss:$24 sps:$4 sm:$0xff]   ;;  %v7839_v18 = vcombine.low %v1573_v1, %v1577_v8 }
 0x5eb   :  { %v8542_v25 = vadd.f32 %v8541_v3, %v10259_v53  ;;  %4341 = vmatprep.subr.bf16.mxu1 %v7824_v55  ;;  %v4488_v45 = vmax.f32 %v8538_v47, 0.0  ;;  %6893 = vmatprep.subr.bf16.mxu0 %v8803_v17  ;;  %v8810_v17 = vld [vmem:[#allocation10 + $0x390] ss:$24 sps:$4 sm:$0xff]  }
 0x5ec   :  { %v8544_v5 = vadd.f32 %v8543_v38, %v10261_v29  ;;  %v4489_v50 = vmax.f32 %v8540_v41, 0.0  ;;  %v1581_v29 = vld [vmem:[#allocation7 + $0x258] sm:$0xff] }
 0x5ed   :  { %v4496_v51 = vmax.f32 %v8542_v25, 0.0  ;;  %v1585_v38 = vld [vmem:[#allocation7 + $0x278] sm:$0xff] }
 0x5ee   :  { %v4497_v22 = vmax.f32 %v8544_v5, 0.0  ;;  %4342 = vmatpush1.bf16.msra.mxu1 %v7823_v30  ;;  %v3949_v35 = vpop.f32.mrb[36].mxu1  ;;  %v8801_v30 = vld [vmem:[#allocation10 + $0x300] ss:$24 sps:$4 sm:$0xff]   ;;  %v1589_v25 = vld [vmem:[#allocation7 + $0x298] sm:$0xff]  ;;  %v7847_v1 = vcombine.low %v1581_v29, %v1585_v38 }
 0x5ef   :  { %v10287_v49 = vpack.c.bf16 %v4496_v51, %v4488_v45  ;;  %v8545_v57 = vadd.f32 %v3949_v35, %v1895_v12  ;;  %v3951_v37 = vpop.f32.mrb[37].mxu1  ;;  %4343 = vmatprep.subr.bf16.mxu1 %v7832_v44 }
 0x5f0   :  { %v8547_v3 = vadd.f32 %v3951_v37, %v1899_v33  ;;  %v3953_v53 = vpop.f32.mrb[38].mxu1  ;;  %v10289_v9 = vpack.c.bf16 %v4497_v22, %v4489_v50  ;;  %v7848_v50 = vcombine.high %v1581_v29, %v1585_v38  ;;  %v8807_v37 = vld [vmem:[#allocation10 + $0x360] ss:$24 sps:$4 sm:$0xff]   ;;  %v1609_v29 = vld [vmem:[#allocation7 + $0x338] sm:$0xff] }
 0x5f1   :  { %v8546_v55 = vadd.f32 %v8545_v57, %v10263_v61  ;;  %v8549_v41 = vadd.f32 %v3953_v53, %v1895_v12  ;;  %v3955_v34 = vpop.f32.mrb[39].mxu1  ;;  %v1593_v61 = vld [vmem:[#allocation7 + $0x2b8] sm:$0xff]  ;;  %v8809_v57 = vld [vmem:[#allocation10 + $0x364] ss:$24 sps:$4 sm:$0xff]  }
 0x5f2   :  { %v8548_v56 = vadd.f32 %v8547_v3, %v10265_v63  ;;  %4344 = vmatpush1.bf16.msra.mxu1 %v7831_v40  ;;  %v8551_v51 = vadd.f32 %v3955_v34, %v1899_v33  ;;  %6872 = vmatprep.mubr.bf16.mxu0 %v10289_v9  ;;  %v8806_v12 = vld [vmem:[#allocation10 + $0x334] ss:$24 sps:$4 sm:$0xff]   ;;  %v8804_v63 = vld [vmem:[#allocation10 + $0x330] ss:$24 sps:$4 sm:$0xff]  }
 0x5f3   :  { %v8550_v47 = vadd.f32 %v8549_v41, %v10267_v11  ;;  %4345 = vmatprep.subr.bf16.mxu1 %v7840_v24  ;;  %6873 = vmatmul.mubr.bf16.vlgmr.msra.gmra.mrb[48].mxu0 %v10287_v49  ;;  %v4504_v44 = vmax.f32 %v8546_v55, 0.0  ;;  %v7856_v11 = vcombine.high %v1589_v25, %v1593_v61  ;;  %v1601_v40 = vld [vmem:[#allocation7 + $0x2f8] sm:$0xff]  ;;  %v7855_v24 = vcombine.low %v1589_v25, %v1593_v61 }
 0x5f4   :  { %v8552_v22 = vadd.f32 %v8551_v51, %v10269_v59  ;;  %6894 = vmatpush1.bf16.msra.mxu0 %v8801_v30  ;;  %v4505_v33 = vmax.f32 %v8548_v56, 0.0  ;;  %v1597_v59 = vld [vmem:[#allocation7 + $0x2d8] sm:$0xff]  ;;  %v8815_v56 = vld [vmem:[#allocation10 + $0x3c4] ss:$24 sps:$4 sm:$0xff]   ;;  %v8813_v51 = vld [vmem:[#allocation10 + $0x3c0] ss:$24 sps:$4 sm:$0xff]  }
 0x5f5   :  { %v4512_v5 = vmax.f32 %v8550_v47, 0.0  ;;  %6895 = vmatprep.subr.bf16.mxu0 %v8806_v12  ;;  %v7864_v3 = vcombine.high %v1597_v59, %v1601_v40  ;;  %v1605_v53 = vld [vmem:[#allocation7 + $0x318] sm:$0xff]  ;;  %v7863_v55 = vcombine.low %v1597_v59, %v1601_v40 }
 0x5f6   :  { %v4513_v45 = vmax.f32 %v8552_v22, 0.0  ;;  %4346 = vmatpush1.bf16.msra.mxu1 %v7839_v18  ;;  %v8812_v38 = vld [vmem:[#allocation10 + $0x394] ss:$24 sps:$4 sm:$0xff]   ;;  %v7872_v41 = vcombine.high %v1605_v53, %v1609_v29  ;;  %v7871_v18 = vcombine.low %v1605_v53, %v1609_v29  ;;  %v8816_v61 = vld [vmem:[#allocation10 + $0x3f0] ss:$24 sps:$4 sm:$0xff]  }
 0x5f7   :  { %4347 = vmatprep.subr.bf16.mxu1 %v7848_v50  ;;  %v10297_v8 = vpack.c.bf16 %v4512_v5, %v4504_v44  ;;  %v1613_v34 = vld [vmem:[#allocation7 + $0x358] sm:$0xff] }
 0x5f8   :  { %v10299_v35 = vpack.c.bf16 %v4513_v45, %v4505_v33  ;;  %6896 = vmatpush1.bf16.msra.mxu0 %v8804_v63  ;;  %v1617_v30 = vld [vmem:[#allocation7 + $0x378] sm:$0xff]  ;;  %v8821_v33 = vld [vmem:[#allocation10 + $0x424] ss:$24 sps:$4 sm:$0xff]   ;;  %v8819_v45 = vld [vmem:[#allocation10 + $0x420] ss:$24 sps:$4 sm:$0xff]  }
 0x5f9   :  { %6897 = vmatprep.subr.bf16.mxu0 %v8809_v57  ;;  %v7880_v47 = vcombine.high %v1613_v34, %v1617_v30  ;;  %v1621_v50 = vld [vmem:[#allocation7 + $0x398] sm:$0xff]  ;;  %v7879_v12 = vcombine.low %v1613_v34, %v1617_v30 }
 0x5fa   :  { %4348 = vmatpush1.bf16.msra.mxu1 %v7847_v1  ;;  %6882 = vmatprep.mubr.bf16.mxu0 %v10299_v35  ;;  %v1625_v22 = vld [vmem:[#allocation7 + $0x3b8] sm:$0xff] }
 0x5fb   :  { %4349 = vmatprep.subr.bf16.mxu1 %v7856_v11  ;;  %6883 = vmatmul.mubr.bf16.gmra.mrb[52].mxu0 %v10297_v8  ;;  %v8818_v25 = vld [vmem:[#allocation10 + $0x3f4] ss:$24 sps:$4 sm:$0xff]   ;;  %v7888_v44 = vcombine.high %v1621_v50, %v1625_v22  ;;  %v7887_v1 = vcombine.low %v1621_v50, %v1625_v22  ;;  %v8839_v50 = vld [vmem:[#allocation10 + $0x4e4] ss:$24 sps:$4 sm:$0xff]  }
 0x5fc   :  { %6898 = vmatpush1.bf16.msra.mxu0 %v8807_v37  ;;  %v1629_v5 = vld [vmem:[#allocation7 + $0x3d8] sm:$0xff] }
 0x5fd   :  { %6899 = vmatprep.subr.bf16.mxu0 %v8812_v38  ;;  %v1633_v63 = vld [vmem:[#allocation7 + $0x3f8] sm:$0xff]  ;;  %v8827_v38 = vld [vmem:[#allocation10 + $0x484] ss:$24 sps:$4 sm:$0xff]  }
 0x5fe   :  { %4350 = vmatpush1.bf16.msra.mxu1 %v7855_v24  ;;  %v7896_v11 = vcombine.high %v1629_v5, %v1633_v63  ;;  %v1637_v59 = vld [vmem:[#allocation7 + $0x418] sm:$0xff]  ;;  %v7895_v24 = vcombine.low %v1629_v5, %v1633_v63 }
 0x5ff   :  { %4351 = vmatprep.subr.bf16.mxu1 %v7864_v3  ;;  %v1641_v40 = vld [vmem:[#allocation7 + $0x438] sm:$0xff] }
 0x600   :  { %6900 = vmatpush1.bf16.msra.mxu0 %v8810_v17  ;;  %v8824_v57 = vld [vmem:[#allocation10 + $0x454] ss:$24 sps:$4 sm:$0xff]   ;;  %v8822_v37 = vld [vmem:[#allocation10 + $0x450] ss:$24 sps:$4 sm:$0xff]   ;;  %v7904_v3 = vcombine.high %v1637_v59, %v1641_v40  ;;  %v8825_v17 = vld [vmem:[#allocation10 + $0x480] ss:$24 sps:$4 sm:$0xff]  }
 0x601   :  { %6901 = vmatprep.subr.bf16.mxu0 %v8815_v56  ;;  %v1645_v53 = vld [vmem:[#allocation7 + $0x458] sm:$0xff] }
 0x602   :  { %4352 = vmatpush1.bf16.msra.mxu1 %v7863_v55  ;;  %v1649_v29 = vld [vmem:[#allocation7 + $0x478] sm:$0xff]  ;;  %v7903_v55 = vcombine.low %v1637_v59, %v1641_v40  ;;  %v8849_v40 = vld [vmem:[#allocation10 + $0x540] ss:$24 sps:$4 sm:$0xff]  }
 0x603   :  { %4353 = vmatprep.subr.bf16.mxu1 %v7872_v41  ;;  %v7912_v41 = vcombine.high %v1645_v53, %v1649_v29  ;;  %v1653_v34 = vld [vmem:[#allocation7 + $0x498] sm:$0xff] }
 0x604   :  { %6902 = vmatpush1.bf16.msra.mxu0 %v8813_v51  ;;  %v1657_v30 = vld [vmem:[#allocation7 + $0x4b8] sm:$0xff] }
 0x605   :  { %6903 = vmatprep.subr.bf16.mxu0 %v8818_v25  ;;  %v8833_v56 = vld [vmem:[#allocation10 + $0x4b4] ss:$24 sps:$4 sm:$0xff]   ;;  %v8831_v51 = vld [vmem:[#allocation10 + $0x4b0] ss:$24 sps:$4 sm:$0xff]  }
 0x606   :  { %4354 = vmatpush1.bf16.msra.mxu1 %v7871_v18  ;;  %v7911_v18 = vcombine.low %v1645_v53, %v1649_v29  ;;  %v1661_v22 = vld [vmem:[#allocation7 + $0x4d8] sm:$0xff] }
 0x607   :  { %4355 = vmatprep.subr.bf16.mxu1 %v7880_v47  ;;  %v7920_v47 = vcombine.high %v1653_v34, %v1657_v30  ;;  %v1665_v25 = vld [vmem:[#allocation7 + $0x4f8] sm:$0xff] }
 0x608   :  { %6904 = vmatpush1.bf16.msra.mxu0 %v8816_v61  ;;  %v8837_v61 = vld [vmem:[#allocation10 + $0x4e0] ss:$24 sps:$4 sm:$0xff]   ;;  %v1673_v5 = vld [vmem:[#allocation7 + $0x538] sm:$0xff] }
 0x609   :  { %6905 = vmatprep.subr.bf16.mxu0 %v8821_v33  ;;  %v8845_v63 = vld [vmem:[#allocation10 + $0x514] ss:$24 sps:$4 sm:$0xff]   ;;  %v7927_v33 = vcombine.low %v1661_v22, %v1665_v25  ;;  %v8855_v53 = vld [vmem:[#allocation10 + $0x570] ss:$24 sps:$4 sm:$0xff]  }
 0x60a   :  { %4356 = vmatpush1.bf16.msra.mxu1 %v7879_v12  ;;  %v7919_v12 = vcombine.low %v1653_v34, %v1657_v30  ;;  %v1681_v59 = vld [vmem:[#allocation7 + $0x578] sm:$0xff] }
 0x60b   :  { %4357 = vmatprep.subr.bf16.mxu1 %v7888_v44  ;;  %v7928_v44 = vcombine.high %v1661_v22, %v1665_v25  ;;  %v1709_v25 = vld [vmem:[#allocation7 + $0x658] sm:$0xff] }
 0x60c   :  { %6906 = vmatpush1.bf16.msra.mxu0 %v8819_v45 }
 0x60d   :  { %6907 = vmatprep.subr.bf16.mxu0 %v8824_v57 }
 0x60e   :  { %4358 = vmatpush1.bf16.msra.mxu1 %v7887_v1  ;;  %v8851_v1 = vld [vmem:[#allocation10 + $0x544] ss:$24 sps:$4 sm:$0xff]  }
 0x60f   :  { %4359 = vmatprep.subr.bf16.mxu1 %v7896_v11  ;;  %v1677_v11 = vld [vmem:[#allocation7 + $0x558] sm:$0xff] }
 0x610   :  { %6908 = vmatpush1.bf16.msra.mxu0 %v8822_v37  ;;  %v7944_v37 = vcombine.high %v1677_v11, %v1681_v59 }
 0x611   :  { %6909 = vmatprep.subr.bf16.mxu0 %v8827_v38  ;;  %v1693_v38 = vld [vmem:[#allocation7 + $0x5d8] sm:$0xff] }
 0x612   :  { %4360 = vmatpush1.bf16.msra.mxu1 %v7895_v24  ;;  %v1685_v24 = vld [vmem:[#allocation7 + $0x598] sm:$0xff] }
 0x613   :  { %4382 = vmatprep.subr.bf16.mxu1 %v7904_v3  ;;  %v1689_v3 = vld [vmem:[#allocation7 + $0x5b8] sm:$0xff] }
 0x614   :  { %6910 = vmatpush1.bf16.msra.mxu0 %v8825_v17  ;;  %v7952_v29 = vcombine.high %v1685_v24, %v1689_v3  ;;  %v1697_v17 = vld [vmem:[#allocation7 + $0x5f8] sm:$0xff]  ;;  %v7951_v34 = vcombine.low %v1685_v24, %v1689_v3 }
 0x615   :  { %4362 = vmatmul.mubr.bf16.vlgmr.msra.gmra.mrb[48].mxu1 %v10116_v36  ;;  %6911 = vmatprep.subr.bf16.mxu0 %v8833_v56  ;;  %v1669_v36 = vld [vmem:[#allocation7 + $0x518] sm:$0xff]  ;;  %v7960_v30 = vcombine.high %v1693_v38, %v1697_v17 }
 0x616   :  { %4371 = vmatprep.mubr.bf16.mxu1 %v10168_v48  ;;  %4383 = vmatpush1.bf16.msra.mxu1 %v7903_v55  ;;  %v8843_v48 = vld [vmem:[#allocation10 + $0x510] ss:$24 sps:$4 sm:$0xff]   ;;  %v7936_v45 = vcombine.high %v1669_v36, %v1673_v5  ;;  %v7935_v57 = vcombine.low %v1669_v36, %v1673_v5  ;;  %v8863_v55 = vld [vmem:[#allocation10 + $0x5a4] ss:$24 sps:$4 sm:$0xff]  }
 0x617   :  { %4384 = vmatprep.subr.bf16.mxu1 %v7912_v41  ;;  %v8861_v41 = vld [vmem:[#allocation10 + $0x5a0] ss:$24 sps:$4 sm:$0xff]   ;;  %v1701_v56 = vld [vmem:[#allocation7 + $0x618] sm:$0xff] }
 0x618   :  { %6912 = vmatpush1.bf16.msra.mxu0 %v8831_v51  ;;  %v1705_v51 = vld [vmem:[#allocation7 + $0x638] sm:$0xff] }
 0x619   :  { %6913 = vmatprep.subr.bf16.mxu0 %v8839_v50  ;;  %v7959_v50 = vcombine.low %v1693_v38, %v1697_v17  ;;  %v7968_v22 = vcombine.high %v1701_v56, %v1705_v51  ;;  %v1717_v5 = vld [vmem:[#allocation7 + $0x698] sm:$0xff] }
 0x61a   :  { %4385 = vmatpush1.bf16.msra.mxu1 %v7911_v18  ;;  %v8869_v18 = vld [vmem:[#allocation10 + $0x5d4] ss:$24 sps:$4 sm:$0xff]  }
 0x61b   :  { %4386 = vmatprep.subr.bf16.mxu1 %v7920_v47  ;;  %v8867_v47 = vld [vmem:[#allocation10 + $0x5d0] ss:$24 sps:$4 sm:$0xff]  }
 0x61c   :  { %6914 = vmatpush1.bf16.msra.mxu0 %v8837_v61  ;;  %v1713_v61 = vld [vmem:[#allocation7 + $0x678] sm:$0xff] }
 0x61d   :  { %4372 = vmatmul.mubr.bf16.gmra.mrb[52].mxu1 %v10176_v6  ;;  %6915 = vmatprep.subr.bf16.mxu0 %v8845_v63  ;;  %v8857_v6 = vld [vmem:[#allocation10 + $0x574] ss:$24 sps:$4 sm:$0xff]   ;;  %v7976_v36 = vcombine.high %v1709_v25, %v1713_v61 }
 0x61e   :  { %4387 = vmatpush1.bf16.msra.mxu1 %v7919_v12  ;;  %4414 = vmatprep.mubr.bf16.mxu1 %v10192_v32  ;;  %v7943_v32 = vcombine.low %v1677_v11, %v1681_v59  ;;  %v8875_v12 = vld [vmem:[#allocation10 + $0x604] ss:$24 sps:$4 sm:$0xff]   ;;  %v1721_v63 = vld [vmem:[#allocation7 + $0x6b8] sm:$0xff] }
 0x61f   :  { %4388 = vmatprep.subr.bf16.mxu1 %v7928_v44  ;;  %v7967_v44 = vcombine.low %v1701_v56, %v1705_v51  ;;  %v7983_v11 = vcombine.low %v1717_v5, %v1721_v63  ;;  %v1741_v24 = vld [vmem:[#allocation7 + $0x758] sm:$0xff] }
 0x620   :  { %6916 = vmatpush1.bf16.msra.mxu0 %v8843_v48  ;;  %v7975_v48 = vcombine.low %v1709_v25, %v1713_v61  ;;  %v1745_v3 = vld [vmem:[#allocation7 + $0x778] sm:$0xff] }
 0x621   :  { %6917 = vmatprep.subr.bf16.mxu0 %v8851_v1  ;;  %v1729_v1 = vld [vmem:[#allocation7 + $0x6f8] sm:$0xff]  ;;  %v8007_v17 = vcombine.low %v1741_v24, %v1745_v3 }
 0x622   :  { %4389 = vmatpush1.bf16.msra.mxu1 %v7927_v33  ;;  %v7984_v33 = vcombine.high %v1717_v5, %v1721_v63  ;;  %v1753_v38 = vld [vmem:[#allocation7 + $0x7b8] sm:$0xff] }
 0x623   :  { %4390 = vmatprep.subr.bf16.mxu1 %v7936_v45  ;;  %v1725_v45 = vld [vmem:[#allocation7 + $0x6d8] sm:$0xff] }
 0x624   :  { %6918 = vmatpush1.bf16.msra.mxu0 %v8849_v40  ;;  %v7992_v59 = vcombine.high %v1725_v45, %v1729_v1  ;;  %v1733_v40 = vld [vmem:[#allocation7 + $0x718] sm:$0xff] }
 0x625   :  { %6919 = vmatprep.subr.bf16.mxu0 %v8857_v6  ;;  %v1765_v51 = vld [vmem:[#allocation7 + $0x818] sm:$0xff] }
 0x626   :  { %4391 = vmatpush1.bf16.msra.mxu1 %v7935_v57  ;;  %v1737_v57 = vld [vmem:[#allocation7 + $0x738] sm:$0xff] }
 0x627   :  { %4392 = vmatprep.subr.bf16.mxu1 %v7944_v37  ;;  %v7991_v37 = vcombine.low %v1725_v45, %v1729_v1  ;;  %v8000_v6 = vcombine.high %v1733_v40, %v1737_v57  ;;  %v1777_v25 = vld [vmem:[#allocation7 + $0x878] sm:$0xff] }
 0x628   :  { %6920 = vmatpush1.bf16.msra.mxu0 %v8855_v53  ;;  %v7999_v53 = vcombine.low %v1733_v40, %v1737_v57  ;;  %v1805_v40 = vld [vmem:[#allocation7 + $0x958] sm:$0xff] }
 0x629   :  { %6921 = vmatprep.subr.bf16.mxu0 %v8863_v55  ;;  %v1809_v57 = vld [vmem:[#allocation7 + $0x978] sm:$0xff] }
 0x62a   :  { %4393 = vmatpush1.bf16.msra.mxu1 %v7943_v32  ;;  %v8008_v32 = vcombine.high %v1741_v24, %v1745_v3  ;;  %v1914_v24 = vsub.s32 5, %v9772_v52  ;;  %v8072_v3 = vcombine.high %v1805_v40, %v1809_v57 }
 0x62b   :  { %4394 = vmatprep.subr.bf16.mxu1 %v7952_v29  ;;  %v1749_v29 = vld [vmem:[#allocation7 + $0x798] sm:$0xff] }
 0x62c   :  { %6922 = vmatpush1.bf16.msra.mxu0 %v8861_v41  ;;  %v8016_v55 = vcombine.high %v1749_v29, %v1753_v38  ;;  %v1757_v41 = vld [vmem:[#allocation7 + $0x7d8] sm:$0xff] }
 0x62d   :  { %6923 = vmatprep.subr.bf16.mxu0 %v8869_v18  ;;  %v1769_v18 = vld [vmem:[#allocation7 + $0x838] sm:$0xff] }
 0x62e   :  { %4395 = vmatpush1.bf16.msra.mxu1 %v7951_v34  ;;  %v1761_v34 = vld [vmem:[#allocation7 + $0x7f8] sm:$0xff]  ;;  %v8031_v61 = vcombine.low %v1765_v51, %v1769_v18 }
 0x62f   :  { %4396 = vmatprep.subr.bf16.mxu1 %v7960_v30  ;;  %v8015_v30 = vcombine.low %v1749_v29, %v1753_v38  ;;  %v8024_v56 = vcombine.high %v1757_v41, %v1761_v34  ;;  %v8071_v29 = vcombine.low %v1805_v40, %v1809_v57 }
 0x630   :  { %6924 = vmatpush1.bf16.msra.mxu0 %v8867_v47  ;;  %v8023_v47 = vcombine.low %v1757_v41, %v1761_v34  ;;  %v1825_v41 = vld [vmem:[#allocation7 + $0x9f8] sm:$0xff] }
 0x631   :  { %6946 = vmatprep.subr.bf16.mxu0 %v8875_v12 }
 0x632   :  { %4397 = vmatpush1.bf16.msra.mxu1 %v7959_v50  ;;  %v8032_v50 = vcombine.high %v1765_v51, %v1769_v18 }
 0x633   :  { %4398 = vmatprep.subr.bf16.mxu1 %v7968_v22  ;;  %v1773_v22 = vld [vmem:[#allocation7 + $0x858] sm:$0xff] }
 0x634   :  { %v8040_v12 = vcombine.high %v1773_v22, %v1777_v25  ;;  %v8039_v5 = vcombine.low %v1773_v22, %v1777_v25 }
 0x636   :  { %4399 = vmatpush1.bf16.msra.mxu1 %v7967_v44  ;;  %v1781_v44 = vld [vmem:[#allocation7 + $0x898] sm:$0xff] }
 0x637   :  { %4400 = vmatprep.subr.bf16.mxu1 %v7976_v36  ;;  %v1785_v36 = vld [vmem:[#allocation7 + $0x8b8] sm:$0xff] }
 0x638   :  { %v8048_v63 = vcombine.high %v1781_v44, %v1785_v36  ;;  %v8047_v45 = vcombine.low %v1781_v44, %v1785_v36 }
 0x63a   :  { %4401 = vmatpush1.bf16.msra.mxu1 %v7975_v48  ;;  %v1789_v48 = vld [vmem:[#allocation7 + $0x8d8] sm:$0xff] }
 0x63b   :  { %4402 = vmatprep.subr.bf16.mxu1 %v7984_v33  ;;  %v1793_v33 = vld [vmem:[#allocation7 + $0x8f8] sm:$0xff] }
 0x63c   :  { %v8056_v1 = vcombine.high %v1789_v48, %v1793_v33 }
 0x63e   :  { %4403 = vmatpush1.bf16.msra.mxu1 %v7983_v11  ;;  %v1797_v11 = vld [vmem:[#allocation7 + $0x918] sm:$0xff] }
 0x63f   :  { %4404 = vmatprep.subr.bf16.mxu1 %v7992_v59  ;;  %v1801_v59 = vld [vmem:[#allocation7 + $0x938] sm:$0xff] }
 0x642   :  { %4405 = vmatpush1.bf16.msra.mxu1 %v7991_v37  ;;  %v1910_v37 = vsub.s32 4, %v9772_v52 }
 0x643   :  { %4406 = vmatprep.subr.bf16.mxu1 %v8000_v6  ;;  %v8063_v6 = vcombine.low %v1797_v11, %v1801_v59 }
 0x646   :  { %4407 = vmatpush1.bf16.msra.mxu1 %v7999_v53  ;;  %v1813_v53 = vld [vmem:[#allocation7 + $0x998] sm:$0xff] }
 0x647   :  { %4408 = vmatprep.subr.bf16.mxu1 %v8008_v32  ;;  %v1817_v32 = vld [vmem:[#allocation7 + $0x9b8] sm:$0xff] }
 0x648   :  { %v8080_v38 = vcombine.high %v1813_v53, %v1817_v32  ;;  %v8079_v18 = vcombine.low %v1813_v53, %v1817_v32 }
 0x64a   :  { %4409 = vmatpush1.bf16.msra.mxu1 %v8007_v17 }
 0x64b   :  { %4410 = vmatprep.subr.bf16.mxu1 %v8016_v55  ;;  %v1821_v55 = vld [vmem:[#allocation7 + $0x9d8] sm:$0xff] }
 0x64c   :  { %v8088_v22 = vcombine.high %v1821_v55, %v1825_v41 }
 0x64e   :  { %4411 = vmatpush1.bf16.msra.mxu1 %v8015_v30 }
 0x64f   :  { %4412 = vmatprep.subr.bf16.mxu1 %v8024_v56 }
 0x652   :  { %4413 = vmatpush1.bf16.msra.mxu1 %v8023_v47 }
 0x653   :  { %4435 = vmatprep.subr.bf16.mxu1 %v8032_v50 }
 0x655   :  { %4415 = vmatmul.mubr.bf16.vlgmr.msra.gmra.mrb[48].mxu1 %v10214_v10  ;;  %v8055_v10 = vcombine.low %v1789_v48, %v1793_v33  ;;  %v8087_v48 = vcombine.low %v1821_v55, %v1825_v41  ;;  %v1849_v55 = vld [vmem:[#allocation7 + $0xab8] sm:$0xff] }
 0x656   :  { %4424 = vmatprep.mubr.bf16.mxu1 %v10218_v54  ;;  %4436 = vmatpush1.bf16.msra.mxu1 %v8031_v61  ;;  %v8064_v54 = vcombine.high %v1797_v11, %v1801_v59  ;;  %v1829_v61 = vld [vmem:[#allocation7 + $0xa18] sm:$0xff] }
 0x657   :  { %4437 = vmatprep.subr.bf16.mxu1 %v8040_v12  ;;  %v1833_v12 = vld [vmem:[#allocation7 + $0xa38] sm:$0xff] }
 0x658   :  { %v1837_v59 = vld [vmem:[#allocation7 + $0xa58] sm:$0xff] }
 0x65a   :  { %4438 = vmatpush1.bf16.msra.mxu1 %v8039_v5 }
 0x65b   :  { %4439 = vmatprep.subr.bf16.mxu1 %v8048_v63 }
 0x65d   :  { %4425 = vmatmul.mubr.bf16.gmra.mrb[52].mxu1 %v10234_v46  ;;  %v1911_v46 = vrot.slane %v10275_v2, %v1910_v37 }
 0x65e   :  { %4440 = vmatpush1.bf16.msra.mxu1 %v8047_v45  ;;  %4467 = vmatprep.mubr.bf16.mxu1 %v10112_v15  ;;  %v1915_v15 = vrot.slane %v10275_v2, %v1914_v24  ;;  %v8096_v45 = vcombine.high %v1829_v61, %v1833_v12 }
 0x65f   :  { %4441 = vmatprep.subr.bf16.mxu1 %v8056_v1 }
 0x662   :  { %4442 = vmatpush1.bf16.msra.mxu1 %v8055_v10  ;;  %v1841_v10 = vld [vmem:[#allocation7 + $0xa78] sm:$0xff] }
 0x663   :  { %4443 = vmatprep.subr.bf16.mxu1 %v8064_v54 }
 0x666   :  { %4444 = vmatpush1.bf16.msra.mxu1 %v8063_v6 }
 0x667   :  { %4445 = vmatprep.subr.bf16.mxu1 %v8072_v3  ;;  %v8095_v3 = vcombine.low %v1829_v61, %v1833_v12  ;;  %v1861_v61 = vld [vmem:[#allocation7 + $0xb18] sm:$0xff] }
 0x668   :  { %v4310_v17 = vpop.f32.mrb[40].mxu0  ;;  %v1865_v12 = vld [vmem:[#allocation7 + $0xb38] sm:$0xff] }
 0x669   :  { %v8561_v34 = vadd.f32 %v4310_v17, %v1911_v46  ;;  %v4312_v30 = vpop.f32.mrb[41].mxu0  ;;  %v1845_v17 = vld [vmem:[#allocation7 + $0xa98] sm:$0xff] }
 0x66a   :  { %v8562_v56 = vadd.f32 %v4312_v30, %v1915_v15  ;;  %v4314_v51 = vpop.f32.mrb[42].mxu0  ;;  %4446 = vmatpush1.bf16.msra.mxu1 %v8071_v29  ;;  %v8104_v29 = vcombine.high %v1837_v59, %v1841_v10 }
 0x66b   :  { %v8563_v47 = vadd.f32 %v4314_v51, %v1911_v46  ;;  %v4316_v50 = vpop.f32.mrb[43].mxu0  ;;  %4447 = vmatprep.subr.bf16.mxu1 %v8080_v38  ;;  %v4492_v44 = vmax.f32 %v8561_v34, 0.0  ;;  %v8103_v51 = vcombine.low %v1837_v59, %v1841_v10  ;;  %v1881_v59 = vld [vmem:[#allocation7 + $0xbb8] sm:$0xff] }
 0x66c   :  { %v8564_v25 = vadd.f32 %v4316_v50, %v1915_v15  ;;  %v4493_v5 = vmax.f32 %v8562_v56, 0.0 }
 0x66d   :  { %v4500_v36 = vmax.f32 %v8563_v47, 0.0  ;;  %v8112_v47 = vcombine.high %v1845_v17, %v1849_v55 }
 0x66e   :  { %v4501_v63 = vmax.f32 %v8564_v25, 0.0  ;;  %4448 = vmatpush1.bf16.msra.mxu1 %v8079_v18  ;;  %v8111_v25 = vcombine.low %v1845_v17, %v1849_v55  ;;  %v8834_v17 = vld [vmem:[#allocation10 + $0x38] ss:$24 sps:$4 sm:$0xff]   ;;  %v8842_v55 = vld [vmem:[#allocation10 + $0x6c] ss:$24 sps:$4 sm:$0xff]  }
 0x66f   :  { %v10319_v33 = vpack.c.bf16 %v4500_v36, %v4492_v44  ;;  %4449 = vmatprep.subr.bf16.mxu1 %v8088_v22  ;;  %v1853_v22 = vld [vmem:[#allocation7 + $0xad8] sm:$0xff]  ;;  %v8128_v36 = vcombine.high %v1861_v61, %v1865_v12 }
 0x670   :  { %v10321_v1 = vpack.c.bf16 %v4501_v63, %v4493_v5  ;;  %v4320_v11 = vpop.f32.mrb[44].mxu0  ;;  %v1869_v5 = vld [vmem:[#allocation7 + $0xb58] sm:$0xff] }
 0x671   :  { %v8565_v54 = vadd.f32 %v4320_v11, %v1911_v46  ;;  %v4322_v40 = vpop.f32.mrb[45].mxu0  ;;  %v1873_v63 = vld [vmem:[#allocation7 + $0xb78] sm:$0xff] }
 0x672   :  { %v8566_v57 = vadd.f32 %v4322_v40, %v1915_v15  ;;  %v4324_v6 = vpop.f32.mrb[46].mxu0  ;;  %4450 = vmatpush1.bf16.msra.mxu1 %v8087_v48  ;;  %v8127_v48 = vcombine.low %v1861_v61, %v1865_v12  ;;  %v1877_v11 = vld [vmem:[#allocation7 + $0xb98] sm:$0xff]  ;;  %v8135_v10 = vcombine.low %v1869_v5, %v1873_v63 }
 0x673   :  { %v8567_v53 = vadd.f32 %v4324_v6, %v1911_v46  ;;  %v4326_v32 = vpop.f32.mrb[47].mxu0  ;;  %4451 = vmatprep.subr.bf16.mxu1 %v8096_v45  ;;  %v4508_v41 = vmax.f32 %v8565_v54, 0.0  ;;  %v1857_v46 = vld [vmem:[#allocation7 + $0xaf8] sm:$0xff]  ;;  %v8136_v45 = vcombine.high %v1869_v5, %v1873_v63  ;;  %v8144_v54 = vcombine.high %v1877_v11, %v1881_v59  ;;  %v8864_v5 = vld [vmem:[#allocation10 + $0x128] ss:$24 sps:$4 sm:$0xff]  }
 0x674   :  { %v8568_v38 = vadd.f32 %v4326_v32, %v1915_v15  ;;  %v4509_v30 = vmax.f32 %v8566_v57, 0.0  ;;  %v8120_v15 = vcombine.high %v1853_v22, %v1857_v46  ;;  %v8119_v44 = vcombine.low %v1853_v22, %v1857_v46  ;;  %v1885_v40 = vld [vmem:[#allocation7 + $0xbd8] sm:$0xff]  ;;  %v8830_v32 = vld [vmem:[#allocation10 + $0xc] ss:$24 sps:$4 sm:$0xff]  }
 0x675   :  { %v4516_v34 = vmax.f32 %v8567_v53, 0.0  ;;  %v1889_v57 = vld [vmem:[#allocation7 + $0xbf8] sm:$0xff]  ;;  %v8143_v6 = vcombine.low %v1877_v11, %v1881_v59 }
 0x676   :  { %v4517_v56 = vmax.f32 %v8568_v38, 0.0  ;;  %4452 = vmatpush1.bf16.msra.mxu1 %v8095_v3  ;;  %v8152_v3 = vcombine.high %v1885_v40, %v1889_v57  ;;  %v8151_v53 = vcombine.low %v1885_v40, %v1889_v57  ;;  %v8836_v38 = vld [vmem:[#allocation10 + $0x3c] ss:$24 sps:$4 sm:$0xff]   ;;  %v8858_v46 = vld [vmem:[#allocation10 + $0xf8] ss:$24 sps:$4 sm:$0xff]  }
 0x677   :  { %v10323_v18 = vpack.c.bf16 %v4516_v34, %v4508_v41  ;;  %4453 = vmatprep.subr.bf16.mxu1 %v8104_v29  ;;  %v8828_v29 = vld [vmem:[#allocation10 + $0x8] ss:$24 sps:$4 sm:$0xff]   ;;  %v8848_v34 = vld [vmem:[#allocation10 + $0x9c] ss:$24 sps:$4 sm:$0xff]  }
 0x678   :  { %v10325_v50 = vpack.c.bf16 %v4517_v56, %v4509_v30  ;;  %v8840_v41 = vld [vmem:[#allocation10 + $0x68] ss:$24 sps:$4 sm:$0xff]   ;;  %v8846_v30 = vld [vmem:[#allocation10 + $0x98] ss:$24 sps:$4 sm:$0xff]   ;;  %v8854_v56 = vld [vmem:[#allocation10 + $0xcc] ss:$24 sps:$4 sm:$0xff]  }
 0x67a   :  { %4454 = vmatpush1.bf16.msra.mxu1 %v8103_v51  ;;  %v1906_v51 = vsub.s32 3, %v9772_v52 }
 0x67b   :  { %4455 = vmatprep.subr.bf16.mxu1 %v8112_v47  ;;  %v8860_v47 = vld [vmem:[#allocation10 + $0xfc] ss:$24 sps:$4 sm:$0xff]  }
 0x67e   :  { %4456 = vmatpush1.bf16.msra.mxu1 %v8111_v25  ;;  %v8866_v25 = vld [vmem:[#allocation10 + $0x12c] ss:$24 sps:$4 sm:$0xff]  }
 0x67f   :  { %4457 = vmatprep.subr.bf16.mxu1 %v8120_v15 }
 0x682   :  { %4458 = vmatpush1.bf16.msra.mxu1 %v8119_v44 }
 0x683   :  { %4459 = vmatprep.subr.bf16.mxu1 %v8128_v36 }
 0x686   :  { %4460 = vmatpush1.bf16.msra.mxu1 %v8127_v48 }
 0x687   :  { %4461 = vmatprep.subr.bf16.mxu1 %v8136_v45  ;;  %v8872_v45 = vld [vmem:[#allocation10 + $0x15c] ss:$24 sps:$4 sm:$0xff]  }
 0x68a   :  { %4462 = vmatpush1.bf16.msra.mxu1 %v8135_v10 }
 0x68b   :  { %4463 = vmatprep.subr.bf16.mxu1 %v8144_v54 }
 0x68e   :  { %4464 = vmatpush1.bf16.msra.mxu1 %v8143_v6  ;;  %v8878_v6 = vld [vmem:[#allocation10 + $0x18c] ss:$24 sps:$4 sm:$0xff]  }
 0x68f   :  { %4465 = vmatprep.subr.bf16.mxu1 %v8152_v3 }
 0x692   :  { %4466 = vmatpush1.bf16.msra.mxu1 %v8151_v53 }
 0x693   :  { %7052 = vmatprep.subr.bf16.mxu1 %v8830_v32  ;;  %v8873_v32 = vld [vmem:[#allocation10 + $0x600] ss:$24 sps:$4 sm:$0xff]  }
 0x695   :  { %4468 = vmatmul.mubr.bf16.vlgmr.msra.gmra.mrb[48].mxu1 %v10120_v20  ;;  %v1902_v20 = vsub.s32 2, %v9772_v52 }
 0x696   :  { %4477 = vmatprep.mubr.bf16.mxu1 %v10172_v7  ;;  %7053 = vmatpush1.bf16.msra.mxu1 %v8828_v29  ;;  %v8852_v7 = vld [vmem:[#allocation10 + $0xc8] ss:$24 sps:$4 sm:$0xff]  }
 0x697   :  { %7054 = vmatprep.subr.bf16.mxu1 %v8836_v38  ;;  %v1903_v22 = vrot.slane %v10275_v2, %v1902_v20 }
 0x69a   :  { %7055 = vmatpush1.bf16.msra.mxu1 %v8834_v17  ;;  %v8881_v17 = vld [vmem:[#allocation10 + $0x634] ss:$24 sps:$4 sm:$0xff]  }
 0x69b   :  { %7056 = vmatprep.subr.bf16.mxu1 %v8842_v55 }
 0x69d   :  { %4478 = vmatmul.mubr.bf16.gmra.mrb[52].mxu1 %v10180_v23  ;;  %v1907_v23 = vrot.slane %v10275_v2, %v1906_v51  ;;  %v8870_v2 = vld [vmem:[#allocation10 + $0x158] ss:$24 sps:$4 sm:$0xff]  }
 0x69e   :  { %7057 = vmatpush1.bf16.msra.mxu1 %v8840_v41  ;;  %7084 = vmatprep.mubr.bf16.mxu1 %v10289_v9 }
 0x69f   :  { %7058 = vmatprep.subr.bf16.mxu1 %v8848_v34  ;;  %v8876_v34 = vld [vmem:[#allocation10 + $0x188] ss:$24 sps:$4 sm:$0xff]  }
 0x6a2   :  { %7059 = vmatpush1.bf16.msra.mxu1 %v8846_v30 }
 0x6a3   :  { %7060 = vmatprep.subr.bf16.mxu1 %v8854_v56 }
 0x6a6   :  { %7061 = vmatpush1.bf16.msra.mxu1 %v8852_v7  ;;  %v8884_v7 = vld [vmem:[#allocation10 + $0x1bc] ss:$24 sps:$4 sm:$0xff]  }
 0x6a7   :  { %7062 = vmatprep.subr.bf16.mxu1 %v8860_v47 }
 0x6a8   :  { %v4151_v15 = vpop.f32.mrb[40].mxu1 }
 0x6a9   :  { %v8553_v61 = vadd.f32 %v4151_v15, %v1903_v22  ;;  %v4153_v12 = vpop.f32.mrb[41].mxu1 }
 0x6aa   :  { %v8554_v44 = vadd.f32 %v4153_v12, %v1907_v23  ;;  %v4155_v36 = vpop.f32.mrb[42].mxu1  ;;  %7063 = vmatpush1.bf16.msra.mxu1 %v8858_v46  ;;  %v8879_v46 = vld [vmem:[#allocation10 + $0x630] ss:$24 sps:$4 sm:$0xff]  }
 0x6ab   :  { %v8555_v63 = vadd.f32 %v4155_v36, %v1903_v22  ;;  %v4157_v48 = vpop.f32.mrb[43].mxu1  ;;  %7064 = vmatprep.subr.bf16.mxu1 %v8866_v25  ;;  %v4490_v59 = vmax.f32 %v8553_v61, 0.0  ;;  %v8887_v61 = vld [vmem:[#allocation10 + $0x664] ss:$24 sps:$4 sm:$0xff]   ;;  %v8882_v36 = vld [vmem:[#allocation10 + $0x1b8] ss:$24 sps:$4 sm:$0xff]  }
 0x6ac   :  { %v8556_v11 = vadd.f32 %v4157_v48, %v1907_v23  ;;  %v4491_v54 = vmax.f32 %v8554_v44, 0.0  ;;  %v8885_v48 = vld [vmem:[#allocation10 + $0x660] ss:$24 sps:$4 sm:$0xff]  }
 0x6ad   :  { %v4498_v10 = vmax.f32 %v8555_v63, 0.0 }
 0x6ae   :  { %v4499_v40 = vmax.f32 %v8556_v11, 0.0  ;;  %7065 = vmatpush1.bf16.msra.mxu1 %v8864_v5  ;;  %v8896_v11 = vld [vmem:[#allocation10 + $0x21c] ss:$24 sps:$4 sm:$0xff]  }
 0x6af   :  { %v10339_v57 = vpack.c.bf16 %v4498_v10, %v4490_v59  ;;  %7066 = vmatprep.subr.bf16.mxu1 %v8872_v45  ;;  %v8888_v45 = vld [vmem:[#allocation10 + $0x1e8] ss:$24 sps:$4 sm:$0xff]   ;;  %v8899_v10 = vld [vmem:[#allocation10 + $0x6c4] ss:$24 sps:$4 sm:$0xff]  }
 0x6b0   :  { %v10341_v3 = vpack.c.bf16 %v4499_v40, %v4491_v54  ;;  %v4161_v53 = vpop.f32.mrb[44].mxu1  ;;  %v8891_v59 = vld [vmem:[#allocation10 + $0x690] ss:$24 sps:$4 sm:$0xff]   ;;  %v8902_v40 = vld [vmem:[#allocation10 + $0x24c] ss:$24 sps:$4 sm:$0xff]  }
 0x6b1   :  { %v8557_v29 = vadd.f32 %v4161_v53, %v1903_v22  ;;  %v4163_v38 = vpop.f32.mrb[45].mxu1  ;;  %v8894_v54 = vld [vmem:[#allocation10 + $0x218] ss:$24 sps:$4 sm:$0xff]   ;;  %v8900_v53 = vld [vmem:[#allocation10 + $0x248] ss:$24 sps:$4 sm:$0xff]  }
 0x6b2   :  { %v8558_v55 = vadd.f32 %v4163_v38, %v1907_v23  ;;  %v4165_v41 = vpop.f32.mrb[46].mxu1  ;;  %6925 = vmatprep.mubr.bf16.mxu0 %v10341_v3  ;;  %7067 = vmatpush1.bf16.msra.mxu1 %v8870_v2  ;;  %v8897_v2 = vld [vmem:[#allocation10 + $0x6c0] ss:$24 sps:$4 sm:$0xff]   ;;  %v8911_v38 = vld [vmem:[#allocation10 + $0x724] ss:$24 sps:$4 sm:$0xff]  }
 0x6b3   :  { %v8559_v30 = vadd.f32 %v4165_v41, %v1903_v22  ;;  %v4167_v56 = vpop.f32.mrb[47].mxu1  ;;  %6926 = vmatmul.mubr.bf16.vlgmr.msra.gmra.mrb[48].mxu0 %v10339_v57  ;;  %7068 = vmatprep.subr.bf16.mxu1 %v8878_v6  ;;  %v4506_v25 = vmax.f32 %v8557_v29, 0.0  ;;  %v8890_v22 = vld [vmem:[#allocation10 + $0x1ec] ss:$24 sps:$4 sm:$0xff]   ;;  %v8903_v29 = vld [vmem:[#allocation10 + $0x6f0] ss:$24 sps:$4 sm:$0xff]  }
 0x6b4   :  { %v8560_v47 = vadd.f32 %v4167_v56, %v1907_v23  ;;  %6947 = vmatpush1.bf16.msra.mxu0 %v8873_v32  ;;  %v4507_v12 = vmax.f32 %v8558_v55, 0.0  ;;  %v8893_v23 = vld [vmem:[#allocation10 + $0x694] ss:$24 sps:$4 sm:$0xff]   ;;  %v8909_v41 = vld [vmem:[#allocation10 + $0x720] ss:$24 sps:$4 sm:$0xff]  }
 0x6b5   :  { %v4514_v15 = vmax.f32 %v8559_v30, 0.0  ;;  %6948 = vmatprep.subr.bf16.mxu0 %v8881_v17  ;;  %v8905_v6 = vld [vmem:[#allocation10 + $0x6f4] ss:$24 sps:$4 sm:$0xff]   ;;  %v8906_v17 = vld [vmem:[#allocation10 + $0x278] ss:$24 sps:$4 sm:$0xff]  }
 0x6b6   :  { %v4515_v44 = vmax.f32 %v8560_v47, 0.0  ;;  %7069 = vmatpush1.bf16.msra.mxu1 %v8876_v34  ;;  %v8908_v32 = vld [vmem:[#allocation10 + $0x27c] ss:$24 sps:$4 sm:$0xff]   ;;  %v8914_v55 = vld [vmem:[#allocation10 + $0x2ac] ss:$24 sps:$4 sm:$0xff]  }
 0x6b7   :  { %v10345_v5 = vpack.c.bf16 %v4514_v15, %v4506_v25  ;;  %7070 = vmatprep.subr.bf16.mxu1 %v8884_v7  ;;  %v8917_v34 = vld [vmem:[#allocation10 + $0x754] ss:$24 sps:$4 sm:$0xff]   ;;  %v8912_v30 = vld [vmem:[#allocation10 + $0x2a8] ss:$24 sps:$4 sm:$0xff]   ;;  %v8923_v47 = vld [vmem:[#allocation10 + $0x784] ss:$24 sps:$4 sm:$0xff]  }
 0x6b8   :  { %v10347_v63 = vpack.c.bf16 %v4515_v44, %v4507_v12  ;;  %6949 = vmatpush1.bf16.msra.mxu0 %v8879_v46  ;;  %v8920_v56 = vld [vmem:[#allocation10 + $0x2dc] ss:$24 sps:$4 sm:$0xff]   ;;  %v8915_v7 = vld [vmem:[#allocation10 + $0x750] ss:$24 sps:$4 sm:$0xff]   ;;  %v8926_v25 = vld [vmem:[#allocation10 + $0x30c] ss:$24 sps:$4 sm:$0xff]  }
 0x6b9   :  { %6950 = vmatprep.subr.bf16.mxu0 %v8887_v61  ;;  %v8918_v46 = vld [vmem:[#allocation10 + $0x2d8] ss:$24 sps:$4 sm:$0xff]   ;;  %v8929_v61 = vld [vmem:[#allocation10 + $0x7b4] ss:$24 sps:$4 sm:$0xff]   ;;  %v8924_v12 = vld [vmem:[#allocation10 + $0x308] ss:$24 sps:$4 sm:$0xff]  }
 0x6ba   :  { %6935 = vmatprep.mubr.bf16.mxu0 %v10347_v63  ;;  %7071 = vmatpush1.bf16.msra.mxu1 %v8882_v36  ;;  %v8921_v15 = vld [vmem:[#allocation10 + $0x780] ss:$24 sps:$4 sm:$0xff]   ;;  %v8932_v44 = vld [vmem:[#allocation10 + $0x33c] ss:$24 sps:$4 sm:$0xff]   ;;  %v8927_v36 = vld [vmem:[#allocation10 + $0x7b0] ss:$24 sps:$4 sm:$0xff]  }
 0x6bb   :  { %6936 = vmatmul.mubr.bf16.gmra.mrb[52].mxu0 %v10345_v5  ;;  %7072 = vmatprep.subr.bf16.mxu1 %v8890_v22  ;;  %v8935_v22 = vld [vmem:[#allocation10 + $0x7e4] ss:$24 sps:$4 sm:$0xff]  }
 0x6bc   :  { %6951 = vmatpush1.bf16.msra.mxu0 %v8885_v48  ;;  %6978 = vmatprep.mubr.bf16.mxu0 %v10321_v1  ;;  %v8930_v48 = vld [vmem:[#allocation10 + $0x338] ss:$24 sps:$4 sm:$0xff]  }
 0x6bd   :  { %6952 = vmatprep.subr.bf16.mxu0 %v8893_v23  ;;  %v8938_v23 = vld [vmem:[#allocation10 + $0x36c] ss:$24 sps:$4 sm:$0xff]  }
 0x6be   :  { %7073 = vmatpush1.bf16.msra.mxu1 %v8888_v45  ;;  %v8933_v45 = vld [vmem:[#allocation10 + $0x7e0] ss:$24 sps:$4 sm:$0xff]  }
 0x6bf   :  { %7074 = vmatprep.subr.bf16.mxu1 %v8896_v11  ;;  %v8941_v11 = vld [vmem:[#allocation10 + $0x814] ss:$24 sps:$4 sm:$0xff]  }
 0x6c0   :  { %6953 = vmatpush1.bf16.msra.mxu0 %v8891_v59  ;;  %v8936_v59 = vld [vmem:[#allocation10 + $0x368] ss:$24 sps:$4 sm:$0xff]  }
 0x6c1   :  { %6954 = vmatprep.subr.bf16.mxu0 %v8899_v10  ;;  %v8944_v10 = vld [vmem:[#allocation10 + $0x39c] ss:$24 sps:$4 sm:$0xff]  }
 0x6c2   :  { %7075 = vmatpush1.bf16.msra.mxu1 %v8894_v54  ;;  %v8939_v54 = vld [vmem:[#allocation10 + $0x810] ss:$24 sps:$4 sm:$0xff]  }
 0x6c3   :  { %7076 = vmatprep.subr.bf16.mxu1 %v8902_v40  ;;  %v8947_v40 = vld [vmem:[#allocation10 + $0x844] ss:$24 sps:$4 sm:$0xff]  }
 0x6c4   :  { %6955 = vmatpush1.bf16.msra.mxu0 %v8897_v2  ;;  %v8942_v2 = vld [vmem:[#allocation10 + $0x398] ss:$24 sps:$4 sm:$0xff]  }
 0x6c5   :  { %6956 = vmatprep.subr.bf16.mxu0 %v8905_v6  ;;  %v8950_v6 = vld [vmem:[#allocation10 + $0x3cc] ss:$24 sps:$4 sm:$0xff]  }
 0x6c6   :  { %7077 = vmatpush1.bf16.msra.mxu1 %v8900_v53  ;;  %v8945_v53 = vld [vmem:[#allocation10 + $0x840] ss:$24 sps:$4 sm:$0xff]  }
 0x6c7   :  { %7078 = vmatprep.subr.bf16.mxu1 %v8908_v32  ;;  %v8953_v32 = vld [vmem:[#allocation10 + $0x874] ss:$24 sps:$4 sm:$0xff]  }
 0x6c8   :  { %6957 = vmatpush1.bf16.msra.mxu0 %v8903_v29  ;;  %v8948_v29 = vld [vmem:[#allocation10 + $0x3c8] ss:$24 sps:$4 sm:$0xff]  }
 0x6c9   :  { %6958 = vmatprep.subr.bf16.mxu0 %v8911_v38  ;;  %v8956_v38 = vld [vmem:[#allocation10 + $0x3fc] ss:$24 sps:$4 sm:$0xff]  }
 0x6ca   :  { %7079 = vmatpush1.bf16.msra.mxu1 %v8906_v17  ;;  %v8951_v17 = vld [vmem:[#allocation10 + $0x870] ss:$24 sps:$4 sm:$0xff]  }
 0x6cb   :  { %7080 = vmatprep.subr.bf16.mxu1 %v8914_v55  ;;  %v8959_v55 = vld [vmem:[#allocation10 + $0x8a4] ss:$24 sps:$4 sm:$0xff]  }
 0x6cc   :  { %6959 = vmatpush1.bf16.msra.mxu0 %v8909_v41  ;;  %v8954_v41 = vld [vmem:[#allocation10 + $0x3f8] ss:$24 sps:$4 sm:$0xff]  }
 0x6cd   :  { %6960 = vmatprep.subr.bf16.mxu0 %v8917_v34  ;;  %v8962_v34 = vld [vmem:[#allocation10 + $0x42c] ss:$24 sps:$4 sm:$0xff]  }
 0x6ce   :  { %7081 = vmatpush1.bf16.msra.mxu1 %v8912_v30  ;;  %v8957_v30 = vld [vmem:[#allocation10 + $0x8a0] ss:$24 sps:$4 sm:$0xff]  }
 0x6cf   :  { %7082 = vmatprep.subr.bf16.mxu1 %v8920_v56  ;;  %v8965_v56 = vld [vmem:[#allocation10 + $0x8d4] ss:$24 sps:$4 sm:$0xff]  }
 0x6d0   :  { %6961 = vmatpush1.bf16.msra.mxu0 %v8915_v7  ;;  %v8960_v7 = vld [vmem:[#allocation10 + $0x428] ss:$24 sps:$4 sm:$0xff]  }
 0x6d1   :  { %6962 = vmatprep.subr.bf16.mxu0 %v8923_v47  ;;  %v8968_v47 = vld [vmem:[#allocation10 + $0x45c] ss:$24 sps:$4 sm:$0xff]  }
 0x6d2   :  { %7083 = vmatpush1.bf16.msra.mxu1 %v8918_v46  ;;  %v8963_v46 = vld [vmem:[#allocation10 + $0x8d0] ss:$24 sps:$4 sm:$0xff]  }
 0x6d3   :  { %7105 = vmatprep.subr.bf16.mxu1 %v8926_v25  ;;  %v9019_v25 = vld [vmem:[#allocation10 + $0x904] ss:$24 sps:$4 sm:$0xff]  }
 0x6d4   :  { %6963 = vmatpush1.bf16.msra.mxu0 %v8921_v15  ;;  %v8966_v15 = vld [vmem:[#allocation10 + $0x458] ss:$24 sps:$4 sm:$0xff]  }
 0x6d5   :  { %7085 = vmatmul.mubr.bf16.vlgmr.msra.gmra.mrb[56].mxu1 %v10287_v49  ;;  %6964 = vmatprep.subr.bf16.mxu0 %v8929_v61  ;;  %v8971_v61 = vld [vmem:[#allocation10 + $0x48c] ss:$24 sps:$4 sm:$0xff]  }
 0x6d6   :  { %7094 = vmatprep.mubr.bf16.mxu1 %v10299_v35  ;;  %7106 = vmatpush1.bf16.msra.mxu1 %v8924_v12  ;;  %v9017_v12 = vld [vmem:[#allocation10 + $0x900] ss:$24 sps:$4 sm:$0xff]  }
 0x6d7   :  { %7107 = vmatprep.subr.bf16.mxu1 %v8932_v44  ;;  %v9025_v44 = vld [vmem:[#allocation10 + $0x934] ss:$24 sps:$4 sm:$0xff]  }
 0x6d8   :  { %6965 = vmatpush1.bf16.msra.mxu0 %v8927_v36  ;;  %v8969_v36 = vld [vmem:[#allocation10 + $0x488] ss:$24 sps:$4 sm:$0xff]  }
 0x6d9   :  { %6966 = vmatprep.subr.bf16.mxu0 %v8935_v22  ;;  %v8974_v22 = vld [vmem:[#allocation10 + $0x4bc] ss:$24 sps:$4 sm:$0xff]  }
 0x6da   :  { %7108 = vmatpush1.bf16.msra.mxu1 %v8930_v48  ;;  %v9023_v48 = vld [vmem:[#allocation10 + $0x930] ss:$24 sps:$4 sm:$0xff]  }
 0x6db   :  { %7109 = vmatprep.subr.bf16.mxu1 %v8938_v23  ;;  %v9031_v23 = vld [vmem:[#allocation10 + $0x964] ss:$24 sps:$4 sm:$0xff]  }
 0x6dc   :  { %6967 = vmatpush1.bf16.msra.mxu0 %v8933_v45  ;;  %v8972_v45 = vld [vmem:[#allocation10 + $0x4b8] ss:$24 sps:$4 sm:$0xff]  }
 0x6dd   :  { %7095 = vmatmul.mubr.bf16.gmra.mrb[60].mxu1 %v10297_v8  ;;  %6968 = vmatprep.subr.bf16.mxu0 %v8941_v11  ;;  %v8977_v11 = vld [vmem:[#allocation10 + $0x4ec] ss:$24 sps:$4 sm:$0xff]  }
 0x6de   :  { %7110 = vmatpush1.bf16.msra.mxu1 %v8936_v59  ;;  %7137 = vmatprep.mubr.bf16.mxu1 %v10341_v3  ;;  %v9029_v59 = vld [vmem:[#allocation10 + $0x960] ss:$24 sps:$4 sm:$0xff]  }
 0x6df   :  { %7111 = vmatprep.subr.bf16.mxu1 %v8944_v10  ;;  %v9037_v10 = vld [vmem:[#allocation10 + $0x994] ss:$24 sps:$4 sm:$0xff]  }
 0x6e0   :  { %6969 = vmatpush1.bf16.msra.mxu0 %v8939_v54  ;;  %v8975_v54 = vld [vmem:[#allocation10 + $0x4e8] ss:$24 sps:$4 sm:$0xff]  }
 0x6e1   :  { %6970 = vmatprep.subr.bf16.mxu0 %v8947_v40  ;;  %v8980_v40 = vld [vmem:[#allocation10 + $0x51c] ss:$24 sps:$4 sm:$0xff]  }
 0x6e2   :  { %7112 = vmatpush1.bf16.msra.mxu1 %v8942_v2  ;;  %v9035_v2 = vld [vmem:[#allocation10 + $0x990] ss:$24 sps:$4 sm:$0xff]  }
 0x6e3   :  { %7113 = vmatprep.subr.bf16.mxu1 %v8950_v6  ;;  %v9043_v6 = vld [vmem:[#allocation10 + $0x9c4] ss:$24 sps:$4 sm:$0xff]  }
 0x6e4   :  { %6971 = vmatpush1.bf16.msra.mxu0 %v8945_v53  ;;  %v8978_v53 = vld [vmem:[#allocation10 + $0x518] ss:$24 sps:$4 sm:$0xff]  }
 0x6e5   :  { %6972 = vmatprep.subr.bf16.mxu0 %v8953_v32  ;;  %v8983_v32 = vld [vmem:[#allocation10 + $0x54c] ss:$24 sps:$4 sm:$0xff]  }
 0x6e6   :  { %7114 = vmatpush1.bf16.msra.mxu1 %v8948_v29  ;;  %v9041_v29 = vld [vmem:[#allocation10 + $0x9c0] ss:$24 sps:$4 sm:$0xff]  }
 0x6e7   :  { %7115 = vmatprep.subr.bf16.mxu1 %v8956_v38  ;;  %v9049_v38 = vld [vmem:[#allocation10 + $0x9f4] ss:$24 sps:$4 sm:$0xff]  }
 0x6e8   :  { %6973 = vmatpush1.bf16.msra.mxu0 %v8951_v17  ;;  %v8981_v17 = vld [vmem:[#allocation10 + $0x548] ss:$24 sps:$4 sm:$0xff]  }
 0x6e9   :  { %6974 = vmatprep.subr.bf16.mxu0 %v8959_v55  ;;  %v8986_v55 = vld [vmem:[#allocation10 + $0x57c] ss:$24 sps:$4 sm:$0xff]  }
 0x6ea   :  { %7116 = vmatpush1.bf16.msra.mxu1 %v8954_v41  ;;  %v9047_v41 = vld [vmem:[#allocation10 + $0x9f0] ss:$24 sps:$4 sm:$0xff]  }
 0x6eb   :  { %7117 = vmatprep.subr.bf16.mxu1 %v8962_v34  ;;  %v9055_v34 = vld [vmem:[#allocation10 + $0xa24] ss:$24 sps:$4 sm:$0xff]  }
 0x6ec   :  { %6975 = vmatpush1.bf16.msra.mxu0 %v8957_v30  ;;  %v8984_v30 = vld [vmem:[#allocation10 + $0x578] ss:$24 sps:$4 sm:$0xff]  }
 0x6ed   :  { %6976 = vmatprep.subr.bf16.mxu0 %v8965_v56  ;;  %v8989_v56 = vld [vmem:[#allocation10 + $0x5ac] ss:$24 sps:$4 sm:$0xff]  }
 0x6ee   :  { %7118 = vmatpush1.bf16.msra.mxu1 %v8960_v7  ;;  %v9053_v7 = vld [vmem:[#allocation10 + $0xa20] ss:$24 sps:$4 sm:$0xff]  }
 0x6ef   :  { %7119 = vmatprep.subr.bf16.mxu1 %v8968_v47  ;;  %v9061_v47 = vld [vmem:[#allocation10 + $0xa54] ss:$24 sps:$4 sm:$0xff]  }
 0x6f0   :  { %6977 = vmatpush1.bf16.msra.mxu0 %v8963_v46  ;;  %v8987_v46 = vld [vmem:[#allocation10 + $0x5a8] ss:$24 sps:$4 sm:$0xff]  }
 0x6f1   :  { %6999 = vmatprep.subr.bf16.mxu0 %v9019_v25  ;;  %v8992_v25 = vld [vmem:[#allocation10 + $0x5dc] ss:$24 sps:$4 sm:$0xff]  }
 0x6f2   :  { %7120 = vmatpush1.bf16.msra.mxu1 %v8966_v15  ;;  %v9059_v15 = vld [vmem:[#allocation10 + $0xa50] ss:$24 sps:$4 sm:$0xff]  }
 0x6f3   :  { %6979 = vmatmul.mubr.bf16.vlgmr.msra.gmra.mrb[48].mxu0 %v10319_v33  ;;  %7121 = vmatprep.subr.bf16.mxu1 %v8971_v61  ;;  %v9067_v61 = vld [vmem:[#allocation10 + $0xa84] ss:$24 sps:$4 sm:$0xff]  }
 0x6f4   :  { %6988 = vmatprep.mubr.bf16.mxu0 %v10325_v50  ;;  %7000 = vmatpush1.bf16.msra.mxu0 %v9017_v12  ;;  %v8990_v12 = vld [vmem:[#allocation10 + $0x5d8] ss:$24 sps:$4 sm:$0xff]  }
 0x6f5   :  { %7001 = vmatprep.subr.bf16.mxu0 %v9025_v44  ;;  %v8995_v44 = vld [vmem:[#allocation10 + $0x60c] ss:$24 sps:$4 sm:$0xff]  }
 0x6f6   :  { %7122 = vmatpush1.bf16.msra.mxu1 %v8969_v36  ;;  %v9065_v36 = vld [vmem:[#allocation10 + $0xa80] ss:$24 sps:$4 sm:$0xff]  }
 0x6f7   :  { %7123 = vmatprep.subr.bf16.mxu1 %v8974_v22  ;;  %v9073_v22 = vld [vmem:[#allocation10 + $0xab4] ss:$24 sps:$4 sm:$0xff]  }
 0x6f8   :  { %7002 = vmatpush1.bf16.msra.mxu0 %v9023_v48  ;;  %v8993_v48 = vld [vmem:[#allocation10 + $0x608] ss:$24 sps:$4 sm:$0xff]  }
 0x6f9   :  { %7003 = vmatprep.subr.bf16.mxu0 %v9031_v23  ;;  %v8998_v23 = vld [vmem:[#allocation10 + $0x63c] ss:$24 sps:$4 sm:$0xff]  }
 0x6fa   :  { %7124 = vmatpush1.bf16.msra.mxu1 %v8972_v45  ;;  %v9071_v45 = vld [vmem:[#allocation10 + $0xab0] ss:$24 sps:$4 sm:$0xff]  }
 0x6fb   :  { %6989 = vmatmul.mubr.bf16.gmra.mrb[52].mxu0 %v10323_v18  ;;  %7125 = vmatprep.subr.bf16.mxu1 %v8977_v11  ;;  %v9079_v11 = vld [vmem:[#allocation10 + $0xae4] ss:$24 sps:$4 sm:$0xff]  }
 0x6fc   :  { %7004 = vmatpush1.bf16.msra.mxu0 %v9029_v59  ;;  %v8996_v59 = vld [vmem:[#allocation10 + $0x638] ss:$24 sps:$4 sm:$0xff]  }
 0x6fd   :  { %7005 = vmatprep.subr.bf16.mxu0 %v9037_v10  ;;  %v9001_v10 = vld [vmem:[#allocation10 + $0x66c] ss:$24 sps:$4 sm:$0xff]  }
 0x6fe   :  { %7126 = vmatpush1.bf16.msra.mxu1 %v8975_v54  ;;  %v9077_v54 = vld [vmem:[#allocation10 + $0xae0] ss:$24 sps:$4 sm:$0xff]  }
 0x6ff   :  { %7127 = vmatprep.subr.bf16.mxu1 %v8980_v40  ;;  %v9085_v40 = vld [vmem:[#allocation10 + $0xb14] ss:$24 sps:$4 sm:$0xff]  }
 0x700   :  { %7006 = vmatpush1.bf16.msra.mxu0 %v9035_v2  ;;  %v8999_v2 = vld [vmem:[#allocation10 + $0x668] ss:$24 sps:$4 sm:$0xff]  }
 0x701   :  { %7007 = vmatprep.subr.bf16.mxu0 %v9043_v6  ;;  %v9004_v6 = vld [vmem:[#allocation10 + $0x69c] ss:$24 sps:$4 sm:$0xff]  }
 0x702   :  { %7128 = vmatpush1.bf16.msra.mxu1 %v8978_v53  ;;  %v9083_v53 = vld [vmem:[#allocation10 + $0xb10] ss:$24 sps:$4 sm:$0xff]  }
 0x703   :  { %7129 = vmatprep.subr.bf16.mxu1 %v8983_v32  ;;  %v9091_v32 = vld [vmem:[#allocation10 + $0xb44] ss:$24 sps:$4 sm:$0xff]  }
 0x704   :  { %7008 = vmatpush1.bf16.msra.mxu0 %v9041_v29  ;;  %v9002_v29 = vld [vmem:[#allocation10 + $0x698] ss:$24 sps:$4 sm:$0xff]  }
 0x705   :  { %7009 = vmatprep.subr.bf16.mxu0 %v9049_v38  ;;  %v9007_v38 = vld [vmem:[#allocation10 + $0x6cc] ss:$24 sps:$4 sm:$0xff]  }
 0x706   :  { %7130 = vmatpush1.bf16.msra.mxu1 %v8981_v17  ;;  %v9089_v17 = vld [vmem:[#allocation10 + $0xb40] ss:$24 sps:$4 sm:$0xff]  }
 0x707   :  { %7131 = vmatprep.subr.bf16.mxu1 %v8986_v55  ;;  %v9097_v55 = vld [vmem:[#allocation10 + $0xb74] ss:$24 sps:$4 sm:$0xff]  }
 0x708   :  { %7010 = vmatpush1.bf16.msra.mxu0 %v9047_v41  ;;  %v9005_v41 = vld [vmem:[#allocation10 + $0x6c8] ss:$24 sps:$4 sm:$0xff]  }
 0x709   :  { %7011 = vmatprep.subr.bf16.mxu0 %v9055_v34  ;;  %v9010_v34 = vld [vmem:[#allocation10 + $0x6fc] ss:$24 sps:$4 sm:$0xff]  }
 0x70a   :  { %7132 = vmatpush1.bf16.msra.mxu1 %v8984_v30  ;;  %v9095_v30 = vld [vmem:[#allocation10 + $0xb70] ss:$24 sps:$4 sm:$0xff]  }
 0x70b   :  { %7133 = vmatprep.subr.bf16.mxu1 %v8989_v56  ;;  %v9103_v56 = vld [vmem:[#allocation10 + $0xba4] ss:$24 sps:$4 sm:$0xff]  }
 0x70c   :  { %7012 = vmatpush1.bf16.msra.mxu0 %v9053_v7  ;;  %v9008_v7 = vld [vmem:[#allocation10 + $0x6f8] ss:$24 sps:$4 sm:$0xff]  }
 0x70d   :  { %7013 = vmatprep.subr.bf16.mxu0 %v9061_v47  ;;  %v9013_v47 = vld [vmem:[#allocation10 + $0x72c] ss:$24 sps:$4 sm:$0xff]  }
 0x70e   :  { %7134 = vmatpush1.bf16.msra.mxu1 %v8987_v46  ;;  %v9101_v46 = vld [vmem:[#allocation10 + $0xba0] ss:$24 sps:$4 sm:$0xff]  }
 0x70f   :  { %7135 = vmatprep.subr.bf16.mxu1 %v8992_v25  ;;  %v9109_v25 = vld [vmem:[#allocation10 + $0xbd4] ss:$24 sps:$4 sm:$0xff]  }
 0x710   :  { %7014 = vmatpush1.bf16.msra.mxu0 %v9059_v15  ;;  %v9011_v15 = vld [vmem:[#allocation10 + $0x728] ss:$24 sps:$4 sm:$0xff]  }
 0x711   :  { %7015 = vmatprep.subr.bf16.mxu0 %v9067_v61  ;;  %v9016_v61 = vld [vmem:[#allocation10 + $0x75c] ss:$24 sps:$4 sm:$0xff]  }
 0x712   :  { %7136 = vmatpush1.bf16.msra.mxu1 %v8990_v12  ;;  %v9107_v12 = vld [vmem:[#allocation10 + $0xbd0] ss:$24 sps:$4 sm:$0xff]  }
 0x713   :  { %7158 = vmatprep.subr.bf16.mxu1 %v8995_v44  ;;  %v9115_v44 = vld [vmem:[#allocation10 + $0x14] ss:$24 sps:$4 sm:$0xff]  }
 0x714   :  { %7016 = vmatpush1.bf16.msra.mxu0 %v9065_v36  ;;  %v9014_v36 = vld [vmem:[#allocation10 + $0x758] ss:$24 sps:$4 sm:$0xff]  }
 0x715   :  { %7138 = vmatmul.mubr.bf16.vlgmr.msra.gmra.mrb[56].mxu1 %v10339_v57  ;;  %7017 = vmatprep.subr.bf16.mxu0 %v9073_v22  ;;  %v9022_v22 = vld [vmem:[#allocation10 + $0x78c] ss:$24 sps:$4 sm:$0xff]  }
 0x716   :  { %7147 = vmatprep.mubr.bf16.mxu1 %v10347_v63  ;;  %7159 = vmatpush1.bf16.msra.mxu1 %v8993_v48  ;;  %v9020_v48 = vld [vmem:[#allocation10 + $0x788] ss:$24 sps:$4 sm:$0xff]  }
 0x717   :  { %7160 = vmatprep.subr.bf16.mxu1 %v8998_v23  ;;  %v9028_v23 = vld [vmem:[#allocation10 + $0x7bc] ss:$24 sps:$4 sm:$0xff]  }
 0x718   :  { %7018 = vmatpush1.bf16.msra.mxu0 %v9071_v45  ;;  %v9026_v45 = vld [vmem:[#allocation10 + $0x7b8] ss:$24 sps:$4 sm:$0xff]  }
 0x719   :  { %7019 = vmatprep.subr.bf16.mxu0 %v9079_v11  ;;  %v9034_v11 = vld [vmem:[#allocation10 + $0x7ec] ss:$24 sps:$4 sm:$0xff]  }
 0x71a   :  { %7161 = vmatpush1.bf16.msra.mxu1 %v8996_v59  ;;  %v9032_v59 = vld [vmem:[#allocation10 + $0x7e8] ss:$24 sps:$4 sm:$0xff]  }
 0x71b   :  { %7162 = vmatprep.subr.bf16.mxu1 %v9001_v10  ;;  %v9040_v10 = vld [vmem:[#allocation10 + $0x81c] ss:$24 sps:$4 sm:$0xff]  }
 0x71c   :  { %7020 = vmatpush1.bf16.msra.mxu0 %v9077_v54  ;;  %v9038_v54 = vld [vmem:[#allocation10 + $0x818] ss:$24 sps:$4 sm:$0xff]  }
 0x71d   :  { %7148 = vmatmul.mubr.bf16.gmra.mrb[60].mxu1 %v10345_v5  ;;  %7021 = vmatprep.subr.bf16.mxu0 %v9085_v40  ;;  %v9046_v40 = vld [vmem:[#allocation10 + $0x84c] ss:$24 sps:$4 sm:$0xff]  }
 0x71e   :  { %7163 = vmatpush1.bf16.msra.mxu1 %v8999_v2  ;;  %7190 = vmatprep.mubr.bf16.mxu1 %v10321_v1  ;;  %v9044_v2 = vld [vmem:[#allocation10 + $0x848] ss:$24 sps:$4 sm:$0xff]  }
 0x71f   :  { %7164 = vmatprep.subr.bf16.mxu1 %v9004_v6  ;;  %v9052_v6 = vld [vmem:[#allocation10 + $0x87c] ss:$24 sps:$4 sm:$0xff]  }
 0x720   :  { %7022 = vmatpush1.bf16.msra.mxu0 %v9083_v53  ;;  %v9050_v53 = vld [vmem:[#allocation10 + $0x878] ss:$24 sps:$4 sm:$0xff]  }
 0x721   :  { %7023 = vmatprep.subr.bf16.mxu0 %v9091_v32  ;;  %v9058_v32 = vld [vmem:[#allocation10 + $0x8ac] ss:$24 sps:$4 sm:$0xff]  }
 0x722   :  { %7165 = vmatpush1.bf16.msra.mxu1 %v9002_v29  ;;  %v9056_v29 = vld [vmem:[#allocation10 + $0x8a8] ss:$24 sps:$4 sm:$0xff]  }
 0x723   :  { %7166 = vmatprep.subr.bf16.mxu1 %v9007_v38  ;;  %v9064_v38 = vld [vmem:[#allocation10 + $0x8dc] ss:$24 sps:$4 sm:$0xff]  }
 0x724   :  { %7024 = vmatpush1.bf16.msra.mxu0 %v9089_v17  ;;  %v9062_v17 = vld [vmem:[#allocation10 + $0x8d8] ss:$24 sps:$4 sm:$0xff]  }
 0x725   :  { %7025 = vmatprep.subr.bf16.mxu0 %v9097_v55  ;;  %v9070_v55 = vld [vmem:[#allocation10 + $0x90c] ss:$24 sps:$4 sm:$0xff]  }
 0x726   :  { %7167 = vmatpush1.bf16.msra.mxu1 %v9005_v41  ;;  %v9068_v41 = vld [vmem:[#allocation10 + $0x908] ss:$24 sps:$4 sm:$0xff]  }
 0x727   :  { %7168 = vmatprep.subr.bf16.mxu1 %v9010_v34  ;;  %v9076_v34 = vld [vmem:[#allocation10 + $0x93c] ss:$24 sps:$4 sm:$0xff]  }
 0x728   :  { %7026 = vmatpush1.bf16.msra.mxu0 %v9095_v30  ;;  %v9074_v30 = vld [vmem:[#allocation10 + $0x938] ss:$24 sps:$4 sm:$0xff]  }
 0x729   :  { %7027 = vmatprep.subr.bf16.mxu0 %v9103_v56  ;;  %v9082_v56 = vld [vmem:[#allocation10 + $0x96c] ss:$24 sps:$4 sm:$0xff]  }
 0x72a   :  { %7169 = vmatpush1.bf16.msra.mxu1 %v9008_v7  ;;  %v9080_v7 = vld [vmem:[#allocation10 + $0x968] ss:$24 sps:$4 sm:$0xff]  }
 0x72b   :  { %7170 = vmatprep.subr.bf16.mxu1 %v9013_v47  ;;  %v9088_v47 = vld [vmem:[#allocation10 + $0x99c] ss:$24 sps:$4 sm:$0xff]  }
 0x72c   :  { %7028 = vmatpush1.bf16.msra.mxu0 %v9101_v46  ;;  %v9086_v46 = vld [vmem:[#allocation10 + $0x998] ss:$24 sps:$4 sm:$0xff]  }
 0x72d   :  { %7029 = vmatprep.subr.bf16.mxu0 %v9109_v25  ;;  %v9094_v25 = vld [vmem:[#allocation10 + $0x9cc] ss:$24 sps:$4 sm:$0xff]  }
 0x72e   :  { %7171 = vmatpush1.bf16.msra.mxu1 %v9011_v15  ;;  %v1918_v15 = vsub.s32 6, %v9772_v52 }
 0x72f   :  { %7172 = vmatprep.subr.bf16.mxu1 %v9016_v61  ;;  %v9092_v61 = vld [vmem:[#allocation10 + $0x9c8] ss:$24 sps:$4 sm:$0xff]  }
 0x730   :  { %7030 = vmatpush1.bf16.msra.mxu0 %v9107_v12  ;;  %v1922_v12 = vsub.s32 7, %v9772_v52 }
 0x731   :  { %7264 = vmatprep.subr.bf16.mxu0 %v9115_v44  ;;  %v9100_v44 = vld [vmem:[#allocation10 + $0x9fc] ss:$24 sps:$4 sm:$0xff]  }
 0x732   :  { %7173 = vmatpush1.bf16.msra.mxu1 %v9014_v36  ;;  %v9385_v36 = vld [vmem:[#allocation8] sm:$0xff] }
 0x733   :  { %7174 = vmatprep.subr.bf16.mxu1 %v9022_v22  ;;  %v1919_v22 = vrot.slane %v9385_v36, %v1918_v15 }
 0x736   :  { %7175 = vmatpush1.bf16.msra.mxu1 %v9020_v48  ;;  %v1923_v48 = vrot.slane %v9385_v36, %v1922_v12  ;;  %v9116_v36 = vld [vmem:[#allocation10 + $0xa88] ss:$24 sps:$4 sm:$0xff]  }
 0x737   :  { %7176 = vmatprep.subr.bf16.mxu1 %v9028_v23  ;;  %v9098_v23 = vld [vmem:[#allocation10 + $0x9f8] ss:$24 sps:$4 sm:$0xff]  }
 0x73a   :  { %7177 = vmatpush1.bf16.msra.mxu1 %v9026_v45  ;;  %v9106_v45 = vld [vmem:[#allocation10 + $0xa2c] ss:$24 sps:$4 sm:$0xff]  }
 0x73b   :  { %7178 = vmatprep.subr.bf16.mxu1 %v9034_v11 }
 0x73e   :  { %7179 = vmatpush1.bf16.msra.mxu1 %v9032_v59 }
 0x73f   :  { %7180 = vmatprep.subr.bf16.mxu1 %v9040_v10 }
 0x742   :  { %7181 = vmatpush1.bf16.msra.mxu1 %v9038_v54 }
 0x743   :  { %7182 = vmatprep.subr.bf16.mxu1 %v9046_v40 }
 0x746   :  { %7183 = vmatpush1.bf16.msra.mxu1 %v9044_v2  ;;  %v9104_v2 = vld [vmem:[#allocation10 + $0xa28] ss:$24 sps:$4 sm:$0xff]  }
 0x747   :  { %7184 = vmatprep.subr.bf16.mxu1 %v9052_v6 }
 0x74a   :  { %7185 = vmatpush1.bf16.msra.mxu1 %v9050_v53 }
 0x74b   :  { %7186 = vmatprep.subr.bf16.mxu1 %v9058_v32  ;;  %v9112_v32 = vld [vmem:[#allocation10 + $0xa5c] ss:$24 sps:$4 sm:$0xff]  }
 0x74e   :  { %7187 = vmatpush1.bf16.msra.mxu1 %v9056_v29 }
 0x74f   :  { %7188 = vmatprep.subr.bf16.mxu1 %v9064_v38 }
 0x752   :  { %7189 = vmatpush1.bf16.msra.mxu1 %v9062_v17 }
 0x753   :  { %7211 = vmatprep.subr.bf16.mxu1 %v9070_v55 }
 0x755   :  { %7191 = vmatmul.mubr.bf16.vlgmr.msra.gmra.mrb[56].mxu1 %v10319_v33 }
 0x756   :  { %7200 = vmatprep.mubr.bf16.mxu1 %v10325_v50  ;;  %7212 = vmatpush1.bf16.msra.mxu1 %v9068_v41 }
 0x757   :  { %7213 = vmatprep.subr.bf16.mxu1 %v9076_v34  ;;  %v9110_v34 = vld [vmem:[#allocation10 + $0xa58] ss:$24 sps:$4 sm:$0xff]  }
 0x75a   :  { %7214 = vmatpush1.bf16.msra.mxu1 %v9074_v30 }
 0x75b   :  { %7215 = vmatprep.subr.bf16.mxu1 %v9082_v56 }
 0x75d   :  { %7201 = vmatmul.mubr.bf16.gmra.mrb[60].mxu1 %v10323_v18 }
 0x75e   :  { %7216 = vmatpush1.bf16.msra.mxu1 %v9080_v7 }
 0x75f   :  { %7217 = vmatprep.subr.bf16.mxu1 %v9088_v47  ;;  %v9113_v47 = vld [vmem:[#allocation10 + $0x10] ss:$24 sps:$4 sm:$0xff]  }
 0x762   :  { %7218 = vmatpush1.bf16.msra.mxu1 %v9086_v46  ;;  %v9118_v46 = vld [vmem:[#allocation10 + $0xa8c] ss:$24 sps:$4 sm:$0xff]  }
 0x763   :  { %7219 = vmatprep.subr.bf16.mxu1 %v9094_v25 }
 0x766   :  { %7220 = vmatpush1.bf16.msra.mxu1 %v9092_v61  ;;  %v9121_v61 = vld [vmem:[#allocation10 + $0x44] ss:$24 sps:$4 sm:$0xff]  }
 0x767   :  { %7221 = vmatprep.subr.bf16.mxu1 %v9100_v44 }
 0x768   :  { %v4469_v11 = vpop.f32.mrb[48].mxu1 }
 0x769   :  { %v8569_v59 = vadd.f32 %v4469_v11, %v1919_v22  ;;  %v4471_v10 = vpop.f32.mrb[49].mxu1  ;;  %v9124_v11 = vld [vmem:[#allocation10 + $0xabc] ss:$24 sps:$4 sm:$0xff]  }
 0x76a   :  { %v8570_v54 = vadd.f32 %v4471_v10, %v1923_v48  ;;  %v4473_v40 = vpop.f32.mrb[50].mxu1  ;;  %7222 = vmatpush1.bf16.msra.mxu1 %v9098_v23  ;;  %v9119_v10 = vld [vmem:[#allocation10 + $0x40] ss:$24 sps:$4 sm:$0xff]  }
 0x76b   :  { %v8571_v6 = vadd.f32 %v4473_v40, %v1919_v22  ;;  %v4475_v53 = vpop.f32.mrb[51].mxu1  ;;  %7223 = vmatprep.subr.bf16.mxu1 %v9106_v45  ;;  %v4494_v38 = vmax.f32 %v8569_v59, 0.0 }
 0x76c   :  { %v8572_v29 = vadd.f32 %v4475_v53, %v1923_v48  ;;  %v4495_v55 = vmax.f32 %v8570_v54, 0.0 }
 0x76d   :  { %v4502_v17 = vmax.f32 %v8571_v6, 0.0 }
 0x76e   :  { %v4503_v41 = vmax.f32 %v8572_v29, 0.0  ;;  %7224 = vmatpush1.bf16.msra.mxu1 %v9104_v2  ;;  %v9127_v2 = vld [vmem:[#allocation10 + $0x74] ss:$24 sps:$4 sm:$0xff]  }
 0x76f   :  { %v10368_v30 = vpack.c.bf16 %v4502_v17, %v4494_v38  ;;  %7225 = vmatprep.subr.bf16.mxu1 %v9112_v32  ;;  %v9122_v32 = vld [vmem:[#allocation10 + $0xab8] ss:$24 sps:$4 sm:$0xff]  }
 0x770   :  { %v10370_v56 = vpack.c.bf16 %v4503_v41, %v4495_v55  ;;  %v4479_v7 = vpop.f32.mrb[52].mxu1  ;;  %v9125_v17 = vld [vmem:[#allocation10 + $0x70] ss:$24 sps:$4 sm:$0xff]   ;;  %v9136_v41 = vld [vmem:[#allocation10 + $0xb1c] ss:$24 sps:$4 sm:$0xff]  }
 0x771   :  { %v8573_v25 = vadd.f32 %v4479_v7, %v1919_v22  ;;  %v4481_v15 = vpop.f32.mrb[53].mxu1  ;;  %v9128_v55 = vld [vmem:[#allocation10 + $0xae8] ss:$24 sps:$4 sm:$0xff]   ;;  %v9139_v7 = vld [vmem:[#allocation10 + $0xd4] ss:$24 sps:$4 sm:$0xff]  }
 0x772   :  { %v8574_v12 = vadd.f32 %v4481_v15, %v1923_v48  ;;  %v4483_v44 = vpop.f32.mrb[54].mxu1  ;;  %7031 = vmatprep.mubr.bf16.mxu0 %v10370_v56  ;;  %7226 = vmatpush1.bf16.msra.mxu1 %v9110_v34  ;;  %v9131_v34 = vld [vmem:[#allocation10 + $0xa0] ss:$24 sps:$4 sm:$0xff]   ;;  %v9145_v15 = vld [vmem:[#allocation10 + $0x104] ss:$24 sps:$4 sm:$0xff]  }
 0x773   :  { %v8575_v23 = vadd.f32 %v4483_v44, %v1919_v22  ;;  %7243 = vmatprep.mubr.bf16.mxu1 %v10370_v56  ;;  %v4485_v45 = vpop.f32.mrb[55].mxu1  ;;  %7032 = vmatmul.mubr.bf16.vlgmr.msra.gmra.mrb[48].mxu0 %v10368_v30  ;;  %v4510_v54 = vmax.f32 %v8573_v25, 0.0  ;;  %v9130_v22 = vld [vmem:[#allocation10 + $0xaec] ss:$24 sps:$4 sm:$0xff]   ;;  %v9137_v25 = vld [vmem:[#allocation10 + $0xd0] ss:$24 sps:$4 sm:$0xff]  }
 0x774   :  { %v8576_v59 = vadd.f32 %v4485_v45, %v1923_v48  ;;  %7265 = vmatpush1.bf16.msra.mxu0 %v9113_v47  ;;  %7227 = vmatprep.subr.bf16.mxu1 %v9118_v46  ;;  %v4511_v6 = vmax.f32 %v8574_v12, 0.0  ;;  %v9133_v48 = vld [vmem:[#allocation10 + $0xa4] ss:$24 sps:$4 sm:$0xff]   ;;  %v9134_v47 = vld [vmem:[#allocation10 + $0xb18] ss:$24 sps:$4 sm:$0xff]  }
 0x775   :  { %v4518_v40 = vmax.f32 %v8575_v23, 0.0  ;;  %7266 = vmatprep.subr.bf16.mxu0 %v9121_v61  ;;  %v9142_v46 = vld [vmem:[#allocation10 + $0xb4c] ss:$24 sps:$4 sm:$0xff]   ;;  %v9140_v61 = vld [vmem:[#allocation10 + $0xb48] ss:$24 sps:$4 sm:$0xff]  }
 0x776   :  { %v4519_v53 = vmax.f32 %v8576_v59, 0.0  ;;  %7228 = vmatpush1.bf16.msra.mxu1 %v9116_v36  ;;  %v9148_v12 = vld [vmem:[#allocation10 + $0xb7c] ss:$24 sps:$4 sm:$0xff]   ;;  %v9143_v44 = vld [vmem:[#allocation10 + $0x100] ss:$24 sps:$4 sm:$0xff]  }
 0x777   :  { %v10375_v29 = vpack.c.bf16 %v4518_v40, %v4510_v54  ;;  %7229 = vmatprep.subr.bf16.mxu1 %v9124_v11  ;;  %v9151_v36 = vld [vmem:[#allocation10 + $0x134] ss:$24 sps:$4 sm:$0xff]   ;;  %v9149_v45 = vld [vmem:[#allocation10 + $0x130] ss:$24 sps:$4 sm:$0xff]   ;;  %v9157_v11 = vld [vmem:[#allocation10 + $0x164] ss:$24 sps:$4 sm:$0xff]  }
 0x778   :  { %v10377_v38 = vpack.c.bf16 %v4519_v53, %v4511_v6  ;;  %7267 = vmatpush1.bf16.msra.mxu0 %v9119_v10  ;;  %v9154_v23 = vld [vmem:[#allocation10 + $0xbac] ss:$24 sps:$4 sm:$0xff]   ;;  %v9152_v59 = vld [vmem:[#allocation10 + $0xba8] ss:$24 sps:$4 sm:$0xff]   ;;  %v9160_v10 = vld [vmem:[#allocation10 + $0xbdc] ss:$24 sps:$4 sm:$0xff]  }
 0x779   :  { %7268 = vmatprep.subr.bf16.mxu0 %v9127_v2  ;;  %v9155_v54 = vld [vmem:[#allocation10 + $0x160] ss:$24 sps:$4 sm:$0xff]   ;;  %v9163_v40 = vld [vmem:[#allocation10 + $0x194] ss:$24 sps:$4 sm:$0xff]   ;;  %v9161_v6 = vld [vmem:[#allocation10 + $0x190] ss:$24 sps:$4 sm:$0xff]  }
 0x77a   :  { %7041 = vmatprep.mubr.bf16.mxu0 %v10377_v38  ;;  %7230 = vmatpush1.bf16.msra.mxu1 %v9122_v32  ;;  %v9158_v2 = vld [vmem:[#allocation10 + $0xbd8] ss:$24 sps:$4 sm:$0xff]   ;;  %v9166_v53 = vld [vmem:[#allocation10 + $0x1c4] ss:$24 sps:$4 sm:$0xff]  }
 0x77b   :  { %7042 = vmatmul.mubr.bf16.gmra.mrb[52].mxu0 %v10375_v29  ;;  %7231 = vmatprep.subr.bf16.mxu1 %v9130_v22  ;;  %v9164_v32 = vld [vmem:[#allocation10 + $0x1c0] ss:$24 sps:$4 sm:$0xff]   ;;  %v9169_v22 = vld [vmem:[#allocation10 + $0x1f4] ss:$24 sps:$4 sm:$0xff]  }
 0x77c   :  { %7269 = vmatpush1.bf16.msra.mxu0 %v9125_v17  ;;  %7296 = vmatprep.mubr.bf16.mxu0 %v10289_v9  ;;  %v9146_v9 = vld [vmem:[#allocation10 + $0xb78] ss:$24 sps:$4 sm:$0xff]  }
 0x77d   :  { %7270 = vmatprep.subr.bf16.mxu0 %v9133_v48  ;;  %v9167_v17 = vld [vmem:[#allocation10 + $0x1f0] ss:$24 sps:$4 sm:$0xff]   ;;  %v9172_v48 = vld [vmem:[#allocation10 + $0x224] ss:$24 sps:$4 sm:$0xff]  }
 0x77e   :  { %7232 = vmatpush1.bf16.msra.mxu1 %v9128_v55  ;;  %v9170_v55 = vld [vmem:[#allocation10 + $0x220] ss:$24 sps:$4 sm:$0xff]  }
 0x77f   :  { %7233 = vmatprep.subr.bf16.mxu1 %v9136_v41  ;;  %v9175_v41 = vld [vmem:[#allocation10 + $0x254] ss:$24 sps:$4 sm:$0xff]  }
 0x780   :  { %7271 = vmatpush1.bf16.msra.mxu0 %v9131_v34  ;;  %v9173_v34 = vld [vmem:[#allocation10 + $0x250] ss:$24 sps:$4 sm:$0xff]  }
 0x781   :  { %7272 = vmatprep.subr.bf16.mxu0 %v9139_v7  ;;  %v9178_v7 = vld [vmem:[#allocation10 + $0x284] ss:$24 sps:$4 sm:$0xff]  }
 0x782   :  { %7234 = vmatpush1.bf16.msra.mxu1 %v9134_v47  ;;  %v9176_v47 = vld [vmem:[#allocation10 + $0x280] ss:$24 sps:$4 sm:$0xff]  }
 0x783   :  { %7235 = vmatprep.subr.bf16.mxu1 %v9142_v46  ;;  %v9181_v46 = vld [vmem:[#allocation10 + $0x2b4] ss:$24 sps:$4 sm:$0xff]  }
 0x784   :  { %7273 = vmatpush1.bf16.msra.mxu0 %v9137_v25  ;;  %v9179_v25 = vld [vmem:[#allocation10 + $0x2b0] ss:$24 sps:$4 sm:$0xff]  }
 0x785   :  { %7274 = vmatprep.subr.bf16.mxu0 %v9145_v15  ;;  %v9184_v15 = vld [vmem:[#allocation10 + $0x2e4] ss:$24 sps:$4 sm:$0xff]  }
 0x786   :  { %7236 = vmatpush1.bf16.msra.mxu1 %v9140_v61  ;;  %v9182_v61 = vld [vmem:[#allocation10 + $0x2e0] ss:$24 sps:$4 sm:$0xff]  }
 0x787   :  { %7237 = vmatprep.subr.bf16.mxu1 %v9148_v12  ;;  %v9187_v12 = vld [vmem:[#allocation10 + $0x314] ss:$24 sps:$4 sm:$0xff]  }
 0x788   :  { %7275 = vmatpush1.bf16.msra.mxu0 %v9143_v44  ;;  %v9185_v44 = vld [vmem:[#allocation10 + $0x310] ss:$24 sps:$4 sm:$0xff]  }
 0x789   :  { %7276 = vmatprep.subr.bf16.mxu0 %v9151_v36  ;;  %v9190_v36 = vld [vmem:[#allocation10 + $0x344] ss:$24 sps:$4 sm:$0xff]  }
 0x78a   :  { %7238 = vmatpush1.bf16.msra.mxu1 %v9146_v9  ;;  %v9188_v9 = vld [vmem:[#allocation10 + $0x340] ss:$24 sps:$4 sm:$0xff]  }
 0x78b   :  { %7239 = vmatprep.subr.bf16.mxu1 %v9154_v23  ;;  %v9193_v23 = vld [vmem:[#allocation10 + $0x374] ss:$24 sps:$4 sm:$0xff]  }
 0x78c   :  { %7277 = vmatpush1.bf16.msra.mxu0 %v9149_v45  ;;  %v9191_v45 = vld [vmem:[#allocation10 + $0x370] ss:$24 sps:$4 sm:$0xff]  }
 0x78d   :  { %7278 = vmatprep.subr.bf16.mxu0 %v9157_v11  ;;  %v9196_v11 = vld [vmem:[#allocation10 + $0x3a4] ss:$24 sps:$4 sm:$0xff]  }
 0x78e   :  { %7240 = vmatpush1.bf16.msra.mxu1 %v9152_v59  ;;  %v9194_v59 = vld [vmem:[#allocation10 + $0x3a0] ss:$24 sps:$4 sm:$0xff]  }
 0x78f   :  { %7241 = vmatprep.subr.bf16.mxu1 %v9160_v10  ;;  %v9199_v10 = vld [vmem:[#allocation10 + $0x3d4] ss:$24 sps:$4 sm:$0xff]  }
 0x790   :  { %7279 = vmatpush1.bf16.msra.mxu0 %v9155_v54  ;;  %v9200_v54 = vld [vmem:[#allocation10 + $0x400] ss:$24 sps:$4 sm:$0xff]  }
 0x791   :  { %7280 = vmatprep.subr.bf16.mxu0 %v9163_v40  ;;  %v9205_v40 = vld [vmem:[#allocation10 + $0x434] ss:$24 sps:$4 sm:$0xff]  }
 0x792   :  { %7242 = vmatpush1.bf16.msra.mxu1 %v9158_v2  ;;  %v9203_v2 = vld [vmem:[#allocation10 + $0x430] ss:$24 sps:$4 sm:$0xff]  }
 0x794   :  { %7281 = vmatpush1.bf16.msra.mxu0 %v9161_v6  ;;  %v9208_v6 = vld [vmem:[#allocation10 + $0x464] ss:$24 sps:$4 sm:$0xff]  }
 0x795   :  { %7244 = vmatmul.mubr.bf16.vlgmr.msra.gmra.mrb[56].mxu1 %v10368_v30  ;;  %7282 = vmatprep.subr.bf16.mxu0 %v9166_v53  ;;  %v9211_v53 = vld [vmem:[#allocation10 + $0x494] ss:$24 sps:$4 sm:$0xff]  }
 0x796   :  { %7253 = vmatprep.mubr.bf16.mxu1 %v10377_v38 }
 0x798   :  { %7283 = vmatpush1.bf16.msra.mxu0 %v9164_v32  ;;  %v9214_v32 = vld [vmem:[#allocation10 + $0x4c4] ss:$24 sps:$4 sm:$0xff]  }
 0x799   :  { %7284 = vmatprep.subr.bf16.mxu0 %v9169_v22  ;;  %v9212_v22 = vld [vmem:[#allocation10 + $0x4c0] ss:$24 sps:$4 sm:$0xff]  }
 0x79c   :  { %7285 = vmatpush1.bf16.msra.mxu0 %v9167_v17  ;;  %v9217_v17 = vld [vmem:[#allocation10 + $0x4f4] ss:$24 sps:$4 sm:$0xff]  }
 0x79d   :  { %7254 = vmatmul.mubr.bf16.gmra.mrb[60].mxu1 %v10375_v29  ;;  %7286 = vmatprep.subr.bf16.mxu0 %v9172_v48  ;;  %v9215_v48 = vld [vmem:[#allocation10 + $0x4f0] ss:$24 sps:$4 sm:$0xff]  }
 0x7a0   :  { %7287 = vmatpush1.bf16.msra.mxu0 %v9170_v55  ;;  %v9220_v55 = vld [vmem:[#allocation10 + $0x524] ss:$24 sps:$4 sm:$0xff]  }
 0x7a1   :  { %7288 = vmatprep.subr.bf16.mxu0 %v9175_v41  ;;  %v9218_v41 = vld [vmem:[#allocation10 + $0x520] ss:$24 sps:$4 sm:$0xff]  }
 0x7a4   :  { %7289 = vmatpush1.bf16.msra.mxu0 %v9173_v34  ;;  %v9223_v34 = vld [vmem:[#allocation10 + $0x554] ss:$24 sps:$4 sm:$0xff]  }
 0x7a5   :  { %7290 = vmatprep.subr.bf16.mxu0 %v9178_v7  ;;  %v9221_v7 = vld [vmem:[#allocation10 + $0x550] ss:$24 sps:$4 sm:$0xff]  }
 0x7a8   :  { %7291 = vmatpush1.bf16.msra.mxu0 %v9176_v47  ;;  %v9226_v47 = vld [vmem:[#allocation10 + $0x584] ss:$24 sps:$4 sm:$0xff]  }
 0x7a9   :  { %7292 = vmatprep.subr.bf16.mxu0 %v9181_v46  ;;  %v9224_v46 = vld [vmem:[#allocation10 + $0x580] ss:$24 sps:$4 sm:$0xff]  }
 0x7ac   :  { %7293 = vmatpush1.bf16.msra.mxu0 %v9179_v25  ;;  %v9229_v25 = vld [vmem:[#allocation10 + $0x5b4] ss:$24 sps:$4 sm:$0xff]  }
 0x7ad   :  { %7294 = vmatprep.subr.bf16.mxu0 %v9184_v15  ;;  %v9227_v15 = vld [vmem:[#allocation10 + $0x5b0] ss:$24 sps:$4 sm:$0xff]  }
 0x7b0   :  { %7295 = vmatpush1.bf16.msra.mxu0 %v9182_v61  ;;  %v9232_v61 = vld [vmem:[#allocation10 + $0x5e4] ss:$24 sps:$4 sm:$0xff]  }
 0x7b1   :  { %7317 = vmatprep.subr.bf16.mxu0 %v9187_v12  ;;  %v9230_v12 = vld [vmem:[#allocation10 + $0x5e0] ss:$24 sps:$4 sm:$0xff]  }
 0x7b3   :  { %7297 = vmatmul.mubr.bf16.vlgmr.msra.gmra.mrb[56].mxu0 %v10287_v49  ;;  %v9197_v49 = vld [vmem:[#allocation10 + $0x3d0] ss:$24 sps:$4 sm:$0xff]  }
 0x7b4   :  { %7306 = vmatprep.mubr.bf16.mxu0 %v10299_v35  ;;  %7318 = vmatpush1.bf16.msra.mxu0 %v9185_v44  ;;  %v9202_v35 = vld [vmem:[#allocation10 + $0x404] ss:$24 sps:$4 sm:$0xff]   ;;  %v9235_v44 = vld [vmem:[#allocation10 + $0x614] ss:$24 sps:$4 sm:$0xff]  }
 0x7b5   :  { %7319 = vmatprep.subr.bf16.mxu0 %v9190_v36  ;;  %v9233_v36 = vld [vmem:[#allocation10 + $0x610] ss:$24 sps:$4 sm:$0xff]  }
 0x7b8   :  { %7320 = vmatpush1.bf16.msra.mxu0 %v9188_v9  ;;  %v9238_v9 = vld [vmem:[#allocation10 + $0x644] ss:$24 sps:$4 sm:$0xff]  }
 0x7b9   :  { %7321 = vmatprep.subr.bf16.mxu0 %v9193_v23  ;;  %v9236_v23 = vld [vmem:[#allocation10 + $0x640] ss:$24 sps:$4 sm:$0xff]  }
 0x7bb   :  { %7307 = vmatmul.mubr.bf16.gmra.mrb[60].mxu0 %v10297_v8  ;;  %v9206_v8 = vld [vmem:[#allocation10 + $0x460] ss:$24 sps:$4 sm:$0xff]  }
 0x7bc   :  { %7322 = vmatpush1.bf16.msra.mxu0 %v9191_v45  ;;  %7349 = vmatprep.mubr.bf16.mxu0 %v10341_v3  ;;  %v9209_v3 = vld [vmem:[#allocation10 + $0x490] ss:$24 sps:$4 sm:$0xff]   ;;  %v9241_v45 = vld [vmem:[#allocation10 + $0x674] ss:$24 sps:$4 sm:$0xff]  }
 0x7bd   :  { %7323 = vmatprep.subr.bf16.mxu0 %v9196_v11  ;;  %v9239_v11 = vld [vmem:[#allocation10 + $0x670] ss:$24 sps:$4 sm:$0xff]  }
 0x7c0   :  { %7324 = vmatpush1.bf16.msra.mxu0 %v9194_v59  ;;  %v9244_v59 = vld [vmem:[#allocation10 + $0x6a4] ss:$24 sps:$4 sm:$0xff]  }
 0x7c1   :  { %7325 = vmatprep.subr.bf16.mxu0 %v9199_v10  ;;  %v9242_v10 = vld [vmem:[#allocation10 + $0x6a0] ss:$24 sps:$4 sm:$0xff]  }
 0x7c4   :  { %7326 = vmatpush1.bf16.msra.mxu0 %v9197_v49  ;;  %v9247_v49 = vld [vmem:[#allocation10 + $0x6d4] ss:$24 sps:$4 sm:$0xff]  }
 0x7c5   :  { %7327 = vmatprep.subr.bf16.mxu0 %v9202_v35  ;;  %v9248_v35 = vld [vmem:[#allocation10 + $0x700] ss:$24 sps:$4 sm:$0xff]  }
 0x7c8   :  { %7328 = vmatpush1.bf16.msra.mxu0 %v9200_v54  ;;  %v9253_v54 = vld [vmem:[#allocation10 + $0x734] ss:$24 sps:$4 sm:$0xff]  }
 0x7c9   :  { %7329 = vmatprep.subr.bf16.mxu0 %v9205_v40  ;;  %v9251_v40 = vld [vmem:[#allocation10 + $0x730] ss:$24 sps:$4 sm:$0xff]  }
 0x7cc   :  { %7330 = vmatpush1.bf16.msra.mxu0 %v9203_v2  ;;  %v9256_v2 = vld [vmem:[#allocation10 + $0x764] ss:$24 sps:$4 sm:$0xff]  }
 0x7cd   :  { %7331 = vmatprep.subr.bf16.mxu0 %v9208_v6  ;;  %v9259_v6 = vld [vmem:[#allocation10 + $0x794] ss:$24 sps:$4 sm:$0xff]  }
 0x7d0   :  { %7332 = vmatpush1.bf16.msra.mxu0 %v9206_v8  ;;  %v9262_v8 = vld [vmem:[#allocation10 + $0x7c4] ss:$24 sps:$4 sm:$0xff]  }
 0x7d1   :  { %7333 = vmatprep.subr.bf16.mxu0 %v9211_v53  ;;  %v9260_v53 = vld [vmem:[#allocation10 + $0x7c0] ss:$24 sps:$4 sm:$0xff]  }
 0x7d4   :  { %7334 = vmatpush1.bf16.msra.mxu0 %v9209_v3  ;;  %v9265_v3 = vld [vmem:[#allocation10 + $0x7f4] ss:$24 sps:$4 sm:$0xff]  }
 0x7d5   :  { %7335 = vmatprep.subr.bf16.mxu0 %v9214_v32  ;;  %v9263_v32 = vld [vmem:[#allocation10 + $0x7f0] ss:$24 sps:$4 sm:$0xff]  }
 0x7d8   :  { %7336 = vmatpush1.bf16.msra.mxu0 %v9212_v22  ;;  %v9268_v22 = vld [vmem:[#allocation10 + $0x824] ss:$24 sps:$4 sm:$0xff]  }
 0x7d9   :  { %7337 = vmatprep.subr.bf16.mxu0 %v9217_v17  ;;  %v9266_v17 = vld [vmem:[#allocation10 + $0x820] ss:$24 sps:$4 sm:$0xff]  }
 0x7dc   :  { %7338 = vmatpush1.bf16.msra.mxu0 %v9215_v48  ;;  %v9271_v48 = vld [vmem:[#allocation10 + $0x854] ss:$24 sps:$4 sm:$0xff]  }
 0x7dd   :  { %7339 = vmatprep.subr.bf16.mxu0 %v9220_v55  ;;  %v9269_v55 = vld [vmem:[#allocation10 + $0x850] ss:$24 sps:$4 sm:$0xff]  }
 0x7e0   :  { %7340 = vmatpush1.bf16.msra.mxu0 %v9218_v41  ;;  %v9274_v41 = vld [vmem:[#allocation10 + $0x884] ss:$24 sps:$4 sm:$0xff]  }
 0x7e1   :  { %7341 = vmatprep.subr.bf16.mxu0 %v9223_v34  ;;  %v9272_v34 = vld [vmem:[#allocation10 + $0x880] ss:$24 sps:$4 sm:$0xff]  }
 0x7e4   :  { %7342 = vmatpush1.bf16.msra.mxu0 %v9221_v7  ;;  %v9277_v7 = vld [vmem:[#allocation10 + $0x8b4] ss:$24 sps:$4 sm:$0xff]  }
 0x7e5   :  { %7343 = vmatprep.subr.bf16.mxu0 %v9226_v47  ;;  %v9275_v47 = vld [vmem:[#allocation10 + $0x8b0] ss:$24 sps:$4 sm:$0xff]  }
 0x7e8   :  { %7344 = vmatpush1.bf16.msra.mxu0 %v9224_v46  ;;  %v9280_v46 = vld [vmem:[#allocation10 + $0x8e4] ss:$24 sps:$4 sm:$0xff]  }
 0x7e9   :  { %7345 = vmatprep.subr.bf16.mxu0 %v9229_v25  ;;  %v9278_v25 = vld [vmem:[#allocation10 + $0x8e0] ss:$24 sps:$4 sm:$0xff]  }
 0x7ec   :  { %7346 = vmatpush1.bf16.msra.mxu0 %v9227_v15  ;;  %v9283_v15 = vld [vmem:[#allocation10 + $0x914] ss:$24 sps:$4 sm:$0xff]  }
 0x7ed   :  { %7347 = vmatprep.subr.bf16.mxu0 %v9232_v61  ;;  %v9281_v61 = vld [vmem:[#allocation10 + $0x910] ss:$24 sps:$4 sm:$0xff]  }
 0x7f0   :  { %7348 = vmatpush1.bf16.msra.mxu0 %v9230_v12  ;;  %v9286_v12 = vld [vmem:[#allocation10 + $0x944] ss:$24 sps:$4 sm:$0xff]  }
 0x7f1   :  { %7370 = vmatprep.subr.bf16.mxu0 %v9235_v44  ;;  %v9284_v44 = vld [vmem:[#allocation10 + $0x940] ss:$24 sps:$4 sm:$0xff]  }
 0x7f3   :  { %7350 = vmatmul.mubr.bf16.vlgmr.msra.gmra.mrb[56].mxu0 %v10339_v57  ;;  %v9245_v57 = vld [vmem:[#allocation10 + $0x6d0] ss:$24 sps:$4 sm:$0xff]  }
 0x7f4   :  { %7359 = vmatprep.mubr.bf16.mxu0 %v10347_v63  ;;  %7371 = vmatpush1.bf16.msra.mxu0 %v9233_v36  ;;  %v9250_v63 = vld [vmem:[#allocation10 + $0x704] ss:$24 sps:$4 sm:$0xff]   ;;  %v9289_v36 = vld [vmem:[#allocation10 + $0x974] ss:$24 sps:$4 sm:$0xff]  }
 0x7f5   :  { %7372 = vmatprep.subr.bf16.mxu0 %v9238_v9  ;;  %v9287_v9 = vld [vmem:[#allocation10 + $0x970] ss:$24 sps:$4 sm:$0xff]  }
 0x7f8   :  { %7373 = vmatpush1.bf16.msra.mxu0 %v9236_v23  ;;  %v9292_v23 = vld [vmem:[#allocation10 + $0x9a4] ss:$24 sps:$4 sm:$0xff]  }
 0x7f9   :  { %7374 = vmatprep.subr.bf16.mxu0 %v9241_v45  ;;  %v9290_v45 = vld [vmem:[#allocation10 + $0x9a0] ss:$24 sps:$4 sm:$0xff]  }
 0x7fb   :  { %7360 = vmatmul.mubr.bf16.gmra.mrb[60].mxu0 %v10345_v5  ;;  %v9254_v5 = vld [vmem:[#allocation10 + $0x760] ss:$24 sps:$4 sm:$0xff]  }
 0x7fc   :  { %7375 = vmatpush1.bf16.msra.mxu0 %v9239_v11  ;;  %7402 = vmatprep.mubr.bf16.mxu0 %v10321_v1  ;;  %v9257_v1 = vld [vmem:[#allocation10 + $0x790] ss:$24 sps:$4 sm:$0xff]   ;;  %v9295_v11 = vld [vmem:[#allocation10 + $0x9d4] ss:$24 sps:$4 sm:$0xff]  }
 0x7fd   :  { %7376 = vmatprep.subr.bf16.mxu0 %v9244_v59  ;;  %v9296_v59 = vld [vmem:[#allocation10 + $0xa00] ss:$24 sps:$4 sm:$0xff]  }
 0x800   :  { %7377 = vmatpush1.bf16.msra.mxu0 %v9242_v10  ;;  %v9301_v10 = vld [vmem:[#allocation10 + $0xa34] ss:$24 sps:$4 sm:$0xff]  }
 0x801   :  { %7378 = vmatprep.subr.bf16.mxu0 %v9247_v49 }
 0x804   :  { %7379 = vmatpush1.bf16.msra.mxu0 %v9245_v57 }
 0x805   :  { %7380 = vmatprep.subr.bf16.mxu0 %v9250_v63 }
 0x808   :  { %7381 = vmatpush1.bf16.msra.mxu0 %v9248_v35  ;;  %v9299_v35 = vld [vmem:[#allocation10 + $0xa30] ss:$24 sps:$4 sm:$0xff]  }
 0x809   :  { %7382 = vmatprep.subr.bf16.mxu0 %v9253_v54  ;;  %v9304_v54 = vld [vmem:[#allocation10 + $0xa64] ss:$24 sps:$4 sm:$0xff]  }
 0x80c   :  { %7383 = vmatpush1.bf16.msra.mxu0 %v9251_v40  ;;  %v9307_v40 = vld [vmem:[#allocation10 + $0xa94] ss:$24 sps:$4 sm:$0xff]  }
 0x80d   :  { %7384 = vmatprep.subr.bf16.mxu0 %v9256_v2 }
 0x810   :  { %7385 = vmatpush1.bf16.msra.mxu0 %v9254_v5 }
 0x811   :  { %7386 = vmatprep.subr.bf16.mxu0 %v9259_v6 }
 0x814   :  { %7387 = vmatpush1.bf16.msra.mxu0 %v9257_v1  ;;  %v9305_v1 = vld [vmem:[#allocation10 + $0xa90] ss:$24 sps:$4 sm:$0xff]  }
 0x815   :  { %7388 = vmatprep.subr.bf16.mxu0 %v9262_v8 }
 0x818   :  { %7389 = vmatpush1.bf16.msra.mxu0 %v9260_v53  ;;  %v9310_v53 = vld [vmem:[#allocation10 + $0xac4] ss:$24 sps:$4 sm:$0xff]  }
 0x819   :  { %7390 = vmatprep.subr.bf16.mxu0 %v9265_v3  ;;  %v9308_v3 = vld [vmem:[#allocation10 + $0xac0] ss:$24 sps:$4 sm:$0xff]  }
 0x81c   :  { %7391 = vmatpush1.bf16.msra.mxu0 %v9263_v32  ;;  %v9313_v32 = vld [vmem:[#allocation10 + $0xaf4] ss:$24 sps:$4 sm:$0xff]  }
 0x81d   :  { %7392 = vmatprep.subr.bf16.mxu0 %v9268_v22  ;;  %v9311_v22 = vld [vmem:[#allocation10 + $0xaf0] ss:$24 sps:$4 sm:$0xff]  }
 0x820   :  { %7393 = vmatpush1.bf16.msra.mxu0 %v9266_v17  ;;  %v9316_v17 = vld [vmem:[#allocation10 + $0xb24] ss:$24 sps:$4 sm:$0xff]  }
 0x821   :  { %7394 = vmatprep.subr.bf16.mxu0 %v9271_v48  ;;  %v9314_v48 = vld [vmem:[#allocation10 + $0xb20] ss:$24 sps:$4 sm:$0xff]  }
 0x824   :  { %7395 = vmatpush1.bf16.msra.mxu0 %v9269_v55  ;;  %v9319_v55 = vld [vmem:[#allocation10 + $0xb54] ss:$24 sps:$4 sm:$0xff]  }
 0x825   :  { %7396 = vmatprep.subr.bf16.mxu0 %v9274_v41  ;;  %v9317_v41 = vld [vmem:[#allocation10 + $0xb50] ss:$24 sps:$4 sm:$0xff]  }
 0x828   :  { %7397 = vmatpush1.bf16.msra.mxu0 %v9272_v34  ;;  %v9322_v34 = vld [vmem:[#allocation10 + $0xb84] ss:$24 sps:$4 sm:$0xff]  }
 0x829   :  { %7398 = vmatprep.subr.bf16.mxu0 %v9277_v7  ;;  %v9320_v7 = vld [vmem:[#allocation10 + $0xb80] ss:$24 sps:$4 sm:$0xff]  }
 0x82c   :  { %7399 = vmatpush1.bf16.msra.mxu0 %v9275_v47  ;;  %v9325_v47 = vld [vmem:[#allocation10 + $0xbb4] ss:$24 sps:$4 sm:$0xff]  }
 0x82d   :  { %7400 = vmatprep.subr.bf16.mxu0 %v9280_v46 }
 0x830   :  { %7401 = vmatpush1.bf16.msra.mxu0 %v9278_v25  ;;  %v9323_v25 = vld [vmem:[#allocation10 + $0xbb0] ss:$24 sps:$4 sm:$0xff]  }
 0x831   :  { %7423 = vmatprep.subr.bf16.mxu0 %v9283_v15 }
 0x833   :  { %7403 = vmatmul.mubr.bf16.vlgmr.msra.gmra.mrb[56].mxu0 %v10319_v33  ;;  %v9293_v33 = vld [vmem:[#allocation10 + $0x9d0] ss:$24 sps:$4 sm:$0xff]  }
 0x834   :  { %7412 = vmatprep.mubr.bf16.mxu0 %v10325_v50  ;;  %7424 = vmatpush1.bf16.msra.mxu0 %v9281_v61  ;;  %v9298_v50 = vld [vmem:[#allocation10 + $0xa04] ss:$24 sps:$4 sm:$0xff]  }
 0x835   :  { %7425 = vmatprep.subr.bf16.mxu0 %v9286_v12  ;;  %v9328_v61 = vld [vmem:[#allocation10 + $0xbe4] ss:$24 sps:$4 sm:$0xff]  }
 0x838   :  { %7426 = vmatpush1.bf16.msra.mxu0 %v9284_v44 }
 0x839   :  { %7427 = vmatprep.subr.bf16.mxu0 %v9289_v36  ;;  %v9326_v36 = vld [vmem:[#allocation10 + $0xbe0] ss:$24 sps:$4 sm:$0xff]  }
 0x83b   :  { %7413 = vmatmul.mubr.bf16.gmra.mrb[60].mxu0 %v10323_v18 }
 0x83c   :  { %7428 = vmatpush1.bf16.msra.mxu0 %v9287_v9  ;;  %7455 = vmatprep.mubr.bf16.mxu0 %v10370_v56  ;;  %v9302_v56 = vld [vmem:[#allocation10 + $0xa60] ss:$24 sps:$4 sm:$0xff]  }
 0x83d   :  { %7429 = vmatprep.subr.bf16.mxu0 %v9292_v23 }
 0x840   :  { %7430 = vmatpush1.bf16.msra.mxu0 %v9290_v45 }
 0x841   :  { %7431 = vmatprep.subr.bf16.mxu0 %v9295_v11 }
 0x844   :  { %7432 = vmatpush1.bf16.msra.mxu0 %v9293_v33  ;;  %v7500_v33 = vld [vmem:[#allocation11] sm:$0x3f] }
 0x845   :  { %7433 = vmatprep.subr.bf16.mxu0 %v9298_v50 }
 0x846   :  { %v7033_v49 = vpop.f32.mrb[48].mxu0 }
 0x847   :  { %v7035_v57 = vpop.f32.mrb[49].mxu0  ;;  %v7476_v50 = vadd.f32 %v7033_v49, %v10084_v14 }
 0x848   :  { %7434 = vmatpush1.bf16.msra.mxu0 %v9296_v59  ;;  %v7037_v63 = vpop.f32.mrb[50].mxu0  ;;  %v7505_v59 = vrot.slane %v7500_v33, %v9776_v58 }
 0x849   :  { %v7039_v18 = vpop.f32.mrb[51].mxu0  ;;  %7435 = vmatprep.subr.bf16.mxu0 %v9301_v10  ;;  %v7477_v10 = vadd.f32 %v7035_v57, %v10076_v13 }
 0x84c   :  { %7436 = vmatpush1.bf16.msra.mxu0 %v9299_v35  ;;  %v10686_v35 = vsub.s32 1, %v9772_v52 }
 0x84d   :  { %7437 = vmatprep.subr.bf16.mxu0 %v9304_v54 }
 0x84e   :  { %v10397_v2 = vpop.f32.mrb[52].mxu0  ;;  %v7509_v54 = vrot.slane %v7500_v33, %v10686_v35 }
 0x84f   :  { %v10399_v5 = vpop.f32.mrb[53].mxu0 }
 0x850   :  { %7438 = vmatpush1.bf16.msra.mxu0 %v9302_v56  ;;  %v10401_v6 = vpop.f32.mrb[54].mxu0  ;;  %v7482_v56 = vadd.f32 %v7037_v63, %v10100_v0 }
 0x851   :  { %v10403_v8 = vpop.f32.mrb[55].mxu0  ;;  %7439 = vmatprep.subr.bf16.mxu0 %v9307_v40  ;;  %v7483_v40 = vadd.f32 %v7039_v18, %v10092_v16  ;;  %v7517_v16 = vrot.slane %v7500_v33, %v1906_v51 }
 0x852   :  { %v10423_v14 = vadd.f32 %v7505_v59, %v7482_v56  ;;  %v7495_v51 = vadd.f32 %v10403_v8, %v10144_v26  ;;  %v7525_v26 = vrot.slane %v7500_v33, %v1914_v24  ;;  %v10688_v24 = vld [vmem:[#allocation20_spill] sm:$0xff] }
 0x853   :  { %v10425_v13 = vadd.f32 %v7509_v54, %v7483_v40  ;;  %v10691_v40 = vld [vmem:[#allocation24_spill] sm:$0xff] }
 0x854   :  { %7440 = vmatpush1.bf16.msra.mxu0 %v9305_v1  ;;  %v10420_v1 = vadd.f32 %v7509_v54, %v7477_v10 }
 0x855   :  { %7441 = vmatprep.subr.bf16.mxu0 %v9310_v53  ;;  %v7563_v18 = vadd.f32 %v10425_v13, %v10423_v14 }
 0x858   :  { %7442 = vmatpush1.bf16.msra.mxu0 %v9308_v3 }
 0x859   :  { %7443 = vmatprep.subr.bf16.mxu0 %v9313_v32 }
 0x85c   :  { %7444 = vmatpush1.bf16.msra.mxu0 %v9311_v22 }
 0x85d   :  { %7445 = vmatprep.subr.bf16.mxu0 %v9316_v17 }
 0x860   :  { %7446 = vmatpush1.bf16.msra.mxu0 %v9314_v48 }
 0x861   :  { %7447 = vmatprep.subr.bf16.mxu0 %v9319_v55 }
 0x864   :  { %7448 = vmatpush1.bf16.msra.mxu0 %v9317_v41 }
 0x865   :  { %7449 = vmatprep.subr.bf16.mxu0 %v9322_v34  ;;  %v10687_v34 = vld [vmem:[#allocation26_spill] sm:$0xff] }
 0x868   :  { %7450 = vmatpush1.bf16.msra.mxu0 %v9320_v7  ;;  %v7245_v46 = vpop.f32.mrb[56].mxu1 }
 0x869   :  { %v7247_v15 = vpop.f32.mrb[57].mxu1  ;;  %7451 = vmatprep.subr.bf16.mxu0 %v9325_v47 }
 0x86a   :  { %v7249_v12 = vpop.f32.mrb[58].mxu1  ;;  %v7479_v0 = vadd.f32 %v7247_v15, %v10184_v19  ;;  %v7494_v19 = vadd.f32 %v10401_v6, %v10152_v27  ;;  %v10689_v15 = vld [vmem:[#allocation19_spill] sm:$0xff] }
 0x86b   :  { %v7251_v44 = vpop.f32.mrb[59].mxu1  ;;  %v7484_v58 = vadd.f32 %v7249_v12, %v10198_v39  ;;  %v7489_v39 = vadd.f32 %v10399_v5, %v10132_v4 }
 0x86c   :  { %7452 = vmatpush1.bf16.msra.mxu0 %v9323_v25  ;;  %v7485_v63 = vadd.f32 %v7251_v44, %v10164_v43  ;;  %v7521_v43 = vrot.slane %v7500_v33, %v1910_v37  ;;  %v10464_v17 = vadd.f32 %v7505_v59, %v7494_v19 }
 0x86d   :  { %7453 = vmatprep.subr.bf16.mxu0 %v9328_v61  ;;  %v10455_v5 = vadd.f32 %v7509_v54, %v7489_v39 }
 0x86e   :  { %v10458_v32 = vadd.f32 %v7517_v16, %v7485_v63  ;;  %v10693_v63 = vld [vmem:[#allocation23_spill] sm:$0xff] }
 0x870   :  { %7454 = vmatpush1.bf16.msra.mxu0 %v9326_v36  ;;  %v7255_v9 = vpop.f32.mrb[60].mxu1 }
 0x871   :  { %v7257_v23 = vpop.f32.mrb[61].mxu1  ;;  %v7490_v4 = vadd.f32 %v7255_v9, %v10230_v60  ;;  %v10466_v60 = vadd.f32 %v7509_v54, %v7495_v51 }
 0x872   :  { %v7259_v45 = vpop.f32.mrb[62].mxu1  ;;  %v7491_v7 = vadd.f32 %v7257_v23, %v10687_v34 }
 0x873   :  { %7456 = vmatmul.mubr.bf16.vlgmr.msra.gmra.mrb[56].mxu0 %v10368_v30  ;;  %v7261_v11 = vpop.f32.mrb[63].mxu1  ;;  %v7478_v30 = vadd.f32 %v7245_v46, %v10206_v31  ;;  %v7488_v31 = vadd.f32 %v10397_v2, %v10140_v21  ;;  %v10448_v2 = vadd.f32 %v7517_v16, %v7479_v0  ;;  %v7496_v6 = vadd.f32 %v7259_v45, %v10226_v42 }
 0x874   :  { %7465 = vmatprep.mubr.bf16.mxu0 %v10377_v38  ;;  %v7513_v38 = vrot.slane %v7500_v33, %v1902_v20  ;;  %v7577_v23 = vadd.f32 %v10466_v60, %v10464_v17 }
 0x875   :  { %v10450_v53 = vadd.f32 %v7505_v59, %v7488_v31 }
 0x876   :  { %v10427_v49 = vadd.f32 %v7513_v38, %v7478_v30  ;;  %v10438_v57 = vadd.f32 %v7513_v38, %v7484_v58  ;;  %v10470_v41 = vadd.f32 %v7513_v38, %v7490_v4  ;;  %v10478_v12 = vadd.f32 %v7513_v38, %v7496_v6  ;;  %v10692_v58 = vld [vmem:[#allocation21_spill] sm:$0xff] }
 0x878   :  { %v7564_v3 = vadd.f32 %v7563_v18, %v10438_v57  ;;  %v7578_v54 = vadd.f32 %v7577_v23, %v10478_v12 }
 0x87a   :  { %v7565_v46 = vadd.f32 %v7564_v3, %v10458_v32 }
 0x87b   :  { %7466 = vmatmul.mubr.bf16.gmra.mrb[60].mxu0 %v10375_v29  ;;  %v10418_v29 = vadd.f32 %v7505_v59, %v7476_v50  ;;  %v10486_v50 = vadd.f32 %v7517_v16, %v7491_v7 }
 0x87d   :  { %v7556_v20 = vadd.f32 %v10420_v1, %v10418_v29 }
 0x87f   :  { %v7557_v21 = vadd.f32 %v7556_v20, %v10427_v49 }
 0x881   :  { %v7558_v37 = vadd.f32 %v7557_v21, %v10448_v2 }
 0x946   :  { %v7457_v27 = vpop.f32.mrb[56].mxu0 }
 0x947   :  { %v7480_v8 = vadd.f32 %v7457_v27, %v10088_v28  ;;  %v7459_v22 = vpop.f32.mrb[57].mxu0  ;;  %v7570_v28 = vadd.f32 %v10455_v5, %v10450_v53 }
 0x948   :  { %v7481_v48 = vadd.f32 %v7459_v22, %v10080_v62  ;;  %v7461_v55 = vpop.f32.mrb[58].mxu0  ;;  %v10690_v62 = vld [vmem:[#allocation25_spill] sm:$0xff] }
 0x949   :  { %v7536_v52 = vadd.f32 %v7521_v43, %v7480_v8  ;;  %v7486_v47 = vadd.f32 %v7461_v55, %v10688_v24  ;;  %v7463_v42 = vpop.f32.mrb[59].mxu0  ;;  %v7497_v44 = vadd.f32 %v7261_v11, %v10690_v62  ;;  %v7571_v33 = vadd.f32 %v7570_v28, %v10470_v41 }
 0x94a   :  { %v7537_v25 = vadd.f32 %v7525_v26, %v7481_v48  ;;  %v7487_v61 = vadd.f32 %v7463_v42, %v10689_v15 }
 0x94b   :  { %v7542_v36 = vadd.f32 %v7521_v43, %v7486_v47  ;;  %v7559_v9 = vadd.f32 %v7558_v37, %v7536_v52  ;;  %v10489_v56 = vadd.f32 %v7517_v16, %v7497_v44  ;;  %v7572_v20 = vadd.f32 %v7571_v33, %v10486_v50  ;;  %v10694_v16 = vld [vmem:[#allocation22_spill] sm:$0xff] }
 0x94c   :  { %v10483_v45 = vadd.f32 %v7525_v26, %v7487_v61 }
 0x94d   :  { %v7560_v59 = vadd.f32 %v7559_v9, %v7537_v25  ;;  %v7566_v10 = vadd.f32 %v7565_v46, %v7542_v36  ;;  %v7579_v4 = vadd.f32 %v7578_v54, %v10489_v56 }
 0x94e   :  { %v7467_v35 = vpop.f32.mrb[60].mxu0 }
 0x94f   :  { %v7492_v11 = vadd.f32 %v7467_v35, %v10691_v40  ;;  %7561 = vadd.xlane.f32.xlu0 %v7560_v59  ;;  %v7469_v30 = vpop.f32.mrb[61].mxu0  ;;  %v7567_v38 = vadd.f32 %v7566_v10, %v10483_v45 }
 0x950   :  { %v7493_v0 = vadd.f32 %v7469_v30, %v10692_v58  ;;  %v7471_v31 = vpop.f32.mrb[62].mxu0 }
 0x951   :  { %v7548_v39 = vadd.f32 %v7521_v43, %v7492_v11  ;;  %v7498_v18 = vadd.f32 %v7471_v31, %v10693_v63  ;;  %7568 = vadd.xlane.f32.xlu1 %v7567_v38  ;;  %v7473_v19 = vpop.f32.mrb[63].mxu0 }
 0x952   :  { %v10496_v51 = vadd.f32 %v7525_v26, %v7493_v0  ;;  %v7499_v21 = vadd.f32 %v7473_v19, %v10694_v16 }
 0x953   :  { %v10500_v3 = vadd.f32 %v7521_v43, %v7498_v18  ;;  %v7573_v27 = vadd.f32 %v7572_v20, %v7548_v39 }
 0x954   :  { %v10502_v6 = vadd.f32 %v7525_v26, %v7499_v21 }
 0x955   :  { %v7574_v8 = vadd.f32 %v7573_v27, %v10496_v51  ;;  %v7580_v22 = vadd.f32 %v7579_v4, %v10500_v3 }
 0x957   :  { %7575 = vadd.xlane.f32.xlu0 %v7574_v8  ;;  %v7581_v37 = vadd.f32 %v7580_v22, %v10502_v6 }
 0x959   :  { %7582 = vadd.xlane.f32.xlu1 %v7581_v37 }
 0x9dc   :  { %v7562_v48 = vpop.xlane.xlu0 %7561 }
 0x9dd   :  { %v7584_v55 = vmul.f32 0.0013020834, %v7562_v48 }
 0x9de   :  { %v7569_v34 = vpop.xlane.xlu1 %7568 }
 0x9df   :  { %v7585_v7 = vmul.f32 0.0013020834, %v7569_v34  ;;  %v10508_v24 = vsub.f32 %v10418_v29, %v7584_v55  ;;  %v10511_v43 = vsub.f32 %v10420_v1, %v7584_v55  ;;  %v10514_v26 = vsub.f32 %v10427_v49, %v7584_v55 }
 0x9e0   :  { %v10517_v47 = vsub.f32 %v10448_v2, %v7584_v55  ;;  %v10519_v42 = vsub.f32 %v7536_v52, %v7584_v55  ;;  %v10528_v15 = vsub.f32 %v7537_v25, %v7584_v55 }
 0x9e1   :  { %v7612_v28 = vmul.f32 %v10508_v24, %v10508_v24  ;;  %v7613_v46 = vmul.f32 %v10511_v43, %v10511_v43  ;;  %v10526_v29 = vsub.f32 %v10423_v14, %v7585_v7  ;;  %v10531_v1 = vsub.f32 %v10425_v13, %v7585_v7 }
 0x9e2   :  { %v7614_v49 = vmul.f32 %v10514_v26, %v10514_v26  ;;  %v10536_v52 = vsub.f32 %v10438_v57, %v7585_v7  ;;  %v10539_v62 = vsub.f32 %v10458_v32, %v7585_v7  ;;  %v7615_v13 = vmul.f32 %v10517_v47, %v10517_v47 }
 0x9e3   :  { %v7636_v2 = vadd.f32 %v7613_v46, %v7612_v28  ;;  %v7618_v14 = vmul.f32 %v10526_v29, %v10526_v29  ;;  %v7619_v25 = vmul.f32 %v10531_v1, %v10531_v1  ;;  %v7616_v9 = vmul.f32 %v10519_v42, %v10519_v42 }
 0x9e4   :  { %v7576_v61 = vpop.xlane.xlu0 %7575  ;;  %v7617_v33 = vmul.f32 %v10528_v15, %v10528_v15  ;;  %v10551_v32 = vsub.f32 %v7542_v36, %v7585_v7  ;;  %v7620_v59 = vmul.f32 %v10536_v52, %v10536_v52  ;;  %v10562_v30 = vsub.f32 %v10483_v45, %v7585_v7 }
 0x9e5   :  { %v7586_v44 = vmul.f32 0.0013020834, %v7576_v61  ;;  %v7637_v23 = vadd.f32 %v7636_v2, %v7614_v49  ;;  %v7643_v10 = vadd.f32 %v7619_v25, %v7618_v14  ;;  %v7621_v38 = vmul.f32 %v10539_v62, %v10539_v62 }
 0x9e6   :  { %v7583_v57 = vpop.xlane.xlu1 %7582  ;;  %v7622_v45 = vmul.f32 %v10551_v32, %v10551_v32  ;;  %v7623_v16 = vmul.f32 %v10562_v30, %v10562_v30 }
 0x9e7   :  { %v7587_v35 = vmul.f32 0.0013020834, %v7583_v57  ;;  %v7638_v54 = vadd.f32 %v7637_v23, %v7615_v13  ;;  %v10556_v40 = vsub.f32 %v10450_v53, %v7586_v44  ;;  %v10559_v11 = vsub.f32 %v10455_v5, %v7586_v44 }
 0x9e8   :  { %v7644_v36 = vadd.f32 %v7643_v10, %v7620_v59  ;;  %v10567_v58 = vsub.f32 %v10470_v41, %v7586_v44  ;;  %v10570_v31 = vsub.f32 %v10486_v50, %v7586_v44  ;;  %v10578_v63 = vsub.f32 %v7548_v39, %v7586_v44 }
 0x9e9   :  { %v7639_v0 = vadd.f32 %v7638_v54, %v7616_v9  ;;  %v7624_v53 = vmul.f32 %v10556_v40, %v10556_v40  ;;  %v7625_v5 = vmul.f32 %v10559_v11, %v10559_v11  ;;  %v10583_v50 = vsub.f32 %v10464_v17, %v7587_v35 }
 0x9ea   :  { %v7645_v20 = vadd.f32 %v7644_v36, %v7621_v38  ;;  %v7626_v41 = vmul.f32 %v10567_v58, %v10567_v58  ;;  %v10588_v4 = vsub.f32 %v10466_v60, %v7587_v35  ;;  %v10591_v27 = vsub.f32 %v10478_v12, %v7587_v35 }
 0x9eb   :  { %v7640_v18 = vadd.f32 %v7639_v0, %v7617_v33  ;;  %v7650_v19 = vadd.f32 %v7625_v5, %v7624_v53  ;;  %v10594_v39 = vsub.f32 %v10496_v51, %v7586_v44  ;;  %v7627_v8 = vmul.f32 %v10570_v31, %v10570_v31 }
 0x9ec   :  { %v7646_v21 = vadd.f32 %v7645_v20, %v7622_v45  ;;  %v7630_v17 = vmul.f32 %v10583_v50, %v10583_v50  ;;  %v10601_v48 = vsub.f32 %v10489_v56, %v7587_v35  ;;  %v7631_v60 = vmul.f32 %v10588_v4, %v10588_v4 }
 0x9ed   :  { %7641 = vadd.xlane.f32.xlu0 %v7640_v18  ;;  %v7651_v22 = vadd.f32 %v7650_v19, %v7626_v41  ;;  %v7628_v12 = vmul.f32 %v10578_v63, %v10578_v63  ;;  %v10608_v51 = vsub.f32 %v10500_v3, %v7587_v35  ;;  %v7632_v34 = vmul.f32 %v10591_v27, %v10591_v27 }
 0x9ee   :  { %v7647_v37 = vadd.f32 %v7646_v21, %v7623_v16  ;;  %v7657_v7 = vadd.f32 %v7631_v60, %v7630_v17  ;;  %v7629_v28 = vmul.f32 %v10594_v39, %v10594_v39  ;;  %v10615_v46 = vsub.f32 %v10502_v6, %v7587_v35 }
 0x9ef   :  { %v7652_v55 = vadd.f32 %v7651_v22, %v7627_v8  ;;  %v7633_v49 = vmul.f32 %v10601_v48, %v10601_v48  ;;  %v7634_v3 = vmul.f32 %v10608_v51, %v10608_v51 }
 0x9f0   :  { %7648 = vadd.xlane.f32.xlu1 %v7647_v37  ;;  %v7658_v2 = vadd.f32 %v7657_v7, %v7632_v34  ;;  %v7635_v25 = vmul.f32 %v10615_v46, %v10615_v46 }
 0x9f1   :  { %v7653_v56 = vadd.f32 %v7652_v55, %v7628_v12 }
 0x9f2   :  { %v7659_v14 = vadd.f32 %v7658_v2, %v7633_v49 }
 0x9f3   :  { %v7654_v61 = vadd.f32 %v7653_v56, %v7629_v28 }
 0x9f4   :  { %v7660_v44 = vadd.f32 %v7659_v14, %v7634_v3 }
 0x9f5   :  { %7655 = vadd.xlane.f32.xlu0 %v7654_v61 }
 0x9f6   :  { %v7661_v13 = vadd.f32 %v7660_v44, %v7635_v25 }
 0x9f8   :  { %7662 = vadd.xlane.f32.xlu1 %v7661_v13 }
 0xa7a   :  { %v7642_v9 = vpop.xlane.xlu0 %7641 }
 0xa7b   :  { %v7664_v23 = vmul.f32 0.0013020834, %v7642_v9 }
 0xa7d   :  { %v7668_v6 = vadd.f32 1e-05, %v7664_v23  ;;  %v7649_v57 = vpop.xlane.xlu1 %7648 }
 0xa7e   :  { %v7665_v33 = vmul.f32 0.0013020834, %v7649_v57 }
 0xa7f   :  { %9353 = vrsqrt.f32 %v7668_v6 }
 0xa80   :  { %v7669_v59 = vadd.f32 1e-05, %v7665_v33 }
 0xa82   :  { %9355 = vrsqrt.f32 %v7669_v59  ;;  %v7656_v10 = vpop.xlane.xlu0 %7655 }
 0xa83   :  { %v7666_v35 = vmul.f32 0.0013020834, %v7656_v10 }
 0xa85   :  { %v7670_v54 = vadd.f32 1e-05, %v7666_v35  ;;  %v7663_v38 = vpop.xlane.xlu1 %7662 }
 0xa86   :  { %v7667_v36 = vmul.f32 0.0013020834, %v7663_v38 }
 0xa87   :  { %9357 = vrsqrt.f32 %v7670_v54 }
 0xa88   :  { %v7671_v19 = vadd.f32 1e-05, %v7667_v36 }
 0xa89   :  { %v9354_v0 = vpop.eup %9353 }
 0xa8a   :  { %v7676_v53 = vmul.f32 %v9354_v0, %v10508_v24  ;;  %v7677_v5 = vmul.f32 %v9354_v0, %v10511_v43  ;;  %v7678_v45 = vmul.f32 %v9354_v0, %v10514_v26  ;;  %v7679_v20 = vmul.f32 %v9354_v0, %v10517_v47 }
 0xa8b   :  { %v7680_v18 = vmul.f32 %v9354_v0, %v10519_v42  ;;  %v7681_v41 = vmul.f32 %v9354_v0, %v10528_v15  ;;  %9359 = vrsqrt.f32 %v7671_v19 }
 0xa8c   :  { %v9356_v16 = vpop.eup %9355  ;;  %7700 = vst [vmem:[#allocation13] sm:$0xff] %v7676_v53  ;;  %7701 = vst [vmem:[#allocation13 + $0x8] sm:$0xff] %v7677_v5 }
 0xa8d   :  { %7702 = vst [vmem:[#allocation13 + $0x10] sm:$0xff] %v7678_v45  ;;  %7703 = vst [vmem:[#allocation13 + $0x18] sm:$0xff] %v7679_v20  ;;  %v7682_v24 = vmul.f32 %v9356_v16, %v10526_v29  ;;  %v7683_v43 = vmul.f32 %v9356_v16, %v10531_v1  ;;  %v7684_v26 = vmul.f32 %v9356_v16, %v10536_v52 }
 0xa8e   :  { %7704 = vst [vmem:[#allocation13 + $0x20] sm:$0xff] %v7680_v18  ;;  %7705 = vst [vmem:[#allocation13 + $0x28] sm:$0xff] %v7681_v41  ;;  %v7685_v47 = vmul.f32 %v9356_v16, %v10539_v62  ;;  %v7686_v42 = vmul.f32 %v9356_v16, %v10551_v32  ;;  %v7687_v15 = vmul.f32 %v9356_v16, %v10562_v30 }
 0xa8f   :  { %7706 = vst [vmem:[#allocation13 + $0x30] sm:$0xff] %v7682_v24  ;;  %7707 = vst [vmem:[#allocation13 + $0x38] sm:$0xff] %v7683_v43 }
 0xa90   :  { %7708 = vst [vmem:[#allocation13 + $0x40] sm:$0xff] %v7684_v26  ;;  %7709 = vst [vmem:[#allocation13 + $0x48] sm:$0xff] %v7685_v47 }
 0xa91   :  { %7710 = vst [vmem:[#allocation13 + $0x50] sm:$0xff] %v7686_v42  ;;  %7711 = vst [vmem:[#allocation13 + $0x58] sm:$0xff] %v7687_v15  ;;  %v9358_v21 = vpop.eup %9357 }
 0xa92   :  { %v7688_v29 = vmul.f32 %v9358_v21, %v10556_v40  ;;  %v7689_v1 = vmul.f32 %v9358_v21, %v10559_v11  ;;  %v7690_v52 = vmul.f32 %v9358_v21, %v10567_v58  ;;  %v7691_v62 = vmul.f32 %v9358_v21, %v10570_v31 }
 0xa93   :  { %v7692_v32 = vmul.f32 %v9358_v21, %v10578_v63  ;;  %v7693_v30 = vmul.f32 %v9358_v21, %v10594_v39 }
 0xa94   :  { %7712 = vst [vmem:[#allocation13 + $0x60] sm:$0xff] %v7688_v29  ;;  %7713 = vst [vmem:[#allocation13 + $0x68] sm:$0xff] %v7689_v1 }
 0xa95   :  { %7714 = vst [vmem:[#allocation13 + $0x70] sm:$0xff] %v7690_v52  ;;  %7715 = vst [vmem:[#allocation13 + $0x78] sm:$0xff] %v7691_v62  ;;  %v9360_v8 = vpop.eup %9359 }
 0xa96   :  { %7716 = vst [vmem:[#allocation13 + $0x80] sm:$0xff] %v7692_v32  ;;  %7717 = vst [vmem:[#allocation13 + $0x88] sm:$0xff] %v7693_v30  ;;  %v7694_v40 = vmul.f32 %v9360_v8, %v10583_v50  ;;  %v7695_v11 = vmul.f32 %v9360_v8, %v10588_v4  ;;  %v7696_v58 = vmul.f32 %v9360_v8, %v10591_v27 }
 0xa97   :  { %v7697_v31 = vmul.f32 %v9360_v8, %v10601_v48  ;;  %v7698_v63 = vmul.f32 %v9360_v8, %v10608_v51  ;;  %v7699_v39 = vmul.f32 %v9360_v8, %v10615_v46 }
 0xa98   :  { %7718 = vst [vmem:[#allocation13 + $0x90] sm:$0xff] %v7694_v40  ;;  %7719 = vst [vmem:[#allocation13 + $0x98] sm:$0xff] %v7695_v11 }
 0xa99   :  { %7720 = vst [vmem:[#allocation13 + $0xa0] sm:$0xff] %v7696_v58  ;;  %7721 = vst [vmem:[#allocation13 + $0xa8] sm:$0xff] %v7697_v31 }
 0xa9a   :  { %7722 = vst [vmem:[#allocation13 + $0xb0] sm:$0xff] %v7698_v63  ;;  %7723 = vst [vmem:[#allocation13 + $0xb8] sm:$0xff] %v7699_v39 }
 0xa9b   :  { %9529 = shalt.err (!%p9526_p10)
}
 0xa9c   :  { %s9530_s26 = scalar_lea.hbm %s10668_s6, 3072 }
 0xa9d   :  { %p9531_p11 = scmp.ne.s32.totalorder %s10668_s6, %s9530_s26  ;;  %p9534_p12 = scmp.lt.u32.totalorder %s9530_s26, %s10668_s6 }
 0xa9f   :  { %p9536_p13 = pnand %p9534_p12, %p9531_p11 }
 0xaa1   :  { %9539 = shalt.err (!%p9536_p13)
}
 0xaa2   :  { %7735 = dma.vmem_to_hbm [thread:$0]  %s7730_s22, 3072, %s10668_s6, [#allocation4], %s9551_s7, %s9551_s7, %s9552_s8  }
 0xaa3   :  { %9548 = dma.done.wait [#allocation4], 3072  }
 0xaa4   :  { %9549 = vsyncadd [#allocation4], 4294964224 }
 0xaa5   :  { %7739 = vsyncpa [#allocation3], 1 }
 0xaa6   :  { %7740 = vsyncpa [#allocation6], 1 }
 0xaa7   :  { %7741 = vsyncpa [#allocation9], 1 }
 0xaa8   :  { %7742 = vsyncpa [#allocation12], 1 }
 0xaa9   :  { %7743 = vsyncpa [#allocation4], 1 }

</bundles_post_ra>
